<compile_context>
chip_gen: v5e
topology: v5e:2x2
jax: 0.10.0
libtpu: 0.0.40
codegen_flags: <defaults>
</compile_context>

<pallas_src>
import functools

import numpy as np
import jax
import jax.numpy as jnp
from jax.experimental import pallas as pl
from jax.experimental.pallas import tpu as pltpu


# ----------------------------------------------------------------------------
# Fused kernel: one grid step == one batch tile (Bt images), everything in VMEM.
# ----------------------------------------------------------------------------
def cib_fused_kernel(dw1_wm_ref, dw1_b_ref,
                     cv2_w_ref, cv2_b_ref,
                     dw3_wm_ref, dw3_b_ref,
                     cv4_w_ref, cv4_b_ref,
                     dw5_wm_ref, dw5_b_ref,
                     x_ref, o_ref, *, H, W, n_img, add_shortcut):
    N = H * W
    Nt = n_img * N
    x = x_ref[...]                       # [C1, Nt] f32 (Bt images folded into lanes)

    # Flat-index delta of 3x3 tap (di, dj) is di*W + dj; rolling the folded [C, Bt*N] slab
    # by (-delta) mod Nt brings pixel (h+di, w+dj) of the SAME image to flat position (h, w).
    # Any read that would cross an image border (zero padding, or the neighbouring image in
    # the folded slab) is exactly a tap whose mask-folded weight is zero, so it contributes
    # nothing.
    shifts = [(-(di * W + dj)) % Nt for di in (-1, 0, 1) for dj in (-1, 0, 1)]

    def silu(v):
        # sigmoid(v) = 0.5 * (tanh(v/2) + 1): tanh runs on the EUP slot (slack) instead of
        # burning an f32 divide on the saturated VALU slot; numerically exact.
        return v * (0.5 * jnp.tanh(0.5 * v) + 0.5)

    def dwconv3x3(act, wm_ref, b_ref):
        # wm_ref: [9, C, Nt] border-mask-folded tap weights; b_ref: [C, 1].
        # Center tap (t = 4, shift 0) seeds the accumulator together with the bias,
        # saving a zeros-init pass and a trailing bias add.
        acc = act * wm_ref[4] + b_ref[...]
        for t in (0, 1, 2, 3, 5, 6, 7, 8):
            acc = acc + pltpu.roll(act, shifts[t], 1) * wm_ref[t]
        return acc

    def conv1x1(act, w_ref, b_ref):
        # MXU matmul over channels, f32 accumulation, bias added once.
        # TODO(synk): optionally cast operands to bf16 on v6e/v7x once the tolerance budget
        # is re-validated; at these sizes the 1x1s are not the bottleneck.
        return jnp.dot(w_ref[...], act, preferred_element_type=jnp.float32) + b_ref[...]

    y = silu(dwconv3x3(x, dw1_wm_ref, dw1_b_ref))   # Conv(c1,  c1,  3, g=c1)
    y = silu(conv1x1(y, cv2_w_ref, cv2_b_ref))      # Conv(c1,  2c_, 1)
    y = silu(dwconv3x3(y, dw3_wm_ref, dw3_b_ref))   # Conv(2c_, 2c_, 3, g=2c_)
    y = silu(conv1x1(y, cv4_w_ref, cv4_b_ref))      # Conv(2c_, c2,  1)
    y = silu(dwconv3x3(y, dw5_wm_ref, dw5_b_ref))   # Conv(c2,  c2,  3, g=c2)

    if add_shortcut:
        y = y + x
    o_ref[...] = y.astype(o_ref.dtype)


# ----------------------------------------------------------------------------
# Wrapper helpers
# ----------------------------------------------------------------------------
def _tap_masks(H, W, n_img):
    """[9, n_img*H*W] float masks: 1 where tap (di, dj) reads a valid in-image pixel."""
    n = np.arange(H * W)
    h, w = n // W, n % W
    masks = []
    for di in (-1, 0, 1):
        for dj in (-1, 0, 1):
            m = (h + di >= 0) & (h + di < H) & (w + dj >= 0) & (w + dj < W)
            masks.append(m.astype(np.float32))
    m = np.stack(masks)                      # [9, N]
    return np.tile(m, (1, n_img))            # per-image-contiguous tiling -> [9, n_img*N]


def _fold_border_masks(w_dw, masks):
    """w_dw: [C, 3, 3], masks: [9, Nt] -> mask-folded tap weights [9, C, Nt]."""
    c = w_dw.shape[0]
    w9 = w_dw.reshape(c, 9).T                # [9, C]
    return w9[:, :, None] * masks[:, None, :]


def _pick_batch_tile(B, max_tile=4):
    """Largest divisor of B (<= max_tile) that still leaves >= 2 grid steps when B >= 2."""
    best = 1
    for bt in range(1, min(B, max_tile) + 1):
        if B % bt == 0 and (B // bt >= 2 or B == 1):
            best = bt
    return best


# ----------------------------------------------------------------------------
# Wrapper
# ----------------------------------------------------------------------------
def cib_forward(params, x, *, shortcut=True, batch_tile=None):
    """x: [B, C1, H, W] NCHW float32 -> [B, C2, H, W]"""
    B, C1, H, W = x.shape
    N = H * W
    C2h = params["cv2_w"].shape[0]           # 2 * c_
    C2 = params["cv4_w"].shape[0]
    add = bool(shortcut and (C1 == C2))

    Bt = batch_tile if batch_tile is not None else _pick_batch_tile(B)
    assert B % Bt == 0, "batch tile must divide batch"
    n_steps = B // Bt
    Nt = Bt * N

    masks = jnp.asarray(_tap_masks(H, W, Bt))                 # [9, Nt]
    dw1_wm = _fold_border_masks(params["dw1_w"], masks)       # [9, C1,  Nt]
    dw3_wm = _fold_border_masks(params["dw3_w"], masks)       # [9, C2h, Nt]
    dw5_wm = _fold_border_masks(params["dw5_w"], masks)       # [9, C2,  Nt]

    # [B, C1, H, W] -> lane-dense folded layout [C1, B*N] (per-image contiguous lanes).
    x_flat = jnp.transpose(x.reshape(B, C1, N), (1, 0, 2)).reshape(C1, B * N)

    args = (
        dw1_wm,          params["dw1_b"].reshape(C1, 1),
        params["cv2_w"], params["cv2_b"].reshape(C2h, 1),
        dw3_wm,          params["dw3_b"].reshape(C2h, 1),
        params["cv4_w"], params["cv4_b"].reshape(C2, 1),
        dw5_wm,          params["dw5_b"].reshape(C2, 1),
        x_flat,
    )

    full2 = lambda t: (0, 0)
    full3 = lambda t: (0, 0, 0)
    in_specs = [
        pl.BlockSpec((9, C1, Nt),  full3),                    # dw1 mask-folded weights
        pl.BlockSpec((C1, 1),      full2),                    # dw1 bias
        pl.BlockSpec((C2h, C1),    full2),                    # cv2 weight
        pl.BlockSpec((C2h, 1),     full2),                    # cv2 bias
        pl.BlockSpec((9, C2h, Nt), full3),                    # dw3 mask-folded weights
        pl.BlockSpec((C2h, 1),     full2),                    # dw3 bias
        pl.BlockSpec((C2, C2h),    full2),                    # cv4 weight
        pl.BlockSpec((C2, 1),      full2),                    # cv4 bias
        pl.BlockSpec((9, C2, Nt),  full3),                    # dw5 mask-folded weights
        pl.BlockSpec((C2, 1),      full2),                    # dw5 bias
        pl.BlockSpec((C1, Nt),     lambda t: (0, t)),         # x batch tile
    ]
    out_specs = pl.BlockSpec((C2, Nt), lambda t: (0, t))

    # Advisory cost estimate for XLA scheduling around the custom call.
    n_elem = B * N
    flops = int(18 * (C1 + C2h + C2) * n_elem
                + 2 * (C2h * C1 + C2 * C2h) * n_elem
                + 4 * (C1 + 2 * C2h + 2 * C2) * n_elem)
    transcendentals = int((C1 + 2 * C2h + 2 * C2) * n_elem)
    bytes_accessed = int(sum(int(a.size) for a in args) * 4 + C2 * B * N * 4)

    kernel = functools.partial(cib_fused_kernel, H=H, W=W, n_img=Bt, add_shortcut=add)
    out = pl.pallas_call(
        kernel,
        out_shape=jax.ShapeDtypeStruct((C2, B * N), x.dtype),
        grid=(n_steps,),
        in_specs=in_specs,
        out_specs=out_specs,
        compiler_params=pltpu.CompilerParams(dimension_semantics=("parallel",)),
        cost_estimate=pl.CostEstimate(flops=flops,
                                      transcendentals=transcendentals,
                                      bytes_accessed=bytes_accessed),
    )(*args)
    return jnp.transpose(out.reshape(C2, B, N), (1, 0, 2)).reshape(B, C2, H, W)


# ----------------------------------------------------------------------------
# Parameter init (BN already folded into per-layer (weight, bias))
# ----------------------------------------------------------------------------
def init_cib_params(key, c1, c2, e=0.5):
    c_ = int(c2 * e)
    ch = 2 * c_
    ks = jax.random.split(key, 10)

    def dw(k, c):
        return jax.random.normal(k, (c, 3, 3), jnp.float32) / 3.0

    def pw(k, co, ci):
        return jax.random.normal(k, (co, ci), jnp.float32) / np.sqrt(ci)

    def bias(k, c):
        return 0.01 * jax.random.normal(k, (c,), jnp.float32)

    return {
        "dw1_w": dw(ks[0], c1), "dw1_b": bias(ks[1], c1),
        "cv2_w": pw(ks[2], ch, c1), "cv2_b": bias(ks[3], ch),
        "dw3_w": dw(ks[4], ch), "dw3_b": bias(ks[5], ch),
        "cv4_w": pw(ks[6], c2, ch), "cv4_b": bias(ks[7], c2),
        "dw5_w": dw(ks[8], c2), "dw5_b": bias(ks[9], c2),
    }


# ----------------------------------------------------------------------------
# Pure-JAX reference (numerical verification of the fused kernel)
# ----------------------------------------------------------------------------
def cib_reference(params, x, *, shortcut=True):
    C1, C2 = x.shape[1], params["cv4_w"].shape[0]
    add = shortcut and C1 == C2
    hp = jax.lax.Precision.HIGHEST

    def silu(v):
        return v * jax.nn.sigmoid(v)

    def dw3x3(w, b, a):
        out = jax.lax.conv_general_dilated(
            a, w[:, None, :, :], window_strides=(1, 1), padding=((1, 1), (1, 1)),
            dimension_numbers=("NCHW", "OIHW", "NCHW"),
            feature_group_count=a.shape[1], precision=hp)
        return out + b[None, :, None, None]

    def c1x1(w, b, a):
        return jnp.einsum("oc,bchw->bohw", w, a, precision=hp) + b[None, :, None, None]

    y = silu(dw3x3(params["dw1_w"], params["dw1_b"], x))
    y = silu(c1x1(params["cv2_w"], params["cv2_b"], y))
    y = silu(dw3x3(params["dw3_w"], params["dw3_b"], y))
    y = silu(c1x1(params["cv4_w"], params["cv4_b"], y))
    y = silu(dw3x3(params["dw5_w"], params["dw5_b"], y))
    return x + y if add else y


if __name__ == "__main__":
    root = jax.random.PRNGKey(0)
    kp1, kx1, kp2, kx2 = jax.random.split(root, 4)

    # Config 1: CIB(64, 64, shortcut=True, e=0.5) -> residual path; Bt=1 keeps 2 grid
    # steps so both v7x TensorCores get work.
    B, C, H, W = 2, 64, 16, 16
    params = init_cib_params(kp1, C, C, e=0.5)
    x = jax.random.normal(kx1, (B, C, H, W), jnp.float32)
    out = jax.block_until_ready(cib_forward(params, x, shortcut=True))
    ref = cib_reference(params, x, shortcut=True)
    assert out.shape == ref.shape == (B, C, H, W)
    assert bool(jnp.all(jnp.isfinite(out)))
    err1 = float(jnp.max(jnp.abs(out - ref)))
    assert err1 < 2e-3, f"config1 mismatch vs reference: max abs err = {err1}"

    # Config 2: CIB(32, 48, shortcut=True) -> c1 != c2 so no residual; B=4 exercises the
    # batch-folded path (Bt=2 images per grid step, tiled masks folded into dw weights).
    B2, C1b, C2b, H2, W2 = 4, 32, 48, 16, 16
    params2 = init_cib_params(kp2, C1b, C2b, e=0.5)
    x2 = jax.random.normal(kx2, (B2, C1b, H2, W2), jnp.float32)
    out2 = jax.block_until_ready(cib_forward(params2, x2, shortcut=True))
    ref2 = cib_reference(params2, x2, shortcut=True)
    assert out2.shape == ref2.shape == (B2, C2b, H2, W2)
    assert bool(jnp.all(jnp.isfinite(out2)))
    err2 = float(jnp.max(jnp.abs(out2 - ref2)))
    assert err2 < 2e-3, f"config2 mismatch vs reference: max abs err = {err2}"

    print("KERNEL_OK")
</pallas_src>

<mosaic_0001>
module attributes {stable_mosaic.version = 11 : i64} {
  func.func @cib_fused_kernel(%arg0: i32, %arg1: memref<9x64x256xf32, #tpu.memory_space<vmem>>, %arg2: memref<64x1xf32, #tpu.memory_space<vmem>>, %arg3: memref<64x64xf32, #tpu.memory_space<vmem>>, %arg4: memref<64x1xf32, #tpu.memory_space<vmem>>, %arg5: memref<9x64x256xf32, #tpu.memory_space<vmem>>, %arg6: memref<64x1xf32, #tpu.memory_space<vmem>>, %arg7: memref<64x64xf32, #tpu.memory_space<vmem>>, %arg8: memref<64x1xf32, #tpu.memory_space<vmem>>, %arg9: memref<9x64x256xf32, #tpu.memory_space<vmem>>, %arg10: memref<64x1xf32, #tpu.memory_space<vmem>>, %arg11: memref<64x256xf32, #tpu.memory_space<vmem>>, %arg12: memref<64x256xf32, #tpu.memory_space<vmem>>) attributes {dimension_semantics = [#tpu.dimension_semantics<parallel>], iteration_bounds = array<i64: 2>, scalar_prefetch = 0 : i64, scratch_operands = 0 : i64, tpu.core_type = #tpu.core_type<tc>, window_params = [{pipeline_mode = #tpu.pipeline_mode<synchronous>, transform_indices = @transform_0, window_bounds = array<i64: 9, 64, 256>}, {pipeline_mode = #tpu.pipeline_mode<synchronous>, transform_indices = @transform_1, window_bounds = array<i64: 64, 1>}, {pipeline_mode = #tpu.pipeline_mode<synchronous>, transform_indices = @transform_2, window_bounds = array<i64: 64, 64>}, {pipeline_mode = #tpu.pipeline_mode<synchronous>, transform_indices = @transform_3, window_bounds = array<i64: 64, 1>}, {pipeline_mode = #tpu.pipeline_mode<synchronous>, transform_indices = @transform_4, window_bounds = array<i64: 9, 64, 256>}, {pipeline_mode = #tpu.pipeline_mode<synchronous>, transform_indices = @transform_5, window_bounds = array<i64: 64, 1>}, {pipeline_mode = #tpu.pipeline_mode<synchronous>, transform_indices = @transform_6, window_bounds = array<i64: 64, 64>}, {pipeline_mode = #tpu.pipeline_mode<synchronous>, transform_indices = @transform_7, window_bounds = array<i64: 64, 1>}, {pipeline_mode = #tpu.pipeline_mode<synchronous>, transform_indices = @transform_8, window_bounds = array<i64: 9, 64, 256>}, {pipeline_mode = #tpu.pipeline_mode<synchronous>, transform_indices = @transform_9, window_bounds = array<i64: 64, 1>}, {transform_indices = @transform_10, window_bounds = array<i64: 64, 256>}, {transform_indices = @transform_11, window_bounds = array<i64: 64, 256>}]} {
    %c0 = arith.constant 0 : index
    %c0_0 = arith.constant 0 : index
    %0 = vector.load %arg11[%c0, %c0_0] : memref<64x256xf32, #tpu.memory_space<vmem>>, vector<64x256xf32>
    %c4 = arith.constant 4 : index
    %c0_1 = arith.constant 0 : index
    %c0_2 = arith.constant 0 : index
    %1 = vector.load %arg1[%c4, %c0_1, %c0_2] : memref<9x64x256xf32, #tpu.memory_space<vmem>>, vector<1x64x256xf32>
    %2 = vector.shape_cast %1 : vector<1x64x256xf32> to vector<64x256xf32>
    %3 = arith.mulf %0, %2 : vector<64x256xf32>
    %c0_3 = arith.constant 0 : index
    %c0_4 = arith.constant 0 : index
    %4 = vector.load %arg2[%c0_3, %c0_4] : memref<64x1xf32, #tpu.memory_space<vmem>>, vector<64x1xf32>
    %5 = vector.broadcast %4 : vector<64x1xf32> to vector<64x256xf32>
    %6 = arith.addf %3, %5 : vector<64x256xf32>
    %c17_i32 = arith.constant 17 : i32
    %7 = tpu.dynamic_rotate %0 by %c17_i32 dim 1 : vector<64x256xf32>, i32 -> vector<64x256xf32>
    %c0_5 = arith.constant 0 : index
    %c0_6 = arith.constant 0 : index
    %c0_7 = arith.constant 0 : index
    %8 = vector.load %arg1[%c0_5, %c0_6, %c0_7] : memref<9x64x256xf32, #tpu.memory_space<vmem>>, vector<1x64x256xf32>
    %9 = vector.shape_cast %8 : vector<1x64x256xf32> to vector<64x256xf32>
    %10 = arith.mulf %7, %9 : vector<64x256xf32>
    %11 = arith.addf %6, %10 : vector<64x256xf32>
    %c16_i32 = arith.constant 16 : i32
    %12 = tpu.dynamic_rotate %0 by %c16_i32 dim 1 : vector<64x256xf32>, i32 -> vector<64x256xf32>
    %c1 = arith.constant 1 : index
    %c0_8 = arith.constant 0 : index
    %c0_9 = arith.constant 0 : index
    %13 = vector.load %arg1[%c1, %c0_8, %c0_9] : memref<9x64x256xf32, #tpu.memory_space<vmem>>, vector<1x64x256xf32>
    %14 = vector.shape_cast %13 : vector<1x64x256xf32> to vector<64x256xf32>
    %15 = arith.mulf %12, %14 : vector<64x256xf32>
    %16 = arith.addf %11, %15 : vector<64x256xf32>
    %c15_i32 = arith.constant 15 : i32
    %17 = tpu.dynamic_rotate %0 by %c15_i32 dim 1 : vector<64x256xf32>, i32 -> vector<64x256xf32>
    %c2 = arith.constant 2 : index
    %c0_10 = arith.constant 0 : index
    %c0_11 = arith.constant 0 : index
    %18 = vector.load %arg1[%c2, %c0_10, %c0_11] : memref<9x64x256xf32, #tpu.memory_space<vmem>>, vector<1x64x256xf32>
    %19 = vector.shape_cast %18 : vector<1x64x256xf32> to vector<64x256xf32>
    %20 = arith.mulf %17, %19 : vector<64x256xf32>
    %21 = arith.addf %16, %20 : vector<64x256xf32>
    %c1_i32 = arith.constant 1 : i32
    %22 = tpu.dynamic_rotate %0 by %c1_i32 dim 1 : vector<64x256xf32>, i32 -> vector<64x256xf32>
    %c3 = arith.constant 3 : index
    %c0_12 = arith.constant 0 : index
    %c0_13 = arith.constant 0 : index
    %23 = vector.load %arg1[%c3, %c0_12, %c0_13] : memref<9x64x256xf32, #tpu.memory_space<vmem>>, vector<1x64x256xf32>
    %24 = vector.shape_cast %23 : vector<1x64x256xf32> to vector<64x256xf32>
    %25 = arith.mulf %22, %24 : vector<64x256xf32>
    %26 = arith.addf %21, %25 : vector<64x256xf32>
    %c255_i32 = arith.constant 255 : i32
    %27 = tpu.dynamic_rotate %0 by %c255_i32 dim 1 : vector<64x256xf32>, i32 -> vector<64x256xf32>
    %c5 = arith.constant 5 : index
    %c0_14 = arith.constant 0 : index
    %c0_15 = arith.constant 0 : index
    %28 = vector.load %arg1[%c5, %c0_14, %c0_15] : memref<9x64x256xf32, #tpu.memory_space<vmem>>, vector<1x64x256xf32>
    %29 = vector.shape_cast %28 : vector<1x64x256xf32> to vector<64x256xf32>
    %30 = arith.mulf %27, %29 : vector<64x256xf32>
    %31 = arith.addf %26, %30 : vector<64x256xf32>
    %c241_i32 = arith.constant 241 : i32
    %32 = tpu.dynamic_rotate %0 by %c241_i32 dim 1 : vector<64x256xf32>, i32 -> vector<64x256xf32>
    %c6 = arith.constant 6 : index
    %c0_16 = arith.constant 0 : index
    %c0_17 = arith.constant 0 : index
    %33 = vector.load %arg1[%c6, %c0_16, %c0_17] : memref<9x64x256xf32, #tpu.memory_space<vmem>>, vector<1x64x256xf32>
    %34 = vector.shape_cast %33 : vector<1x64x256xf32> to vector<64x256xf32>
    %35 = arith.mulf %32, %34 : vector<64x256xf32>
    %36 = arith.addf %31, %35 : vector<64x256xf32>
    %c240_i32 = arith.constant 240 : i32
    %37 = tpu.dynamic_rotate %0 by %c240_i32 dim 1 : vector<64x256xf32>, i32 -> vector<64x256xf32>
    %c7 = arith.constant 7 : index
    %c0_18 = arith.constant 0 : index
    %c0_19 = arith.constant 0 : index
    %38 = vector.load %arg1[%c7, %c0_18, %c0_19] : memref<9x64x256xf32, #tpu.memory_space<vmem>>, vector<1x64x256xf32>
    %39 = vector.shape_cast %38 : vector<1x64x256xf32> to vector<64x256xf32>
    %40 = arith.mulf %37, %39 : vector<64x256xf32>
    %41 = arith.addf %36, %40 : vector<64x256xf32>
    %c239_i32 = arith.constant 239 : i32
    %42 = tpu.dynamic_rotate %0 by %c239_i32 dim 1 : vector<64x256xf32>, i32 -> vector<64x256xf32>
    %c8 = arith.constant 8 : index
    %c0_20 = arith.constant 0 : index
    %c0_21 = arith.constant 0 : index
    %43 = vector.load %arg1[%c8, %c0_20, %c0_21] : memref<9x64x256xf32, #tpu.memory_space<vmem>>, vector<1x64x256xf32>
    %44 = vector.shape_cast %43 : vector<1x64x256xf32> to vector<64x256xf32>
    %45 = arith.mulf %42, %44 : vector<64x256xf32>
    %46 = arith.addf %41, %45 : vector<64x256xf32>
    %cst = arith.constant 5.000000e-01 : f32
    %47 = vector.broadcast %cst : f32 to vector<64x256xf32>
    %48 = arith.mulf %47, %46 : vector<64x256xf32>
    %49 = math.tanh %48 : vector<64x256xf32>
    %cst_22 = arith.constant 5.000000e-01 : f32
    %50 = vector.broadcast %cst_22 : f32 to vector<64x256xf32>
    %51 = arith.mulf %50, %49 : vector<64x256xf32>
    %cst_23 = arith.constant 5.000000e-01 : f32
    %52 = vector.broadcast %cst_23 : f32 to vector<64x256xf32>
    %53 = arith.addf %51, %52 : vector<64x256xf32>
    %54 = arith.mulf %46, %53 : vector<64x256xf32>
    %c0_24 = arith.constant 0 : index
    %c0_25 = arith.constant 0 : index
    %55 = vector.load %arg3[%c0_24, %c0_25] : memref<64x64xf32, #tpu.memory_space<vmem>>, vector<64x64xf32>
    %cst_26 = arith.constant dense<0.000000e+00> : vector<64x256xf32>
    %56 = tpu.matmul %55, %54, %cst_26 {dimension_numbers = #tpu.dot_dimension_numbers<[1], [0], [0], [1], [0, 0, 1, 1], [], []>} : vector<64x64xf32>, vector<64x256xf32>, vector<64x256xf32> -> vector<64x256xf32>
    %c0_27 = arith.constant 0 : index
    %c0_28 = arith.constant 0 : index
    %57 = vector.load %arg4[%c0_27, %c0_28] : memref<64x1xf32, #tpu.memory_space<vmem>>, vector<64x1xf32>
    %58 = vector.broadcast %57 : vector<64x1xf32> to vector<64x256xf32>
    %59 = arith.addf %56, %58 : vector<64x256xf32>
    %cst_29 = arith.constant 5.000000e-01 : f32
    %60 = vector.broadcast %cst_29 : f32 to vector<64x256xf32>
    %61 = arith.mulf %60, %59 : vector<64x256xf32>
    %62 = math.tanh %61 : vector<64x256xf32>
    %cst_30 = arith.constant 5.000000e-01 : f32
    %63 = vector.broadcast %cst_30 : f32 to vector<64x256xf32>
    %64 = arith.mulf %63, %62 : vector<64x256xf32>
    %cst_31 = arith.constant 5.000000e-01 : f32
    %65 = vector.broadcast %cst_31 : f32 to vector<64x256xf32>
    %66 = arith.addf %64, %65 : vector<64x256xf32>
    %67 = arith.mulf %59, %66 : vector<64x256xf32>
    %c4_32 = arith.constant 4 : index
    %c0_33 = arith.constant 0 : index
    %c0_34 = arith.constant 0 : index
    %68 = vector.load %arg5[%c4_32, %c0_33, %c0_34] : memref<9x64x256xf32, #tpu.memory_space<vmem>>, vector<1x64x256xf32>
    %69 = vector.shape_cast %68 : vector<1x64x256xf32> to vector<64x256xf32>
    %70 = arith.mulf %67, %69 : vector<64x256xf32>
    %c0_35 = arith.constant 0 : index
    %c0_36 = arith.constant 0 : index
    %71 = vector.load %arg6[%c0_35, %c0_36] : memref<64x1xf32, #tpu.memory_space<vmem>>, vector<64x1xf32>
    %72 = vector.broadcast %71 : vector<64x1xf32> to vector<64x256xf32>
    %73 = arith.addf %70, %72 : vector<64x256xf32>
    %c17_i32_37 = arith.constant 17 : i32
    %74 = tpu.dynamic_rotate %67 by %c17_i32_37 dim 1 : vector<64x256xf32>, i32 -> vector<64x256xf32>
    %c0_38 = arith.constant 0 : index
    %c0_39 = arith.constant 0 : index
    %c0_40 = arith.constant 0 : index
    %75 = vector.load %arg5[%c0_38, %c0_39, %c0_40] : memref<9x64x256xf32, #tpu.memory_space<vmem>>, vector<1x64x256xf32>
    %76 = vector.shape_cast %75 : vector<1x64x256xf32> to vector<64x256xf32>
    %77 = arith.mulf %74, %76 : vector<64x256xf32>
    %78 = arith.addf %73, %77 : vector<64x256xf32>
    %c16_i32_41 = arith.constant 16 : i32
    %79 = tpu.dynamic_rotate %67 by %c16_i32_41 dim 1 : vector<64x256xf32>, i32 -> vector<64x256xf32>
    %c1_42 = arith.constant 1 : index
    %c0_43 = arith.constant 0 : index
    %c0_44 = arith.constant 0 : index
    %80 = vector.load %arg5[%c1_42, %c0_43, %c0_44] : memref<9x64x256xf32, #tpu.memory_space<vmem>>, vector<1x64x256xf32>
    %81 = vector.shape_cast %80 : vector<1x64x256xf32> to vector<64x256xf32>
    %82 = arith.mulf %79, %81 : vector<64x256xf32>
    %83 = arith.addf %78, %82 : vector<64x256xf32>
    %c15_i32_45 = arith.constant 15 : i32
    %84 = tpu.dynamic_rotate %67 by %c15_i32_45 dim 1 : vector<64x256xf32>, i32 -> vector<64x256xf32>
    %c2_46 = arith.constant 2 : index
    %c0_47 = arith.constant 0 : index
    %c0_48 = arith.constant 0 : index
    %85 = vector.load %arg5[%c2_46, %c0_47, %c0_48] : memref<9x64x256xf32, #tpu.memory_space<vmem>>, vector<1x64x256xf32>
    %86 = vector.shape_cast %85 : vector<1x64x256xf32> to vector<64x256xf32>
    %87 = arith.mulf %84, %86 : vector<64x256xf32>
    %88 = arith.addf %83, %87 : vector<64x256xf32>
    %c1_i32_49 = arith.constant 1 : i32
    %89 = tpu.dynamic_rotate %67 by %c1_i32_49 dim 1 : vector<64x256xf32>, i32 -> vector<64x256xf32>
    %c3_50 = arith.constant 3 : index
    %c0_51 = arith.constant 0 : index
    %c0_52 = arith.constant 0 : index
    %90 = vector.load %arg5[%c3_50, %c0_51, %c0_52] : memref<9x64x256xf32, #tpu.memory_space<vmem>>, vector<1x64x256xf32>
    %91 = vector.shape_cast %90 : vector<1x64x256xf32> to vector<64x256xf32>
    %92 = arith.mulf %89, %91 : vector<64x256xf32>
    %93 = arith.addf %88, %92 : vector<64x256xf32>
    %c255_i32_53 = arith.constant 255 : i32
    %94 = tpu.dynamic_rotate %67 by %c255_i32_53 dim 1 : vector<64x256xf32>, i32 -> vector<64x256xf32>
    %c5_54 = arith.constant 5 : index
    %c0_55 = arith.constant 0 : index
    %c0_56 = arith.constant 0 : index
    %95 = vector.load %arg5[%c5_54, %c0_55, %c0_56] : memref<9x64x256xf32, #tpu.memory_space<vmem>>, vector<1x64x256xf32>
    %96 = vector.shape_cast %95 : vector<1x64x256xf32> to vector<64x256xf32>
    %97 = arith.mulf %94, %96 : vector<64x256xf32>
    %98 = arith.addf %93, %97 : vector<64x256xf32>
    %c241_i32_57 = arith.constant 241 : i32
    %99 = tpu.dynamic_rotate %67 by %c241_i32_57 dim 1 : vector<64x256xf32>, i32 -> vector<64x256xf32>
    %c6_58 = arith.constant 6 : index
    %c0_59 = arith.constant 0 : index
    %c0_60 = arith.constant 0 : index
    %100 = vector.load %arg5[%c6_58, %c0_59, %c0_60] : memref<9x64x256xf32, #tpu.memory_space<vmem>>, vector<1x64x256xf32>
    %101 = vector.shape_cast %100 : vector<1x64x256xf32> to vector<64x256xf32>
    %102 = arith.mulf %99, %101 : vector<64x256xf32>
    %103 = arith.addf %98, %102 : vector<64x256xf32>
    %c240_i32_61 = arith.constant 240 : i32
    %104 = tpu.dynamic_rotate %67 by %c240_i32_61 dim 1 : vector<64x256xf32>, i32 -> vector<64x256xf32>
    %c7_62 = arith.constant 7 : index
    %c0_63 = arith.constant 0 : index
    %c0_64 = arith.constant 0 : index
    %105 = vector.load %arg5[%c7_62, %c0_63, %c0_64] : memref<9x64x256xf32, #tpu.memory_space<vmem>>, vector<1x64x256xf32>
    %106 = vector.shape_cast %105 : vector<1x64x256xf32> to vector<64x256xf32>
    %107 = arith.mulf %104, %106 : vector<64x256xf32>
    %108 = arith.addf %103, %107 : vector<64x256xf32>
    %c239_i32_65 = arith.constant 239 : i32
    %109 = tpu.dynamic_rotate %67 by %c239_i32_65 dim 1 : vector<64x256xf32>, i32 -> vector<64x256xf32>
    %c8_66 = arith.constant 8 : index
    %c0_67 = arith.constant 0 : index
    %c0_68 = arith.constant 0 : index
    %110 = vector.load %arg5[%c8_66, %c0_67, %c0_68] : memref<9x64x256xf32, #tpu.memory_space<vmem>>, vector<1x64x256xf32>
    %111 = vector.shape_cast %110 : vector<1x64x256xf32> to vector<64x256xf32>
    %112 = arith.mulf %109, %111 : vector<64x256xf32>
    %113 = arith.addf %108, %112 : vector<64x256xf32>
    %cst_69 = arith.constant 5.000000e-01 : f32
    %114 = vector.broadcast %cst_69 : f32 to vector<64x256xf32>
    %115 = arith.mulf %114, %113 : vector<64x256xf32>
    %116 = math.tanh %115 : vector<64x256xf32>
    %cst_70 = arith.constant 5.000000e-01 : f32
    %117 = vector.broadcast %cst_70 : f32 to vector<64x256xf32>
    %118 = arith.mulf %117, %116 : vector<64x256xf32>
    %cst_71 = arith.constant 5.000000e-01 : f32
    %119 = vector.broadcast %cst_71 : f32 to vector<64x256xf32>
    %120 = arith.addf %118, %119 : vector<64x256xf32>
    %121 = arith.mulf %113, %120 : vector<64x256xf32>
    %c0_72 = arith.constant 0 : index
    %c0_73 = arith.constant 0 : index
    %122 = vector.load %arg7[%c0_72, %c0_73] : memref<64x64xf32, #tpu.memory_space<vmem>>, vector<64x64xf32>
    %cst_74 = arith.constant dense<0.000000e+00> : vector<64x256xf32>
    %123 = tpu.matmul %122, %121, %cst_74 {dimension_numbers = #tpu.dot_dimension_numbers<[1], [0], [0], [1], [0, 0, 1, 1], [], []>} : vector<64x64xf32>, vector<64x256xf32>, vector<64x256xf32> -> vector<64x256xf32>
    %c0_75 = arith.constant 0 : index
    %c0_76 = arith.constant 0 : index
    %124 = vector.load %arg8[%c0_75, %c0_76] : memref<64x1xf32, #tpu.memory_space<vmem>>, vector<64x1xf32>
    %125 = vector.broadcast %124 : vector<64x1xf32> to vector<64x256xf32>
    %126 = arith.addf %123, %125 : vector<64x256xf32>
    %cst_77 = arith.constant 5.000000e-01 : f32
    %127 = vector.broadcast %cst_77 : f32 to vector<64x256xf32>
    %128 = arith.mulf %127, %126 : vector<64x256xf32>
    %129 = math.tanh %128 : vector<64x256xf32>
    %cst_78 = arith.constant 5.000000e-01 : f32
    %130 = vector.broadcast %cst_78 : f32 to vector<64x256xf32>
    %131 = arith.mulf %130, %129 : vector<64x256xf32>
    %cst_79 = arith.constant 5.000000e-01 : f32
    %132 = vector.broadcast %cst_79 : f32 to vector<64x256xf32>
    %133 = arith.addf %131, %132 : vector<64x256xf32>
    %134 = arith.mulf %126, %133 : vector<64x256xf32>
    %c4_80 = arith.constant 4 : index
    %c0_81 = arith.constant 0 : index
    %c0_82 = arith.constant 0 : index
    %135 = vector.load %arg9[%c4_80, %c0_81, %c0_82] : memref<9x64x256xf32, #tpu.memory_space<vmem>>, vector<1x64x256xf32>
    %136 = vector.shape_cast %135 : vector<1x64x256xf32> to vector<64x256xf32>
    %137 = arith.mulf %134, %136 : vector<64x256xf32>
    %c0_83 = arith.constant 0 : index
    %c0_84 = arith.constant 0 : index
    %138 = vector.load %arg10[%c0_83, %c0_84] : memref<64x1xf32, #tpu.memory_space<vmem>>, vector<64x1xf32>
    %139 = vector.broadcast %138 : vector<64x1xf32> to vector<64x256xf32>
    %140 = arith.addf %137, %139 : vector<64x256xf32>
    %c17_i32_85 = arith.constant 17 : i32
    %141 = tpu.dynamic_rotate %134 by %c17_i32_85 dim 1 : vector<64x256xf32>, i32 -> vector<64x256xf32>
    %c0_86 = arith.constant 0 : index
    %c0_87 = arith.constant 0 : index
    %c0_88 = arith.constant 0 : index
    %142 = vector.load %arg9[%c0_86, %c0_87, %c0_88] : memref<9x64x256xf32, #tpu.memory_space<vmem>>, vector<1x64x256xf32>
    %143 = vector.shape_cast %142 : vector<1x64x256xf32> to vector<64x256xf32>
    %144 = arith.mulf %141, %143 : vector<64x256xf32>
    %145 = arith.addf %140, %144 : vector<64x256xf32>
    %c16_i32_89 = arith.constant 16 : i32
    %146 = tpu.dynamic_rotate %134 by %c16_i32_89 dim 1 : vector<64x256xf32>, i32 -> vector<64x256xf32>
    %c1_90 = arith.constant 1 : index
    %c0_91 = arith.constant 0 : index
    %c0_92 = arith.constant 0 : index
    %147 = vector.load %arg9[%c1_90, %c0_91, %c0_92] : memref<9x64x256xf32, #tpu.memory_space<vmem>>, vector<1x64x256xf32>
    %148 = vector.shape_cast %147 : vector<1x64x256xf32> to vector<64x256xf32>
    %149 = arith.mulf %146, %148 : vector<64x256xf32>
    %150 = arith.addf %145, %149 : vector<64x256xf32>
    %c15_i32_93 = arith.constant 15 : i32
    %151 = tpu.dynamic_rotate %134 by %c15_i32_93 dim 1 : vector<64x256xf32>, i32 -> vector<64x256xf32>
    %c2_94 = arith.constant 2 : index
    %c0_95 = arith.constant 0 : index
    %c0_96 = arith.constant 0 : index
    %152 = vector.load %arg9[%c2_94, %c0_95, %c0_96] : memref<9x64x256xf32, #tpu.memory_space<vmem>>, vector<1x64x256xf32>
    %153 = vector.shape_cast %152 : vector<1x64x256xf32> to vector<64x256xf32>
    %154 = arith.mulf %151, %153 : vector<64x256xf32>
    %155 = arith.addf %150, %154 : vector<64x256xf32>
    %c1_i32_97 = arith.constant 1 : i32
    %156 = tpu.dynamic_rotate %134 by %c1_i32_97 dim 1 : vector<64x256xf32>, i32 -> vector<64x256xf32>
    %c3_98 = arith.constant 3 : index
    %c0_99 = arith.constant 0 : index
    %c0_100 = arith.constant 0 : index
    %157 = vector.load %arg9[%c3_98, %c0_99, %c0_100] : memref<9x64x256xf32, #tpu.memory_space<vmem>>, vector<1x64x256xf32>
    %158 = vector.shape_cast %157 : vector<1x64x256xf32> to vector<64x256xf32>
    %159 = arith.mulf %156, %158 : vector<64x256xf32>
    %160 = arith.addf %155, %159 : vector<64x256xf32>
    %c255_i32_101 = arith.constant 255 : i32
    %161 = tpu.dynamic_rotate %134 by %c255_i32_101 dim 1 : vector<64x256xf32>, i32 -> vector<64x256xf32>
    %c5_102 = arith.constant 5 : index
    %c0_103 = arith.constant 0 : index
    %c0_104 = arith.constant 0 : index
    %162 = vector.load %arg9[%c5_102, %c0_103, %c0_104] : memref<9x64x256xf32, #tpu.memory_space<vmem>>, vector<1x64x256xf32>
    %163 = vector.shape_cast %162 : vector<1x64x256xf32> to vector<64x256xf32>
    %164 = arith.mulf %161, %163 : vector<64x256xf32>
    %165 = arith.addf %160, %164 : vector<64x256xf32>
    %c241_i32_105 = arith.constant 241 : i32
    %166 = tpu.dynamic_rotate %134 by %c241_i32_105 dim 1 : vector<64x256xf32>, i32 -> vector<64x256xf32>
    %c6_106 = arith.constant 6 : index
    %c0_107 = arith.constant 0 : index
    %c0_108 = arith.constant 0 : index
    %167 = vector.load %arg9[%c6_106, %c0_107, %c0_108] : memref<9x64x256xf32, #tpu.memory_space<vmem>>, vector<1x64x256xf32>
    %168 = vector.shape_cast %167 : vector<1x64x256xf32> to vector<64x256xf32>
    %169 = arith.mulf %166, %168 : vector<64x256xf32>
    %170 = arith.addf %165, %169 : vector<64x256xf32>
    %c240_i32_109 = arith.constant 240 : i32
    %171 = tpu.dynamic_rotate %134 by %c240_i32_109 dim 1 : vector<64x256xf32>, i32 -> vector<64x256xf32>
    %c7_110 = arith.constant 7 : index
    %c0_111 = arith.constant 0 : index
    %c0_112 = arith.constant 0 : index
    %172 = vector.load %arg9[%c7_110, %c0_111, %c0_112] : memref<9x64x256xf32, #tpu.memory_space<vmem>>, vector<1x64x256xf32>
    %173 = vector.shape_cast %172 : vector<1x64x256xf32> to vector<64x256xf32>
    %174 = arith.mulf %171, %173 : vector<64x256xf32>
    %175 = arith.addf %170, %174 : vector<64x256xf32>
    %c239_i32_113 = arith.constant 239 : i32
    %176 = tpu.dynamic_rotate %134 by %c239_i32_113 dim 1 : vector<64x256xf32>, i32 -> vector<64x256xf32>
    %c8_114 = arith.constant 8 : index
    %c0_115 = arith.constant 0 : index
    %c0_116 = arith.constant 0 : index
    %177 = vector.load %arg9[%c8_114, %c0_115, %c0_116] : memref<9x64x256xf32, #tpu.memory_space<vmem>>, vector<1x64x256xf32>
    %178 = vector.shape_cast %177 : vector<1x64x256xf32> to vector<64x256xf32>
    %179 = arith.mulf %176, %178 : vector<64x256xf32>
    %180 = arith.addf %175, %179 : vector<64x256xf32>
    %cst_117 = arith.constant 5.000000e-01 : f32
    %181 = vector.broadcast %cst_117 : f32 to vector<64x256xf32>
    %182 = arith.mulf %181, %180 : vector<64x256xf32>
    %183 = math.tanh %182 : vector<64x256xf32>
    %cst_118 = arith.constant 5.000000e-01 : f32
    %184 = vector.broadcast %cst_118 : f32 to vector<64x256xf32>
    %185 = arith.mulf %184, %183 : vector<64x256xf32>
    %cst_119 = arith.constant 5.000000e-01 : f32
    %186 = vector.broadcast %cst_119 : f32 to vector<64x256xf32>
    %187 = arith.addf %185, %186 : vector<64x256xf32>
    %188 = arith.mulf %180, %187 : vector<64x256xf32>
    %189 = arith.addf %188, %0 : vector<64x256xf32>
    %c0_120 = arith.constant 0 : index
    %c0_121 = arith.constant 0 : index
    %190 = vector.load %arg12[%c0_120, %c0_121] : memref<64x256xf32, #tpu.memory_space<vmem>>, vector<64x256xf32>
    tpu.vector_store %arg12[%c0_120, %c0_121], %189 {strides = array<i32>} : memref<64x256xf32, #tpu.memory_space<vmem>>, vector<64x256xf32>,
    return
  }
  func.func @transform_0(%arg0: i32) -> (i32, i32, i32) {
    %c0_i32 = arith.constant 0 : i32
    %c0_i32_0 = arith.constant 0 : i32
    %c0_i32_1 = arith.constant 0 : i32
    %c0_i32_2 = arith.constant 0 : i32
    return %c0_i32, %c0_i32_0, %c0_i32_1 : i32, i32, i32
  }
  func.func @transform_1(%arg0: i32) -> (i32, i32) {
    %c0_i32 = arith.constant 0 : i32
    %c0_i32_0 = arith.constant 0 : i32
    %c0_i32_1 = arith.constant 0 : i32
    return %c0_i32, %c0_i32_0 : i32, i32
  }
  func.func @transform_2(%arg0: i32) -> (i32, i32) {
    %c0_i32 = arith.constant 0 : i32
    %c0_i32_0 = arith.constant 0 : i32
    %c0_i32_1 = arith.constant 0 : i32
    return %c0_i32, %c0_i32_0 : i32, i32
  }
  func.func @transform_3(%arg0: i32) -> (i32, i32) {
    %c0_i32 = arith.constant 0 : i32
    %c0_i32_0 = arith.constant 0 : i32
    %c0_i32_1 = arith.constant 0 : i32
    return %c0_i32, %c0_i32_0 : i32, i32
  }
  func.func @transform_4(%arg0: i32) -> (i32, i32, i32) {
    %c0_i32 = arith.constant 0 : i32
    %c0_i32_0 = arith.constant 0 : i32
    %c0_i32_1 = arith.constant 0 : i32
    %c0_i32_2 = arith.constant 0 : i32
    return %c0_i32, %c0_i32_0, %c0_i32_1 : i32, i32, i32
  }
  func.func @transform_5(%arg0: i32) -> (i32, i32) {
    %c0_i32 = arith.constant 0 : i32
    %c0_i32_0 = arith.constant 0 : i32
    %c0_i32_1 = arith.constant 0 : i32
    return %c0_i32, %c0_i32_0 : i32, i32
  }
  func.func @transform_6(%arg0: i32) -> (i32, i32) {
    %c0_i32 = arith.constant 0 : i32
    %c0_i32_0 = arith.constant 0 : i32
    %c0_i32_1 = arith.constant 0 : i32
    return %c0_i32, %c0_i32_0 : i32, i32
  }
  func.func @transform_7(%arg0: i32) -> (i32, i32) {
    %c0_i32 = arith.constant 0 : i32
    %c0_i32_0 = arith.constant 0 : i32
    %c0_i32_1 = arith.constant 0 : i32
    return %c0_i32, %c0_i32_0 : i32, i32
  }
  func.func @transform_8(%arg0: i32) -> (i32, i32, i32) {
    %c0_i32 = arith.constant 0 : i32
    %c0_i32_0 = arith.constant 0 : i32
    %c0_i32_1 = arith.constant 0 : i32
    %c0_i32_2 = arith.constant 0 : i32
    return %c0_i32, %c0_i32_0, %c0_i32_1 : i32, i32, i32
  }
  func.func @transform_9(%arg0: i32) -> (i32, i32) {
    %c0_i32 = arith.constant 0 : i32
    %c0_i32_0 = arith.constant 0 : i32
    %c0_i32_1 = arith.constant 0 : i32
    return %c0_i32, %c0_i32_0 : i32, i32
  }
  func.func @transform_10(%arg0: i32) -> (i32, i32) {
    %c0_i32 = arith.constant 0 : i32
    %c0_i32_0 = arith.constant 0 : i32
    return %c0_i32, %arg0 : i32, i32
  }
  func.func @transform_11(%arg0: i32) -> (i32, i32) {
    %c0_i32 = arith.constant 0 : i32
    %c0_i32_0 = arith.constant 0 : i32
    return %c0_i32, %arg0 : i32, i32
  }
}

</mosaic_0001>

<bundles_post_ra>
// kernel: tpu_custom_call.1
= control target key start
LH: loop header
LB: loop body
LE: loop exit
PB: predicated region body
PF: predicated region fallthrough
CT: control target
= control target key end

     0   :  { %s8789_s0 = inlined_call_operand.hbm [shape: f32[9,64,256], index: 0, kind: input, shape index: {}]   ;;  %s8790_s1 = inlined_call_operand.vmem [shape: f32[64,1], index: 1, kind: input, shape index: {}]   ;;  %s8791_s2 = inlined_call_operand.vmem [shape: f32[64,64], index: 2, kind: input, shape index: {}]   ;;  %s8792_s3 = inlined_call_operand.vmem [shape: f32[64,1], index: 3, kind: input, shape index: {}]   ;;  %s8793_s4 = inlined_call_operand.hbm [shape: f32[9,64,256], index: 4, kind: input, shape index: {}]   ;;  %s8794_s5 = inlined_call_operand.vmem [shape: f32[64,1], index: 5, kind: input, shape index: {}]   ;;  %s8795_s6 = inlined_call_operand.hbm [shape: f32[64,64], index: 6, kind: input, shape index: {}]   ;;  %s8796_s7 = inlined_call_operand.vmem [shape: f32[64,1], index: 7, kind: input, shape index: {}]   ;;  %s8797_s8 = inlined_call_operand.hbm [shape: f32[9,64,256], index: 8, kind: input, shape index: {}]   ;;  %s8798_s9 = inlined_call_operand.vmem [shape: f32[64,1], index: 9, kind: input, shape index: {}]   ;;  %s8799_s10 = inlined_call_operand.vmem [shape: f32[64,512], index: 10, kind: input, shape index: {}]   ;;  %s8800_s11 = inlined_call_operand.hbm [shape: f32[64,512], index: 11, kind: output, shape index: {}]  }
   0x1   :  { %8991 = sst [smem:[#allocation100_spill]] %s8789_s0 }
   0x2   :  { %8992 = sst [smem:[#allocation101_spill]] %s8793_s4 }
   0x3   :  { %8993 = sst [smem:[#allocation102_spill]] %s8798_s9 }
   0x4   :  { %8994 = sst [smem:[#allocation103_spill]] %s8800_s11 }
   0x5   :  { %16 = vsyncpa [#allocation3], 0 }
   0x6   :  { %17 = vsyncpa [#allocation6], 0 }
   0x7   :  { %18 = vsyncpa [#allocation9], 0 }
   0x8   :  { %19 = vsyncpa [#allocation4], 0 }
   0x9   :  { %21 = vsyncpa [#allocation4 + $0x1], 0  ;;  %s4633_s17 = smov 0   ;;  %s4635_s18 = smov 0  }
   0xa   :  { %s4637_s19 = smov 0   ;;  %s4639_s20 = smov 0  }
   0xb LB: > { %8995 = sst [smem:[#allocation16_spill]] %s4540_s17  ;;  %s4654_s21 = sadd.s32 4294967295, %s4552_s20   ;;  %s4552_s20 = sphi %s4639_s20, %s9380_s20   ;;  %s4548_s19 = sphi %s4637_s19, %s9384_s19   ;;  %s4544_s18 = sphi %s4635_s18, %s9383_s18   ;;  %s4540_s17 = sphi %s4633_s17, %s9382_s17  }
   0xc   : > { %s4028_s22 = sadd.s32 4294967294, %s4552_s20   ;;  %s4658_s23 = sadd.s32 1, %s4552_s20  }
   0xd   : > { %8996 = sst [smem:[#allocation17_spill]] %s4658_s23  ;;  %s244_s24 = sadd.s32 1, %s4548_s19 }
   0xe   : > { %s241_s25 = ssub.s32 %s4552_s20, %s4658_s23  ;;  %p251_p0 = scmp.ne.s32.totalorder %s4548_s19, %s4544_s18 }
   0xf   : > { %p242_p1 = scmp.eq.s32.totalorder %s241_s25, 0  ;;  %p252_p2 = scmp.eq.s32.totalorder %s4552_s20, 0 }
  0x10   : > { %p281_p3 = scmp.eq.s32.totalorder %s4654_s21, 1  ;;  %p286_p4 = scmp.ne.s32.totalorder %s4544_s18, %s4540_s17 }
  0x11   : > { %s4670_s26 = scalar_select %p242_p1, %s4548_s19, %s244_s24  }
  0x12   : > { %p4672_p5 = por %p252_p2, %p251_p0  ;;  %p4676_p6 = por %p281_p3, %p251_p0 }
  0x13   : > { %8997 = sst [smem:[#allocation18_spill]] %s4670_s26  ;;  %p287_p7 = scmp.eq.s32.totalorder %s4028_s22, 1 }
  0x14   : > { %s8999_s28 = scalar_select %p4676_p6, 1, 0 }
  0x15   : > { %p4029_p8 = scmp.ge.s32.totalorder %s4552_s20, 1  ;;  %p294_p9 = scmp.lt.s32.totalorder %s4552_s20, 3 }
  0x16   : > { %9000 = sst [smem:[#allocation19_spill]] %s8999_s28  ;;  %p4682_p10 = por %p287_p7, %p286_p4 }
  0x17   : > { %p4119_p11 = scmp.eq.s32.totalorder %s4654_s21, 0  ;;  %p4687_p12 = pnand %p4029_p8, %p294_p9 }
  0x18   : > { %s9001_s29 = scalar_select %p4682_p10, 1, 0 }
  0x19   : > { %s9004_s4 = sld [smem:[#allocation101_spill]]  ;;  %p4102_p13 = pneg %p4687_p12 }
  0x1a   : > { %9002 = sst [smem:[#allocation20_spill]] %s9001_s29  ;;  %s4554_s25 = smov [#allocation5]  }
  0x1b   : > { %s9005_s0 = sld [smem:[#allocation100_spill]]  ;;  %p4701_p0 = pnand %p4119_p11, %p4102_p13 }
  0x1c   : > { %s330_s26 = sshll.u32 %s4554_s25, 4  ;;  %s4555_s12 = smov 256   ;;  %s331_s26 = int_to_ptr.vmem [resolvable:$true] %s330_s26 }
  0x1d   : > { %s4556_s13 = smov 16   ;;  %s4558_s29 = smov [#allocation7]  }
  0x1e   : > { %s347_s25 = sshll.u32 %s4558_s29, 4  ;;  %s362_s11 = sshll.u32 %s8797_s8, 4  ;;  %s348_s25 = int_to_ptr.vmem [resolvable:$true] %s347_s25  ;;  %s363_s11 = int_to_ptr.hbm [resolvable:$true] %s362_s11 }
  0x1f   : > { %s328_s14 = sshll.u32 %s9004_s4, 4  ;;  %s4557_s4 = smov [#allocation2]   ;;  %s329_s14 = int_to_ptr.hbm [resolvable:$true] %s328_s14 }
  0x20   : > { %4108 = dma.hbm_to_vmem [thread:$0]  (!%p4701_p0), %s329_s14, 18432, %s331_s26, [#allocation6], %s4555_s12, %s4555_s12, %s4556_s13  }
  0x21   : > { %s305_s22 = sshll.u32 %s9005_s0, 4  ;;  %s307_s23 = sshll.u32 %s4557_s4, 4  ;;  %s306_s22 = int_to_ptr.hbm [resolvable:$true] %s305_s22  ;;  %s308_s23 = int_to_ptr.vmem [resolvable:$true] %s307_s23 }
  0x22   : > { %s345_s0 = sshll.u32 %s8795_s6, 4  ;;  %s4559_s9 = smov 128   ;;  %s346_s0 = int_to_ptr.hbm [resolvable:$true] %s345_s0 }
  0x23   : > { %4105 = dma.hbm_to_vmem [thread:$0]  (!%p4701_p0), %s306_s22, 18432, %s308_s23, [#allocation3], %s4555_s12, %s4555_s12, %s4556_s13  }
  0x24   : > { %s4560_s26 = smov 8   ;;  %s4561_s4 = smov [#allocation8]  }
  0x25   : > { %4111 = dma.hbm_to_vmem [thread:$0]  (!%p4701_p0), %s346_s0, 1024, %s348_s25, [#allocation6], %s4559_s9, %s4559_s9, %s4560_s26  }
  0x26   : > { %s364_s14 = sshll.u32 %s4561_s4, 4  ;;  %p4034_p1 = scmp.ge.s32.totalorder %s4552_s20, 2  ;;  %s365_s14 = int_to_ptr.vmem [resolvable:$true] %s364_s14 }
  0x27   : > { %4114 = dma.hbm_to_vmem [thread:$0]  (!%p4701_p0), %s363_s11, 18432, %s365_s14, [#allocation9], %s4555_s12, %s4555_s12, %s4556_s13  }
  0x28   : > { %377 = sbr.rel (%p4034_p1) target bundleno = 65 (0x41), region = 56 }
  0x2d   : > { %380 = sbr.rel (!%p4672_p5) target bundleno = 65 (0x41), region = 60  ;;  %s382_s17 = sand.u32 (%p4672_p5), 1, %s4548_s19  }
  0x2e   : > { %s4082_s23 = sshll.u32 (%p4672_p5), %s4552_s20, 4  ;;  %s4035_s28 = sshll.u32 (%p4672_p5), %s382_s17, 7 }
  0x2f   : > { %s4729_s29 = scalar_lea.vmem (%p4672_p5), %s8799_s10, %s4082_s23  ;;  %s384_s11 = scalar_lea.vmem (%p4672_p5), [#allocation10], %s4035_s28 }
  0x30   : > { %v400_v0 = vld [vmem:[%s4729_s29] sm:$0xff] (%p4672_p5)  ;;  %v402_v1 = vld [vmem:[%s4729_s29 + $0x8] sm:$0xff] (%p4672_p5) }
  0x31   : > { %v404_v2 = vld [vmem:[%s4729_s29 + $0x20] sm:$0xff] (%p4672_p5)  ;;  %401 = vst [vmem:[%s384_s11] sm:$0xff] (%p4672_p5), %v400_v0  ;;  %v406_v3 = vld [vmem:[%s4729_s29 + $0x28] sm:$0xff] (%p4672_p5) }
  0x32   : > { %403 = vst [vmem:[%s384_s11 + $0x8] sm:$0xff] %v402_v1  ;;  %v408_v4 = vld [vmem:[%s4729_s29 + $0x40] sm:$0xff]  ;;  %v410_v5 = vld [vmem:[%s4729_s29 + $0x48] sm:$0xff] }
  0x33   : > { %405 = vst [vmem:[%s384_s11 + $0x10] sm:$0xff] %v404_v2  ;;  %v412_v6 = vld [vmem:[%s4729_s29 + $0x60] sm:$0xff]  ;;  %v414_v7 = vld [vmem:[%s4729_s29 + $0x68] sm:$0xff] }
  0x34   : > { %407 = vst [vmem:[%s384_s11 + $0x18] sm:$0xff] %v406_v3  ;;  %v416_v8 = vld [vmem:[%s4729_s29 + $0x80] sm:$0xff]  ;;  %v418_v9 = vld [vmem:[%s4729_s29 + $0x88] sm:$0xff] }
  0x35   : > { %409 = vst [vmem:[%s384_s11 + $0x20] sm:$0xff] %v408_v4  ;;  %v420_v10 = vld [vmem:[%s4729_s29 + $0xa0] sm:$0xff]  ;;  %v422_v11 = vld [vmem:[%s4729_s29 + $0xa8] sm:$0xff] }
  0x36   : > { %411 = vst [vmem:[%s384_s11 + $0x28] sm:$0xff] %v410_v5  ;;  %v424_v12 = vld [vmem:[%s4729_s29 + $0xc0] sm:$0xff]  ;;  %v426_v13 = vld [vmem:[%s4729_s29 + $0xc8] sm:$0xff] }
  0x37   : > { %413 = vst [vmem:[%s384_s11 + $0x30] sm:$0xff] %v412_v6  ;;  %v428_v14 = vld [vmem:[%s4729_s29 + $0xe0] sm:$0xff]  ;;  %v430_v15 = vld [vmem:[%s4729_s29 + $0xe8] sm:$0xff] }
  0x38   : > { %415 = vst [vmem:[%s384_s11 + $0x38] sm:$0xff] %v414_v7 }
  0x39   : > { %417 = vst [vmem:[%s384_s11 + $0x40] sm:$0xff] %v416_v8 }
  0x3a   : > { %419 = vst [vmem:[%s384_s11 + $0x48] sm:$0xff] %v418_v9 }
  0x3b   : > { %421 = vst [vmem:[%s384_s11 + $0x50] sm:$0xff] %v420_v10 }
  0x3c   : > { %423 = vst [vmem:[%s384_s11 + $0x58] sm:$0xff] %v422_v11 }
  0x3d   : > { %425 = vst [vmem:[%s384_s11 + $0x60] sm:$0xff] %v424_v12 }
  0x3e   : > { %427 = vst [vmem:[%s384_s11 + $0x68] sm:$0xff] %v426_v13 }
  0x3f   : > { %429 = vst [vmem:[%s384_s11 + $0x70] sm:$0xff] %v428_v14 }
  0x40   : > { %431 = vst [vmem:[%s384_s11 + $0x78] sm:$0xff] %v430_v15 }
  0x41 PF: > { %440 = sbr.rel (%p4687_p12) target bundleno = 1924 (0x784), region = 83 }
  0x46   : > { %4523 = dma.done.wait (%p4119_p11), [#allocation3], 18432  }
  0x47   : > { %4525 = vsyncadd (%p4119_p11), [#allocation3], 4294948864 }
  0x48   : > { %4527 = dma.done.wait (%p4119_p11), [#allocation6], 19456  }
  0x49   : > { %4529 = vsyncadd (%p4119_p11), [#allocation6], 4294947840 }
  0x4a   : > { %4531 = dma.done.wait (%p4119_p11), [#allocation9], 18432  }
  0x4b   : > { %4533 = vsyncadd (%p4119_p11), [#allocation9], 4294948864  ;;  %v4562_v16 = vmov 0   ;;  %v557_v17 = vld [vmem:[%s8790_s1 + $0x20] sm:$0xff]  ;;  %v555_v18 = vld [vmem:[%s8790_s1 + $0x10] sm:$0xff]  ;;  %s463_s15 = sand.u32 1, %s4544_s18  }
  0x4c   : > { %4181 = vset.pattern.permute.xlu2 %v4562_v16  ;;  %4180 = vset.pattern.permute.xlu1 %v4562_v16  ;;  %v553_v19 = vld [vmem:[%s8790_s1] sm:$0xff]  ;;  %v558_v20 = vld [vmem:[%s8790_s1 + $0x28] sm:$0xff]  ;;  %v556_v21 = vld [vmem:[%s8790_s1 + $0x18] sm:$0xff]  ;;  %s4782_s23 = sshll.u32 %s463_s15, 7  ;;  %s4563_s27 = smov 17   ;;  %vm1538_vm8 = vcmask 523264  }
  0x4d   : > { %4179 = vset.pattern.permute.xlu0 %v4562_v16  ;;  %583 = vperm.xlu2 %4181, %v557_v17   ;;  %v554_v22 = vld [vmem:[%s8790_s1 + $0x8] sm:$0xff]  ;;  %v560_v23 = vld [vmem:[%s8790_s1 + $0x38] sm:$0xff]  ;;  %s4788_s9 = scalar_lea.vmem [#allocation10], %s4782_s23  ;;  %v559_v25 = vld [vmem:[%s8790_s1 + $0x30] sm:$0xff]  ;;  %s4564_s30 = smov 16  }
  0x4e   : > { %573 = vperm.xlu1 %4180, %v555_v18   ;;  %563 = vperm.xlu0 %4179, %v553_v19   ;;  %v4791_v24 = vld [vmem:[%s4788_s9] sm:$0xff]  ;;  %v4802_v27 = vld [vmem:[%s4788_s9 + $0x30] sm:$0xff]  ;;  %v4829_v32 = vld [vmem:[%s4788_s9 + $0x8] sm:$0xff]  ;;  %s4565_s22 = smov 15   ;;  %s4566_s24 = smov 1  }
  0x4f   : > { %v4799_v26 = vld [vmem:[%s4788_s9 + $0x20] sm:$0xff]  ;;  %v4805_v28 = vld [vmem:[%s4788_s9 + $0x10] sm:$0xff]  ;;  %v4832_v33 = vld [vmem:[%s4788_s9 + $0x18] sm:$0xff]  ;;  %s4567_s12 = smov 127   ;;  %s4568_s13 = smov 113  }
  0x50   : > { %v4814_v29 = vld [vmem:[%s4788_s9 + $0x50] sm:$0xff]  ;;  %v4817_v30 = vld [vmem:[%s4788_s9 + $0x60] sm:$0xff]  ;;  %v4844_v35 = vld [vmem:[%s4788_s9 + $0x38] sm:$0xff]  ;;  %s4569_s16 = smov 112   ;;  %s4570_s25 = smov 111  }
  0x51   : > { %v4820_v31 = vld [vmem:[%s4788_s9 + $0x40] sm:$0xff]  ;;  %v4835_v34 = vld [vmem:[%s4788_s9 + $0x70] sm:$0xff]  ;;  %v4847_v36 = vld [vmem:[%s4788_s9 + $0x48] sm:$0xff]  ;;  %s9262_s29 = sld [smem:[#allocation102_spill]]  ;;  %s3904_s17 = scalar_lea.sflag [#allocation4], %s463_s15 }
  0x52   : > { %v4850_v37 = vld [vmem:[%s4788_s9 + $0x28] sm:$0xff]  ;;  %v4862_v39 = vld [vmem:[%s4788_s9 + $0x78] sm:$0xff] }
  0x53   : > { %v4859_v38 = vld [vmem:[%s4788_s9 + $0x68] sm:$0xff]  ;;  %v4865_v40 = vld [vmem:[%s4788_s9 + $0x58] sm:$0xff] }
  0x55   : > { %588 = vperm.xlu2 %4181, %v558_v20  }
  0x56   : > { %578 = vperm.xlu1 %4180, %v556_v21   ;;  %568 = vperm.xlu0 %4179, %v554_v22  }
  0x5d   : > { %617 = vrot.lane.b32.xlu2 %v4791_v24, %s4563_s27 }
  0x5e   : > { %598 = vperm.xlu1 %4180, %v560_v23   ;;  %593 = vperm.xlu0 %4179, %v559_v25  }
  0x65   : > { %623 = vrot.lane.b32.xlu2 %v4802_v27, %s4563_s27 }
  0x66   : > { %621 = vrot.lane.b32.xlu1 %v4799_v26, %s4563_s27  ;;  %619 = vrot.lane.b32.xlu0 %v4805_v28, %s4563_s27 }
  0x6d   : > { %629 = vrot.lane.b32.xlu2 %v4817_v30, %s4563_s27 }
  0x6e   : > { %627 = vrot.lane.b32.xlu1 %v4814_v29, %s4563_s27  ;;  %625 = vrot.lane.b32.xlu0 %v4820_v31, %s4563_s27 }
  0x75   : > { %635 = vrot.lane.b32.xlu2 %v4832_v33, %s4563_s27 }
  0x76   : > { %633 = vrot.lane.b32.xlu1 %v4829_v32, %s4563_s27  ;;  %631 = vrot.lane.b32.xlu0 %v4835_v34, %s4563_s27 }
  0x7d   : > { %641 = vrot.lane.b32.xlu2 %v4847_v36, %s4563_s27 }
  0x7e   : > { %639 = vrot.lane.b32.xlu1 %v4844_v35, %s4563_s27  ;;  %637 = vrot.lane.b32.xlu0 %v4850_v37, %s4563_s27 }
  0x85   : > { %647 = vrot.lane.b32.xlu2 %v4862_v39, %s4563_s27 }
  0x86   : > { %645 = vrot.lane.b32.xlu1 %v4859_v38, %s4563_s27  ;;  %643 = vrot.lane.b32.xlu0 %v4865_v40, %s4563_s27 }
  0x8d   : > { %720 = vrot.lane.b32.xlu2 %v4799_v26, %s4564_s30 }
  0x8e   : > { %718 = vrot.lane.b32.xlu1 %v4805_v28, %s4564_s30  ;;  %716 = vrot.lane.b32.xlu0 %v4791_v24, %s4564_s30 }
  0x95   : > { %726 = vrot.lane.b32.xlu2 %v4814_v29, %s4564_s30 }
  0x96   : > { %724 = vrot.lane.b32.xlu1 %v4820_v31, %s4564_s30  ;;  %722 = vrot.lane.b32.xlu0 %v4802_v27, %s4564_s30 }
  0x9d   : > { %732 = vrot.lane.b32.xlu2 %v4829_v32, %s4564_s30 }
  0x9e   : > { %730 = vrot.lane.b32.xlu1 %v4835_v34, %s4564_s30  ;;  %728 = vrot.lane.b32.xlu0 %v4817_v30, %s4564_s30 }
  0xa5   : > { %738 = vrot.lane.b32.xlu2 %v4844_v35, %s4564_s30 }
  0xa6   : > { %736 = vrot.lane.b32.xlu1 %v4850_v37, %s4564_s30  ;;  %734 = vrot.lane.b32.xlu0 %v4832_v33, %s4564_s30 }
  0xa7   : > { %v4897_v41 = vpop.permute.xlu2 %583 }
  0xad   : > { %744 = vrot.lane.b32.xlu2 %v4859_v38, %s4564_s30 }
  0xae   : > { %742 = vrot.lane.b32.xlu1 %v4865_v40, %s4564_s30  ;;  %740 = vrot.lane.b32.xlu0 %v4847_v36, %s4564_s30 }
  0xaf   : > { %v4905_v42 = vpop.permute.xlu2 %588 }
  0xb5   : > { %816 = vrot.lane.b32.xlu2 %v4805_v28, %s4565_s22 }
  0xb6   : > { %814 = vrot.lane.b32.xlu1 %v4791_v24, %s4565_s22  ;;  %746 = vrot.lane.b32.xlu0 %v4862_v39, %s4564_s30 }
  0xb7   : > { %v4913_v43 = vpop.permute.xlu2 %617 }
  0xbd   : > { %822 = vrot.lane.b32.xlu2 %v4820_v31, %s4565_s22 }
  0xbe   : > { %820 = vrot.lane.b32.xlu1 %v4802_v27, %s4565_s22  ;;  %818 = vrot.lane.b32.xlu0 %v4799_v26, %s4565_s22 }
  0xbf   : > { %v4923_v45 = vpop.permute.xlu2 %623 }
  0xc0   : > { %v4921_v44 = vpop.permute.xlu1 %573  ;;  %v4925_v46 = vpop.permute.xlu0 %563 }
  0xc5   : > { %828 = vrot.lane.b32.xlu2 %v4835_v34, %s4565_s22 }
  0xc6   : > { %826 = vrot.lane.b32.xlu1 %v4817_v30, %s4565_s22  ;;  %824 = vrot.lane.b32.xlu0 %v4814_v29, %s4565_s22 }
  0xc7   : > { %v4935_v48 = vpop.permute.xlu2 %629 }
  0xc8   : > { %v4933_v47 = vpop.permute.xlu1 %578  ;;  %v4937_v49 = vpop.permute.xlu0 %568 }
  0xcd   : > { %834 = vrot.lane.b32.xlu2 %v4850_v37, %s4565_s22 }
  0xce   : > { %832 = vrot.lane.b32.xlu1 %v4832_v33, %s4565_s22  ;;  %830 = vrot.lane.b32.xlu0 %v4829_v32, %s4565_s22 }
  0xcf   : > { %v4947_v51 = vpop.permute.xlu2 %635 }
  0xd0   : > { %v4945_v50 = vpop.permute.xlu1 %598  ;;  %v4949_v52 = vpop.permute.xlu0 %593 }
  0xd5   : > { %840 = vrot.lane.b32.xlu2 %v4865_v40, %s4565_s22 }
  0xd6   : > { %838 = vrot.lane.b32.xlu1 %v4847_v36, %s4565_s22  ;;  %836 = vrot.lane.b32.xlu0 %v4844_v35, %s4565_s22 }
  0xd7   : > { %v4959_v54 = vpop.permute.xlu2 %641 }
  0xd8   : > { %v4957_v53 = vpop.permute.xlu1 %621  ;;  %v4961_v55 = vpop.permute.xlu0 %619 }
  0xdd   : > { %912 = vrot.lane.b32.xlu2 %v4791_v24, %s4566_s24 }
  0xde   : > { %844 = vrot.lane.b32.xlu1 %v4862_v39, %s4565_s22  ;;  %842 = vrot.lane.b32.xlu0 %v4859_v38, %s4565_s22 }
  0xdf   : > { %v4971_v57 = vpop.permute.xlu2 %647 }
  0xe0   : > { %v4969_v56 = vpop.permute.xlu1 %627  ;;  %v4973_v58 = vpop.permute.xlu0 %625 }
  0xe5   : > { %918 = vrot.lane.b32.xlu2 %v4802_v27, %s4566_s24 }
  0xe6   : > { %916 = vrot.lane.b32.xlu1 %v4799_v26, %s4566_s24  ;;  %914 = vrot.lane.b32.xlu0 %v4805_v28, %s4566_s24 }
  0xe7   : > { %v4983_v60 = vpop.permute.xlu2 %720 }
  0xe8   : > { %v4981_v59 = vpop.permute.xlu1 %633  ;;  %9007 = vst [vmem:[#allocation21_spill] sm:$0xff] %v4983_v60  ;;  %v4985_v61 = vpop.permute.xlu0 %631  ;;  %v523_v60 = vld [vmem:[#allocation2 + $0x210] sm:$0xff] }
  0xed   : > { %924 = vrot.lane.b32.xlu2 %v4817_v30, %s4566_s24 }
  0xee   : > { %922 = vrot.lane.b32.xlu1 %v4814_v29, %s4566_s24  ;;  %920 = vrot.lane.b32.xlu0 %v4820_v31, %s4566_s24 }
  0xef   : > { %v4995_v63 = vpop.permute.xlu2 %726 }
  0xf0   : > { %v4993_v62 = vpop.permute.xlu1 %639  ;;  %9008 = vst [vmem:[#allocation22_spill] sm:$0xff] %v4995_v63  ;;  %v4997_v0 = vpop.permute.xlu0 %637 }
  0xf5   : > { %930 = vrot.lane.b32.xlu2 %v4832_v33, %s4566_s24 }
  0xf6   : > { %928 = vrot.lane.b32.xlu1 %v4829_v32, %s4566_s24  ;;  %926 = vrot.lane.b32.xlu0 %v4835_v34, %s4566_s24 }
  0xf7   : > { %v5007_v2 = vpop.permute.xlu2 %732 }
  0xf8   : > { %v5005_v1 = vpop.permute.xlu1 %645  ;;  %v5009_v3 = vpop.permute.xlu0 %643 }
  0xfd   : > { %936 = vrot.lane.b32.xlu2 %v4847_v36, %s4566_s24 }
  0xfe   : > { %934 = vrot.lane.b32.xlu1 %v4844_v35, %s4566_s24  ;;  %932 = vrot.lane.b32.xlu0 %v4850_v37, %s4566_s24 }
  0xff   : > { %v5019_v5 = vpop.permute.xlu2 %738 }
 0x100   : > { %v5017_v4 = vpop.permute.xlu1 %718  ;;  %9010 = vst [vmem:[#allocation24_spill] sm:$0xff] %v5019_v5  ;;  %v5021_v6 = vpop.permute.xlu0 %716  ;;  %v535_v5 = vld [vmem:[#allocation2 + $0x270] sm:$0xff] }
 0x101   : > { %9009 = vst [vmem:[#allocation23_spill] sm:$0xff] %v5017_v4  ;;  %v525_v4 = vld [vmem:[#allocation2 + $0x220] sm:$0xff] }
 0x105   : > { %942 = vrot.lane.b32.xlu2 %v4862_v39, %s4566_s24 }
 0x106   : > { %940 = vrot.lane.b32.xlu1 %v4859_v38, %s4566_s24  ;;  %938 = vrot.lane.b32.xlu0 %v4865_v40, %s4566_s24 }
 0x107   : > { %v5031_v8 = vpop.permute.xlu2 %744 }
 0x108   : > { %v5029_v7 = vpop.permute.xlu1 %724  ;;  %9012 = vst [vmem:[#allocation26_spill] sm:$0xff] %v5031_v8  ;;  %v5033_v9 = vpop.permute.xlu0 %722  ;;  %v524_v8 = vld [vmem:[#allocation2 + $0x218] sm:$0xff] }
 0x109   : > { %9011 = vst [vmem:[#allocation25_spill] sm:$0xff] %v5029_v7 }
 0x10a   : > { %9013 = vst [vmem:[#allocation27_spill] sm:$0xff] %v5033_v9  ;;  %v534_v9 = vld [vmem:[#allocation2 + $0x268] sm:$0xff] }
 0x10d   : > { %1014 = vrot.lane.b32.xlu2 %v4799_v26, %s4567_s12 }
 0x10e   : > { %1012 = vrot.lane.b32.xlu1 %v4805_v28, %s4567_s12  ;;  %1010 = vrot.lane.b32.xlu0 %v4791_v24, %s4567_s12 }
 0x10f   : > { %v5043_v11 = vpop.permute.xlu2 %816 }
 0x110   : > { %v5041_v10 = vpop.permute.xlu1 %730  ;;  %9015 = vst [vmem:[#allocation29_spill] sm:$0xff] %v5043_v11  ;;  %v5045_v12 = vpop.permute.xlu0 %728 }
 0x111   : > { %9014 = vst [vmem:[#allocation28_spill] sm:$0xff] %v5041_v10  ;;  %v530_v10 = vld [vmem:[#allocation2 + $0x248] sm:$0xff] }
 0x112   : > { %9016 = vst [vmem:[#allocation30_spill] sm:$0xff] %v5045_v12 }
 0x115   : > { %1020 = vrot.lane.b32.xlu2 %v4814_v29, %s4567_s12 }
 0x116   : > { %1018 = vrot.lane.b32.xlu1 %v4820_v31, %s4567_s12  ;;  %1016 = vrot.lane.b32.xlu0 %v4802_v27, %s4567_s12 }
 0x117   : > { %v5055_v14 = vpop.permute.xlu2 %822 }
 0x118   : > { %v5053_v13 = vpop.permute.xlu1 %736  ;;  %9018 = vst [vmem:[#allocation32_spill] sm:$0xff] %v5055_v14  ;;  %v5057_v15 = vpop.permute.xlu0 %734 }
 0x119   : > { %9017 = vst [vmem:[#allocation31_spill] sm:$0xff] %v5053_v13 }
 0x11a   : > { %9019 = vst [vmem:[#allocation33_spill] sm:$0xff] %v5057_v15  ;;  %v526_v15 = vld [vmem:[#allocation2 + $0x228] sm:$0xff] }
 0x11d   : > { %1026 = vrot.lane.b32.xlu2 %v4829_v32, %s4567_s12 }
 0x11e   : > { %1024 = vrot.lane.b32.xlu1 %v4835_v34, %s4567_s12  ;;  %1022 = vrot.lane.b32.xlu0 %v4817_v30, %s4567_s12 }
 0x11f   : > { %v5067_v17 = vpop.permute.xlu2 %828 }
 0x120   : > { %v5065_v16 = vpop.permute.xlu1 %742  ;;  %9021 = vst [vmem:[#allocation35_spill] sm:$0xff] %v5067_v17  ;;  %v5069_v18 = vpop.permute.xlu0 %740 }
 0x121   : > { %9020 = vst [vmem:[#allocation34_spill] sm:$0xff] %v5065_v16  ;;  %v546_v16 = vmul.f32 %v530_v10, %v4847_v36  ;;  %v541_v10 = vmul.f32 %v525_v4, %v4799_v26  ;;  %v671_v4 = vld [vmem:[#allocation2 + $0x18] sm:$0xff] }
 0x122   : > { %9022 = vst [vmem:[#allocation36_spill] sm:$0xff] %v5069_v18 }
 0x125   : > { %1032 = vrot.lane.b32.xlu2 %v4844_v35, %s4567_s12 }
 0x126   : > { %1030 = vrot.lane.b32.xlu1 %v4850_v37, %s4567_s12  ;;  %1028 = vrot.lane.b32.xlu0 %v4832_v33, %s4567_s12 }
 0x127   : > { %v5079_v20 = vpop.permute.xlu2 %834 }
 0x128   : > { %v5077_v19 = vpop.permute.xlu1 %814  ;;  %9024 = vst [vmem:[#allocation38_spill] sm:$0xff] %v5079_v20  ;;  %v5081_v21 = vpop.permute.xlu0 %746  ;;  %v529_v20 = vld [vmem:[#allocation2 + $0x240] sm:$0xff] }
 0x129   : > { %9023 = vst [vmem:[#allocation37_spill] sm:$0xff] %v5077_v19  ;;  %v545_v63 = vmul.f32 %v529_v20, %v4820_v31  ;;  %v542_v20 = vmul.f32 %v526_v15, %v4850_v37 }
 0x12a   : > { %9025 = vst [vmem:[#allocation39_spill] sm:$0xff] %v5081_v21  ;;  %v522_v21 = vld [vmem:[#allocation2 + $0x208] sm:$0xff] }
 0x12d   : > { %1038 = vrot.lane.b32.xlu2 %v4859_v38, %s4567_s12 }
 0x12e   : > { %1036 = vrot.lane.b32.xlu1 %v4865_v40, %s4567_s12  ;;  %1034 = vrot.lane.b32.xlu0 %v4847_v36, %s4567_s12 }
 0x12f   : > { %v5091_v23 = vpop.permute.xlu2 %840 }
 0x130   : > { %v5089_v22 = vpop.permute.xlu1 %820  ;;  %9027 = vst [vmem:[#allocation41_spill] sm:$0xff] %v5091_v23  ;;  %v5093_v25 = vpop.permute.xlu0 %818 }
 0x131   : > { %9026 = vst [vmem:[#allocation40_spill] sm:$0xff] %v5089_v22 }
 0x132   : > { %9028 = vst [vmem:[#allocation42_spill] sm:$0xff] %v5093_v25  ;;  %v1494_v25 = vld [vmem:[%s8792_s3 + $0x20] sm:$0xff] }
 0x135   : > { %1110 = vrot.lane.b32.xlu2 %v4805_v28, %s4568_s13 }
 0x136   : > { %1108 = vrot.lane.b32.xlu1 %v4791_v24, %s4568_s13  ;;  %1040 = vrot.lane.b32.xlu0 %v4862_v39, %s4567_s12 }
 0x137   : > { %v5103_v14 = vpop.permute.xlu2 %912 }
 0x138   : > { %v5101_v17 = vpop.permute.xlu1 %826  ;;  %9030 = vst [vmem:[#allocation44_spill] sm:$0xff] %v5103_v14  ;;  %v5105_v19 = vpop.permute.xlu0 %824 }
 0x139   : > { %9029 = vst [vmem:[#allocation43_spill] sm:$0xff] %v5101_v17 }
 0x13a   : > { %9031 = vst [vmem:[#allocation45_spill] sm:$0xff] %v5105_v19 }
 0x13d   : > { %1116 = vrot.lane.b32.xlu2 %v4820_v31, %s4568_s13 }
 0x13e   : > { %1114 = vrot.lane.b32.xlu1 %v4802_v27, %s4568_s13  ;;  %1112 = vrot.lane.b32.xlu0 %v4799_v26, %s4568_s13 }
 0x13f   : > { %v5115_v11 = vpop.permute.xlu2 %918 }
 0x140   : > { %v5113_v22 = vpop.permute.xlu1 %832  ;;  %9033 = vst [vmem:[#allocation47_spill] sm:$0xff] %v5115_v11  ;;  %v5117_v23 = vpop.permute.xlu0 %830 }
 0x141   : > { %9032 = vst [vmem:[#allocation46_spill] sm:$0xff] %v5113_v22 }
 0x142   : > { %9034 = vst [vmem:[#allocation48_spill] sm:$0xff] %v5117_v23 }
 0x145   : > { %1122 = vrot.lane.b32.xlu2 %v4835_v34, %s4568_s13 }
 0x146   : > { %1120 = vrot.lane.b32.xlu1 %v4817_v30, %s4568_s13  ;;  %1118 = vrot.lane.b32.xlu0 %v4814_v29, %s4568_s13 }
 0x147   : > { %v5127_v17 = vpop.permute.xlu2 %924 }
 0x148   : > { %v5125_v14 = vpop.permute.xlu1 %838  ;;  %9036 = vst [vmem:[#allocation50_spill] sm:$0xff] %v5127_v17  ;;  %v5129_v19 = vpop.permute.xlu0 %836 }
 0x149   : > { %9035 = vst [vmem:[#allocation49_spill] sm:$0xff] %v5125_v14 }
 0x14a   : > { %9037 = vst [vmem:[#allocation51_spill] sm:$0xff] %v5129_v19 }
 0x14d   : > { %1128 = vrot.lane.b32.xlu2 %v4850_v37, %s4568_s13 }
 0x14e   : > { %1126 = vrot.lane.b32.xlu1 %v4832_v33, %s4568_s13  ;;  %1124 = vrot.lane.b32.xlu0 %v4829_v32, %s4568_s13 }
 0x14f   : > { %v5139_v23 = vpop.permute.xlu2 %930 }
 0x150   : > { %v5137_v11 = vpop.permute.xlu1 %844  ;;  %9039 = vst [vmem:[#allocation53_spill] sm:$0xff] %v5139_v23  ;;  %v5141_v22 = vpop.permute.xlu0 %842 }
 0x151   : > { %9038 = vst [vmem:[#allocation52_spill] sm:$0xff] %v5137_v11 }
 0x152   : > { %9040 = vst [vmem:[#allocation54_spill] sm:$0xff] %v5141_v22 }
 0x155   : > { %1134 = vrot.lane.b32.xlu2 %v4865_v40, %s4568_s13 }
 0x156   : > { %1132 = vrot.lane.b32.xlu1 %v4847_v36, %s4568_s13  ;;  %1130 = vrot.lane.b32.xlu0 %v4844_v35, %s4568_s13 }
 0x157   : > { %v5151_v19 = vpop.permute.xlu2 %936 }
 0x158   : > { %v5149_v17 = vpop.permute.xlu1 %916  ;;  %9042 = vst [vmem:[#allocation56_spill] sm:$0xff] %v5151_v19  ;;  %v5153_v14 = vpop.permute.xlu0 %914 }
 0x159   : > { %9041 = vst [vmem:[#allocation55_spill] sm:$0xff] %v5149_v17 }
 0x15a   : > { %9043 = vst [vmem:[#allocation57_spill] sm:$0xff] %v5153_v14 }
 0x15d   : > { %1206 = vrot.lane.b32.xlu2 %v4791_v24, %s4569_s16 }
 0x15e   : > { %1138 = vrot.lane.b32.xlu1 %v4862_v39, %s4568_s13  ;;  %1136 = vrot.lane.b32.xlu0 %v4859_v38, %s4568_s13 }
 0x15f   : > { %v5163_v22 = vpop.permute.xlu2 %942 }
 0x160   : > { %v5161_v23 = vpop.permute.xlu1 %922  ;;  %9045 = vst [vmem:[#allocation59_spill] sm:$0xff] %v5163_v22  ;;  %v5165_v11 = vpop.permute.xlu0 %920 }
 0x161   : > { %9044 = vst [vmem:[#allocation58_spill] sm:$0xff] %v5161_v23 }
 0x162   : > { %9046 = vst [vmem:[#allocation60_spill] sm:$0xff] %v5165_v11 }
 0x165   : > { %1212 = vrot.lane.b32.xlu2 %v4802_v27, %s4569_s16 }
 0x166   : > { %1210 = vrot.lane.b32.xlu1 %v4799_v26, %s4569_s16  ;;  %1208 = vrot.lane.b32.xlu0 %v4805_v28, %s4569_s16 }
 0x167   : > { %v5175_v19 = vpop.permute.xlu2 %1014 }
 0x168   : > { %v5173_v17 = vpop.permute.xlu1 %928  ;;  %9048 = vst [vmem:[#allocation62_spill] sm:$0xff] %v5175_v19  ;;  %v5177_v14 = vpop.permute.xlu0 %926 }
 0x169   : > { %9047 = vst [vmem:[#allocation61_spill] sm:$0xff] %v5173_v17 }
 0x16a   : > { %9049 = vst [vmem:[#allocation63_spill] sm:$0xff] %v5177_v14 }
 0x16d   : > { %1218 = vrot.lane.b32.xlu2 %v4817_v30, %s4569_s16 }
 0x16e   : > { %1216 = vrot.lane.b32.xlu1 %v4814_v29, %s4569_s16  ;;  %1214 = vrot.lane.b32.xlu0 %v4820_v31, %s4569_s16 }
 0x16f   : > { %v5187_v22 = vpop.permute.xlu2 %1020 }
 0x170   : > { %v5185_v23 = vpop.permute.xlu1 %934  ;;  %9051 = vst [vmem:[#allocation65_spill] sm:$0xff] %v5187_v22  ;;  %v5189_v11 = vpop.permute.xlu0 %932 }
 0x171   : > { %9050 = vst [vmem:[#allocation64_spill] sm:$0xff] %v5185_v23 }
 0x172   : > { %9052 = vst [vmem:[#allocation66_spill] sm:$0xff] %v5189_v11 }
 0x175   : > { %1224 = vrot.lane.b32.xlu2 %v4832_v33, %s4569_s16 }
 0x176   : > { %1222 = vrot.lane.b32.xlu1 %v4829_v32, %s4569_s16  ;;  %1220 = vrot.lane.b32.xlu0 %v4835_v34, %s4569_s16 }
 0x177   : > { %v5199_v14 = vpop.permute.xlu2 %1026 }
 0x178   : > { %v5197_v19 = vpop.permute.xlu1 %940  ;;  %9054 = vst [vmem:[#allocation68_spill] sm:$0xff] %v5199_v14  ;;  %v5201_v17 = vpop.permute.xlu0 %938 }
 0x179   : > { %9053 = vst [vmem:[#allocation67_spill] sm:$0xff] %v5197_v19 }
 0x17a   : > { %9055 = vst [vmem:[#allocation69_spill] sm:$0xff] %v5201_v17 }
 0x17d   : > { %1230 = vrot.lane.b32.xlu2 %v4847_v36, %s4569_s16 }
 0x17e   : > { %1228 = vrot.lane.b32.xlu1 %v4844_v35, %s4569_s16  ;;  %1226 = vrot.lane.b32.xlu0 %v4850_v37, %s4569_s16 }
 0x17f   : > { %v5211_v11 = vpop.permute.xlu2 %1032 }
 0x180   : > { %v5209_v22 = vpop.permute.xlu1 %1012  ;;  %9057 = vst [vmem:[#allocation71_spill] sm:$0xff] %v5211_v11  ;;  %v5213_v23 = vpop.permute.xlu0 %1010 }
 0x181   : > { %9056 = vst [vmem:[#allocation70_spill] sm:$0xff] %v5209_v22 }
 0x182   : > { %9058 = vst [vmem:[#allocation72_spill] sm:$0xff] %v5213_v23 }
 0x185   : > { %1236 = vrot.lane.b32.xlu2 %v4862_v39, %s4569_s16 }
 0x186   : > { %1234 = vrot.lane.b32.xlu1 %v4859_v38, %s4569_s16  ;;  %1232 = vrot.lane.b32.xlu0 %v4865_v40, %s4569_s16 }
 0x187   : > { %v5223_v17 = vpop.permute.xlu2 %1038 }
 0x188   : > { %v5221_v14 = vpop.permute.xlu1 %1018  ;;  %9060 = vst [vmem:[#allocation74_spill] sm:$0xff] %v5223_v17  ;;  %v5225_v19 = vpop.permute.xlu0 %1016 }
 0x189   : > { %9059 = vst [vmem:[#allocation73_spill] sm:$0xff] %v5221_v14 }
 0x18a   : > { %9061 = vst [vmem:[#allocation75_spill] sm:$0xff] %v5225_v19 }
 0x18d   : > { %1308 = vrot.lane.b32.xlu2 %v4799_v26, %s4570_s25 }
 0x18e   : > { %1306 = vrot.lane.b32.xlu1 %v4805_v28, %s4570_s25  ;;  %1304 = vrot.lane.b32.xlu0 %v4791_v24, %s4570_s25 }
 0x18f   : > { %v5235_v11 = vpop.permute.xlu2 %1110 }
 0x190   : > { %v5233_v22 = vpop.permute.xlu1 %1024  ;;  %9063 = vst [vmem:[#allocation77_spill] sm:$0xff] %v5235_v11  ;;  %v5237_v23 = vpop.permute.xlu0 %1022 }
 0x191   : > { %9062 = vst [vmem:[#allocation76_spill] sm:$0xff] %v5233_v22 }
 0x192   : > { %9064 = vst [vmem:[#allocation78_spill] sm:$0xff] %v5237_v23 }
 0x195   : > { %1314 = vrot.lane.b32.xlu2 %v4814_v29, %s4570_s25 }
 0x196   : > { %1312 = vrot.lane.b32.xlu1 %v4820_v31, %s4570_s25  ;;  %1310 = vrot.lane.b32.xlu0 %v4802_v27, %s4570_s25  ;;  %v1496_v31 = vld [vmem:[%s8792_s3 + $0x30] sm:$0xff] }
 0x197   : > { %v5247_v17 = vpop.permute.xlu2 %1116 }
 0x198   : > { %v5245_v14 = vpop.permute.xlu1 %1030  ;;  %9066 = vst [vmem:[#allocation80_spill] sm:$0xff] %v5247_v17  ;;  %v5249_v19 = vpop.permute.xlu0 %1028 }
 0x199   : > { %9065 = vst [vmem:[#allocation79_spill] sm:$0xff] %v5245_v14 }
 0x19a   : > { %9067 = vst [vmem:[#allocation81_spill] sm:$0xff] %v5249_v19 }
 0x19d   : > { %1320 = vrot.lane.b32.xlu2 %v4829_v32, %s4570_s25 }
 0x19e   : > { %1318 = vrot.lane.b32.xlu1 %v4835_v34, %s4570_s25  ;;  %1316 = vrot.lane.b32.xlu0 %v4817_v30, %s4570_s25 }
 0x19f   : > { %v5259_v22 = vpop.permute.xlu2 %1122 }
 0x1a0   : > { %v5257_v11 = vpop.permute.xlu1 %1036  ;;  %9069 = vst [vmem:[#allocation83_spill] sm:$0xff] %v5259_v22  ;;  %v5261_v23 = vpop.permute.xlu0 %1034 }
 0x1a1   : > { %9068 = vst [vmem:[#allocation82_spill] sm:$0xff] %v5257_v11 }
 0x1a2   : > { %9070 = vst [vmem:[#allocation84_spill] sm:$0xff] %v5261_v23 }
 0x1a5   : > { %1326 = vrot.lane.b32.xlu2 %v4844_v35, %s4570_s25 }
 0x1a6   : > { %1324 = vrot.lane.b32.xlu1 %v4850_v37, %s4570_s25  ;;  %1322 = vrot.lane.b32.xlu0 %v4832_v33, %s4570_s25 }
 0x1a7   : > { %v5271_v19 = vpop.permute.xlu2 %1128 }
 0x1a8   : > { %v5269_v17 = vpop.permute.xlu1 %1108  ;;  %9072 = vst [vmem:[#allocation86_spill] sm:$0xff] %v5271_v19  ;;  %v5273_v14 = vpop.permute.xlu0 %1040  ;;  %v1491_v19 = vld [vmem:[%s8792_s3 + $0x8] sm:$0xff] }
 0x1a9   : > { %9071 = vst [vmem:[#allocation85_spill] sm:$0xff] %v5269_v17  ;;  %v1490_v17 = vld [vmem:[%s8792_s3] sm:$0xff] }
 0x1aa   : > { %9073 = vst [vmem:[#allocation87_spill] sm:$0xff] %v5273_v14 }
 0x1ad   : > { %1332 = vrot.lane.b32.xlu2 %v4859_v38, %s4570_s25 }
 0x1ae   : > { %1330 = vrot.lane.b32.xlu1 %v4865_v40, %s4570_s25  ;;  %1328 = vrot.lane.b32.xlu0 %v4847_v36, %s4570_s25  ;;  %v1497_v36 = vld [vmem:[%s8792_s3 + $0x38] sm:$0xff] }
 0x1af   : > { %v5283_v23 = vpop.permute.xlu2 %1134 }
 0x1b0   : > { %v5281_v22 = vpop.permute.xlu1 %1114  ;;  %9075 = vst [vmem:[#allocation89_spill] sm:$0xff] %v5283_v23  ;;  %v5285_v11 = vpop.permute.xlu0 %1112 }
 0x1b1   : > { %9074 = vst [vmem:[#allocation88_spill] sm:$0xff] %v5281_v22 }
 0x1b2   : > { %9076 = vst [vmem:[#allocation90_spill] sm:$0xff] %v5285_v11  ;;  %v1493_v11 = vld [vmem:[%s8792_s3 + $0x18] sm:$0xff] }
 0x1b5   : > { %1505 = vperm.xlu2 %4181, %v1491_v19   ;;  %v649_v19 = vlaneseq }
 0x1b6   : > { %1500 = vperm.xlu1 %4180, %v1490_v17   ;;  %1334 = vrot.lane.b32.xlu0 %v4862_v39, %s4570_s25  ;;  %v1492_v17 = vld [vmem:[%s8792_s3 + $0x10] sm:$0xff] }
 0x1b7   : > { %v5297_v22 = vpop.permute.xlu2 %1206  ;;  %v5316_v13 = vand.u32 127, %v649_v19  ;;  %v538_v19 = vmul.f32 %v522_v21, %v4829_v32 }
 0x1b8   : > { %v5295_v14 = vpop.permute.xlu1 %1120  ;;  %9078 = vst [vmem:[#allocation92_spill] sm:$0xff] %v5297_v22  ;;  %v5299_v23 = vpop.permute.xlu0 %1118  ;;  %v531_v22 = vld [vmem:[#allocation2 + $0x250] sm:$0xff] }
 0x1b9   : > { %9077 = vst [vmem:[#allocation91_spill] sm:$0xff] %v5295_v14  ;;  %v532_v14 = vld [vmem:[#allocation2 + $0x258] sm:$0xff]  ;;  %v547_v12 = vmul.f32 %v531_v22, %v4814_v29  ;;  %v539_v29 = vmul.f32 %v523_v60, %v4805_v28  ;;  %v609_v22 = vadd.f32 %v4897_v41, %v545_v63  ;;  %vm651_vm0 = vcmp.lt.s32.totalorder %v5316_v13, 17 }
 0x1ba   : > { %9079 = vst [vmem:[#allocation93_spill] sm:$0xff] %v5299_v23  ;;  %v521_v23 = vld [vmem:[#allocation2 + $0x200] sm:$0xff]  ;;  %v551_v28 = vmul.f32 %v535_v5, %v4835_v34  ;;  %v550_v63 = vmul.f32 %v534_v9, %v4859_v38  ;;  %v653_v34 = vsel %vm651_vm0, %v4961_v55, %v4947_v51  ;;  %v5367_v38 = vadd.f32 %v4921_v44, %v541_v10 }
 0x1bb   : > { %v5344_v37 = vadd.f32 %v4905_v42, %v547_v12  ;;  %v5370_v5 = vadd.f32 %v4921_v44, %v542_v20  ;;  %v602_v12 = vadd.f32 %v4925_v46, %v538_v19  ;;  %vm748_vm1 = vcmp.lt.s32.totalorder %v5316_v13, 16 }
 0x1bc   : > { %v5405_v10 = vadd.f32 %v4945_v50, %v551_v28  ;;  %vm846_vm2 = vcmp.lt.s32.totalorder %v5316_v13, 15  ;;  %vm944_vm3 = vcmp.lt.s32.totalorder %v5316_v13, 1  ;;  %vm1042_vm4 = vcmp.lt.s32.totalorder %v5316_v13, 127 }
 0x1bd   : > { %1520 = vperm.xlu2 %4181, %v1494_v25   ;;  %v527_v25 = vld [vmem:[#allocation2 + $0x230] sm:$0xff]  ;;  %vm1140_vm5 = vcmp.lt.s32.totalorder %v5316_v13, 113  ;;  %vm1238_vm6 = vcmp.lt.s32.totalorder %v5316_v13, 112  ;;  %vm1336_vm7 = vcmp.lt.s32.totalorder %v5316_v13, 111 }
 0x1be   : > { %1515 = vperm.xlu1 %4180, %v1493_v11   ;;  %1510 = vperm.xlu0 %4179, %v1492_v17   ;;  %v528_v17 = vld [vmem:[#allocation2 + $0x238] sm:$0xff]  ;;  %v543_v26 = vmul.f32 %v527_v25, %v4802_v27  ;;  %v670_v27 = vld [vmem:[#allocation2 + $0x10] sm:$0xff]  ;;  %v669_v25 = vld [vmem:[#allocation2 + $0x8] sm:$0xff] }
 0x1bf   : > { %v5312_v18 = vpop.permute.xlu2 %1212  ;;  %v544_v32 = vmul.f32 %v528_v17, %v4844_v35  ;;  %v661_v35 = vsel %vm651_vm0, %v4947_v51, %v4961_v55  ;;  %v656_v51 = vsel %vm651_vm0, %v4973_v58, %v4959_v54  ;;  %v1760_v17 = vld [vmem:[%s8794_s5 + $0x10] sm:$0xff] }
 0x1c0   : > { %v5310_v7 = vpop.permute.xlu1 %1126  ;;  %9081 = vst [vmem:[#allocation95_spill] sm:$0xff] %v5312_v18  ;;  %v5318_v11 = vpop.permute.xlu0 %1124  ;;  %v537_v18 = vmul.f32 %v521_v23, %v4791_v24  ;;  %v1495_v24 = vld [vmem:[%s8792_s3 + $0x28] sm:$0xff]  ;;  %v610_v23 = vadd.f32 %v4897_v41, %v546_v16  ;;  %v5383_v15 = vadd.f32 %v4933_v47, %v543_v26  ;;  %v668_v16 = vld [vmem:[#allocation2] sm:$0xff]  ;;  %v686_v21 = vmul.f32 %v670_v27, %v661_v35 }
 0x1c1   : > { %9080 = vst [vmem:[#allocation94_spill] sm:$0xff] %v5310_v7  ;;  %v548_v7 = vmul.f32 %v532_v14, %v4865_v40  ;;  %v536_v40 = vld [vmem:[#allocation2 + $0x278] sm:$0xff]  ;;  %v533_v14 = vld [vmem:[#allocation2 + $0x260] sm:$0xff]  ;;  %v5386_v44 = vadd.f32 %v4933_v47, %v544_v32  ;;  %v1759_v47 = vld [vmem:[%s8794_s5 + $0x8] sm:$0xff]  ;;  %v654_v35 = vsel %vm651_vm0, %v4957_v53, %v4997_v0 }
 0x1c2   : > { %9082 = vst [vmem:[#allocation96_spill] sm:$0xff] %v5318_v11  ;;  %v540_v11 = vmul.f32 %v524_v8, %v4832_v33  ;;  %v552_v41 = vmul.f32 %v536_v40, %v4862_v39  ;;  %v549_v33 = vmul.f32 %v533_v14, %v4817_v30  ;;  %v664_v30 = vsel %vm651_vm0, %v4959_v54, %v4973_v58  ;;  %v677_v8 = vld [vmem:[#allocation2 + $0x48] sm:$0xff]  ;;  %v682_v40 = vld [vmem:[#allocation2 + $0x70] sm:$0xff]  ;;  %v683_v14 = vld [vmem:[#allocation2 + $0x78] sm:$0xff] }
 0x1c3   : > { %v5347_v60 = vadd.f32 %v4905_v42, %v548_v7  ;;  %v676_v42 = vld [vmem:[#allocation2 + $0x40] sm:$0xff]  ;;  %v601_v7 = vadd.f32 %v4925_v46, %v537_v18  ;;  %v660_v18 = vsel %vm651_vm0, %v4981_v59, %v4913_v43  ;;  %v687_v54 = vmul.f32 %v671_v4, %v653_v34 }
 0x1c4   : > { %v692_v58 = vmul.f32 %v676_v42, %v664_v30  ;;  %v652_v46 = vsel %vm651_vm0, %v4913_v43, %v4981_v59  ;;  %v693_v20 = vmul.f32 %v677_v8, %v656_v51  ;;  %v1758_v43 = vld [vmem:[%s8794_s5] sm:$0xff]  ;;  %v5411_v59 = vadd.f32 %v4945_v50, %v552_v41  ;;  %v678_v30 = vld [vmem:[#allocation2 + $0x50] sm:$0xff] }
 0x1c5   : > { %1535 = vperm.xlu2 %4181, %v1497_v36   ;;  %v604_v36 = vadd.f32 %v4937_v49, %v540_v11  ;;  %v5414_v19 = vadd.f32 %v4949_v52, %v549_v33  ;;  %v684_v11 = vmul.f32 %v668_v16, %v660_v18  ;;  %v659_v50 = vsel %vm651_vm0, %v4985_v61, %v4971_v57  ;;  %v674_v33 = vld [vmem:[#allocation2 + $0x30] sm:$0xff]  ;;  %v672_v34 = vld [vmem:[#allocation2 + $0x20] sm:$0xff]  ;;  %v681_v16 = vld [vmem:[#allocation2 + $0x68] sm:$0xff] }
 0x1c6   : > { %1530 = vperm.xlu1 %4180, %v1496_v31   ;;  %1525 = vperm.xlu0 %4179, %v1495_v24   ;;  %v603_v31 = vadd.f32 %v4937_v49, %v539_v29  ;;  %v667_v49 = vsel %vm651_vm0, %v4971_v57, %v4985_v61  ;;  %v5421_v29 = vadd.f32 %v4949_v52, %v550_v63  ;;  %v675_v63 = vld [vmem:[#allocation2 + $0x38] sm:$0xff]  ;;  %v680_v51 = vld [vmem:[#allocation2 + $0x60] sm:$0xff] }
 0x1c7   : > { %v5379_v9 = vpop.permute.xlu2 %1218  ;;  %v685_v24 = vmul.f32 %v669_v25, %v652_v46  ;;  %v5429_v32 = vadd.f32 %v687_v54, %v604_v36  ;;  %v5431_v28 = vadd.f32 %v692_v58, %v609_v22  ;;  %v5434_v52 = vadd.f32 %v693_v20, %v610_v23  ;;  %v673_v23 = vld [vmem:[#allocation2 + $0x28] sm:$0xff]  ;;  %v766_v54 = vld [vmem:[#allocation2 + $0x80] sm:$0xff]  ;;  %v9085_v36 = vld [vmem:[#allocation24_spill] sm:$0xff] }
 0x1c8   : > { %v5364_v39 = vpop.permute.xlu1 %1132  ;;  %v5377_v55 = vpop.permute.xlu0 %1130  ;;  %9083 = vst [vmem:[#allocation97_spill] sm:$0xff] %v5379_v9  ;;  %v5427_v26 = vadd.f32 %v686_v21, %v603_v31  ;;  %v698_v41 = vmul.f32 %v682_v40, %v667_v49  ;;  %v655_v57 = vsel %vm651_vm0, %v4923_v45, %v4993_v62  ;;  %v663_v61 = vsel %vm651_vm0, %v4993_v62, %v4923_v45  ;;  %v679_v62 = vld [vmem:[#allocation2 + $0x58] sm:$0xff]  ;;  %v1762_v46 = vld [vmem:[%s8794_s5 + $0x20] sm:$0xff]  ;;  %v9084_v31 = vld [vmem:[#allocation27_spill] sm:$0xff] }
 0x1c9   : > { %v699_v27 = vmul.f32 %v683_v14, %v659_v50  ;;  %v700_v4 = vadd.f32 %v684_v11, %v601_v7  ;;  %v662_v42 = vsel %vm651_vm0, %v4997_v0, %v4957_v53  ;;  %v701_v45 = vadd.f32 %v685_v24, %v602_v12  ;;  %v773_v14 = vld [vmem:[#allocation2 + $0xb8] sm:$0xff]  ;;  %v778_v24 = vld [vmem:[#allocation2 + $0xe0] sm:$0xff] }
 0x1ca   : > { %v665_v7 = vsel %vm651_vm0, %v5009_v3, %v4969_v56  ;;  %v658_v18 = vsel %vm651_vm0, %v4935_v48, %v5005_v1  ;;  %v666_v53 = vsel %vm651_vm0, %v5005_v1, %v4935_v48  ;;  %v690_v0 = vmul.f32 %v674_v33, %v663_v61  ;;  %v1763_v48 = vld [vmem:[%s8794_s5 + $0x28] sm:$0xff] }
 0x1cb   : > { %v691_v12 = vmul.f32 %v675_v63, %v655_v57  ;;  %v657_v21 = vsel %vm651_vm0, %v4969_v56, %v5009_v3  ;;  %v757_v58 = vsel %vm748_vm1, %v5007_v2, %v5021_v6  ;;  %v688_v1 = vmul.f32 %v672_v34, %v662_v42  ;;  %v772_v3 = vld [vmem:[#allocation2 + $0xb0] sm:$0xff]  ;;  %v9086_v33 = vld [vmem:[#allocation30_spill] sm:$0xff] }
 0x1cc   : > { %v749_v56 = vsel %vm748_vm1, %v5021_v6, %v5007_v2  ;;  %v760_v20 = vsel %vm748_vm1, %v9085_v36, %v9084_v31  ;;  %v694_v40 = vmul.f32 %v678_v30, %v665_v7  ;;  %v696_v49 = vmul.f32 %v680_v51, %v666_v53  ;;  %v9087_v63 = vld [vmem:[#allocation26_spill] sm:$0xff]  ;;  %v770_v53 = vld [vmem:[#allocation2 + $0xa0] sm:$0xff] }
 0x1cd   : > { %1778 = vperm.xlu2 %4181, %v1760_v17   ;;  %v767_v17 = vld [vmem:[#allocation2 + $0x88] sm:$0xff]  ;;  %v697_v11 = vmul.f32 %v681_v16, %v658_v18  ;;  %v752_v50 = vsel %vm748_vm1, %v9084_v31, %v9085_v36  ;;  %v695_v2 = vmul.f32 %v679_v62, %v657_v21  ;;  %v782_v6 = vmul.f32 %v766_v54, %v757_v58  ;;  %v1765_v21 = vld [vmem:[%s8794_s5 + $0x38] sm:$0xff]  ;;  %v768_v54 = vld [vmem:[#allocation2 + $0x90] sm:$0xff] }
 0x1ce   : > { %1773 = vperm.xlu1 %4180, %v1759_v47   ;;  %1768 = vperm.xlu0 %4179, %v1758_v43   ;;  %v689_v47 = vmul.f32 %v673_v23, %v654_v35  ;;  %v1761_v43 = vld [vmem:[%s8794_s5 + $0x18] sm:$0xff]  ;;  %v763_v57 = vsel %vm748_vm1, %v9087_v63, %v9086_v33  ;;  %v5504_v61 = vadd.f32 %v698_v41, %v5405_v10  ;;  %v779_v18 = vld [vmem:[#allocation2 + $0xe8] sm:$0xff]  ;;  %v776_v31 = vld [vmem:[#allocation2 + $0xd0] sm:$0xff] }
 0x1cf   : > { %v5476_v25 = vpop.permute.xlu2 %1224  ;;  %v5507_v34 = vadd.f32 %v699_v27, %v5411_v59  ;;  %v783_v23 = vmul.f32 %v767_v17, %v749_v56  ;;  %v788_v35 = vmul.f32 %v772_v3, %v760_v20  ;;  %v5510_v42 = vadd.f32 %v688_v1, %v5367_v38  ;;  %v769_v58 = vld [vmem:[#allocation2 + $0x98] sm:$0xff]  ;;  %v1764_v17 = vld [vmem:[%s8794_s5 + $0x30] sm:$0xff]  ;;  %v9093_v20 = vld [vmem:[#allocation34_spill] sm:$0xff] }
 0x1d0   : > { %v5444_v22 = vpop.permute.xlu1 %1138  ;;  %v5454_v8 = vpop.permute.xlu0 %1136  ;;  %v706_v30 = vadd.f32 %v690_v0, %v5383_v15  ;;  %v707_v62 = vadd.f32 %v691_v12, %v5386_v44  ;;  %v789_v7 = vmul.f32 %v773_v14, %v752_v50  ;;  %v5517_v16 = vadd.f32 %v689_v47, %v5370_v5  ;;  %v771_v0 = vld [vmem:[#allocation2 + $0xa8] sm:$0xff]  ;;  %v9089_v12 = vld [vmem:[#allocation31_spill] sm:$0xff]  ;;  %v777_v36 = vld [vmem:[#allocation2 + $0xd8] sm:$0xff] }
 0x1d1   : > { %v712_v10 = vadd.f32 %v696_v49, %v5414_v19  ;;  %v713_v59 = vadd.f32 %v697_v11, %v5421_v29  ;;  %v794_v41 = vmul.f32 %v778_v24, %v763_v57  ;;  %v5524_v38 = vadd.f32 %v694_v40, %v5344_v37  ;;  %v9090_v37 = vld [vmem:[#allocation21_spill] sm:$0xff]  ;;  %v9095_v24 = vld [vmem:[#allocation36_spill] sm:$0xff] }
 0x1d2   : > { %v5527_v15 = vadd.f32 %v695_v2, %v5347_v60  ;;  %v5529_v44 = vadd.f32 %v782_v6, %v700_v4  ;;  %v755_v5 = vsel %vm748_vm1, %v9086_v33, %v9087_v63  ;;  %v5535_v19 = vadd.f32 %v783_v23, %v701_v45  ;;  %v774_v2 = vld [vmem:[#allocation2 + $0xc0] sm:$0xff]  ;;  %v775_v6 = vld [vmem:[#allocation2 + $0xc8] sm:$0xff] }
 0x1d3   : > { %v5537_v29 = vadd.f32 %v788_v35, %v706_v30  ;;  %v751_v60 = vsel %vm748_vm1, %v9090_v37, %v9089_v12  ;;  %v759_v4 = vsel %vm748_vm1, %v9089_v12, %v9090_v37  ;;  %v5550_v45 = vadd.f32 %v789_v7, %v707_v62  ;;  %v9096_v33 = vld [vmem:[#allocation25_spill] sm:$0xff]  ;;  %v780_v30 = vld [vmem:[#allocation2 + $0xf0] sm:$0xff]  ;;  %v781_v62 = vld [vmem:[#allocation2 + $0xf8] sm:$0xff] }
 0x1d4   : > { %v795_v56 = vmul.f32 %v779_v18, %v755_v5  ;;  %v5564_v3 = vadd.f32 %v794_v41, %v712_v10  ;;  %v786_v14 = vmul.f32 %v770_v53, %v759_v4  ;;  %v787_v50 = vmul.f32 %v771_v0, %v751_v60  ;;  %v9097_v7 = vld [vmem:[#allocation39_spill] sm:$0xff]  ;;  %v9098_v10 = vld [vmem:[#allocation28_spill] sm:$0xff]  ;;  %v868_v0 = vld [vmem:[#allocation2 + $0x120] sm:$0xff] }
 0x1d5   : > { %1793 = vperm.xlu2 %4181, %v1763_v48   ;;  %v9092_v48 = vld [vmem:[#allocation23_spill] sm:$0xff]  ;;  %v753_v63 = vsel %vm748_vm1, %v9096_v33, %v9095_v24  ;;  %v761_v57 = vsel %vm748_vm1, %v9095_v24, %v9096_v33  ;;  %v756_v41 = vsel %vm748_vm1, %v9098_v10, %v9097_v7  ;;  %v764_v18 = vsel %vm748_vm1, %v9097_v7, %v9098_v10  ;;  %v869_v12 = vld [vmem:[#allocation2 + $0x128] sm:$0xff] }
 0x1d6   : > { %1788 = vperm.xlu1 %4180, %v1762_v46   ;;  %1783 = vperm.xlu0 %4179, %v1761_v43   ;;  %v9091_v46 = vld [vmem:[#allocation33_spill] sm:$0xff]  ;;  %v9094_v43 = vld [vmem:[#allocation22_spill] sm:$0xff] }
 0x1d7   : > { %v750_v1 = vsel %vm748_vm1, %v9092_v48, %v9091_v46  ;;  %v758_v47 = vsel %vm748_vm1, %v9091_v46, %v9092_v48  ;;  %v754_v40 = vsel %vm748_vm1, %v9094_v43, %v9093_v20  ;;  %v762_v49 = vsel %vm748_vm1, %v9093_v20, %v9094_v43  ;;  %v5574_v11 = vpop.permute.xlu2 %1230  ;;  %v9099_v37 = vld [vmem:[#allocation38_spill] sm:$0xff]  ;;  %v874_v48 = vld [vmem:[#allocation2 + $0x150] sm:$0xff] }
 0x1d8   : > { %v5514_v51 = vpop.permute.xlu1 %1210  ;;  %v5521_v27 = vpop.permute.xlu0 %1208  ;;  %v784_v23 = vmul.f32 %v768_v54, %v758_v47  ;;  %v785_v35 = vmul.f32 %v769_v58, %v750_v1  ;;  %v792_v5 = vmul.f32 %v776_v31, %v762_v49  ;;  %v793_v53 = vmul.f32 %v777_v36, %v754_v40  ;;  %v9100_v60 = vld [vmem:[#allocation42_spill] sm:$0xff]  ;;  %v875_v1 = vld [vmem:[#allocation2 + $0x158] sm:$0xff]  ;;  %v9102_v47 = vld [vmem:[#allocation41_spill] sm:$0xff] }
 0x1d9   : > { %9088 = vst [vmem:[#allocation27_spill] sm:$0xff] %v5514_v51  ;;  %v849_v4 = vsel %vm846_vm2, %v9100_v60, %v9099_v37  ;;  %v790_v58 = vmul.f32 %v774_v2, %v761_v57  ;;  %v791_v46 = vmul.f32 %v775_v6, %v753_v63  ;;  %v5612_v43 = vadd.f32 %v795_v56, %v713_v59 }
 0x1da   : > { %v802_v40 = vadd.f32 %v786_v14, %v5510_v42  ;;  %v796_v49 = vmul.f32 %v780_v30, %v764_v18  ;;  %v797_v2 = vmul.f32 %v781_v62, %v756_v41  ;;  %v803_v6 = vadd.f32 %v787_v50, %v5517_v16  ;;  %v867_v50 = vld [vmem:[#allocation2 + $0x118] sm:$0xff]  ;;  %v865_v62 = vld [vmem:[#allocation2 + $0x108] sm:$0xff] }
 0x1db   : > { %v800_v24 = vadd.f32 %v784_v23, %v5427_v26  ;;  %v885_v63 = vmul.f32 %v869_v12, %v849_v4  ;;  %v801_v57 = vadd.f32 %v785_v35, %v5429_v32  ;;  %v808_v42 = vadd.f32 %v792_v5, %v5524_v38  ;;  %v864_v35 = vld [vmem:[#allocation2 + $0x100] sm:$0xff]  ;;  %v9107_v30 = vld [vmem:[#allocation48_spill] sm:$0xff] }
 0x1dc   : > { %v809_v56 = vadd.f32 %v793_v53, %v5527_v15  ;;  %v806_v16 = vadd.f32 %v790_v58, %v5431_v28  ;;  %v807_v26 = vadd.f32 %v791_v46, %v5434_v52  ;;  %v5627_v14 = vadd.f32 %v796_v49, %v5504_v61  ;;  %v9106_v38 = vld [vmem:[#allocation37_spill] sm:$0xff] }
 0x1dd   : > { %v5630_v32 = vadd.f32 %v797_v2, %v5507_v34  ;;  %v855_v28 = vsel %vm846_vm2, %v9107_v30, %v9106_v38  ;;  %v5642_v52 = vadd.f32 %v885_v63, %v803_v6  ;;  %v847_v34 = vsel %vm846_vm2, %v9106_v38, %v9107_v30  ;;  %v872_v53 = vld [vmem:[#allocation2 + $0x140] sm:$0xff]  ;;  %v871_v6 = vld [vmem:[#allocation2 + $0x138] sm:$0xff]  ;;  %v878_v63 = vld [vmem:[#allocation2 + $0x170] sm:$0xff] }
 0x1de   : > { %1803 = vperm.xlu1 %4180, %v1765_v21   ;;  %1798 = vperm.xlu0 %4179, %v1764_v17   ;;  %v857_v21 = vsel %vm846_vm2, %v9099_v37, %v9100_v60  ;;  %v9103_v17 = vld [vmem:[#allocation45_spill] sm:$0xff]  ;;  %v866_v37 = vld [vmem:[#allocation2 + $0x110] sm:$0xff]  ;;  %v880_v46 = vmul.f32 %v864_v35, %v855_v28  ;;  %v881_v2 = vmul.f32 %v865_v62, %v847_v34 }
 0x1df   : > { %v852_v31 = vsel %vm846_vm2, %v9103_v17, %v9102_v47  ;;  %v860_v36 = vsel %vm846_vm2, %v9102_v47, %v9103_v17  ;;  %v884_v33 = vmul.f32 %v868_v0, %v857_v21  ;;  %v9104_v60 = vld [vmem:[#allocation29_spill] sm:$0xff]  ;;  %v9105_v47 = vld [vmem:[#allocation46_spill] sm:$0xff]  ;;  %v5648_v41 = vpop.permute.xlu2 %1236  ;;  %v9109_v0 = vld [vmem:[#allocation32_spill] sm:$0xff] }
 0x1e0   : > { %v5600_v54 = vpop.permute.xlu1 %1216  ;;  %v5610_v20 = vpop.permute.xlu0 %1214  ;;  %v890_v7 = vmul.f32 %v874_v48, %v860_v36  ;;  %v891_v10 = vmul.f32 %v875_v1, %v852_v31  ;;  %v856_v59 = vsel %vm846_vm2, %v9105_v47, %v9104_v60  ;;  %v848_v23 = vsel %vm846_vm2, %v9104_v60, %v9105_v47  ;;  %9108 = vst [vmem:[#allocation30_spill] sm:$0xff] %v5648_v41  ;;  %v9110_v12 = vld [vmem:[#allocation49_spill] sm:$0xff]  ;;  %v873_v48 = vld [vmem:[#allocation2 + $0x148] sm:$0xff]  ;;  %v870_v17 = vld [vmem:[#allocation2 + $0x130] sm:$0xff] }
 0x1e1   : > { %9101 = vst [vmem:[#allocation24_spill] sm:$0xff] %v5600_v54  ;;  %v5640_v15 = vadd.f32 %v884_v33, %v802_v40  ;;  %v882_v61 = vmul.f32 %v866_v37, %v856_v59  ;;  %v859_v4 = vsel %vm846_vm2, %v9110_v12, %v9109_v0  ;;  %v883_v58 = vmul.f32 %v867_v50, %v848_v23  ;;  %v9111_v31 = vld [vmem:[#allocation40_spill] sm:$0xff]  ;;  %v9112_v36 = vld [vmem:[#allocation51_spill] sm:$0xff]  ;;  %v877_v50 = vld [vmem:[#allocation2 + $0x168] sm:$0xff] }
 0x1e2   : > { %v5650_v18 = vadd.f32 %v890_v7, %v808_v42  ;;  %v5652_v5 = vadd.f32 %v891_v10, %v809_v56  ;;  %v851_v1 = vsel %vm846_vm2, %v9109_v0, %v9110_v12  ;;  %v858_v40 = vsel %vm846_vm2, %v9112_v36, %v9111_v31  ;;  %v879_v7 = vld [vmem:[#allocation2 + $0x178] sm:$0xff]  ;;  %v9115_v37 = vld [vmem:[#allocation35_spill] sm:$0xff]  ;;  %v876_v56 = vld [vmem:[#allocation2 + $0x160] sm:$0xff] }
 0x1e3   : > { %v850_v33 = vsel %vm846_vm2, %v9111_v31, %v9112_v36  ;;  %v9114_v10 = vld [vmem:[#allocation52_spill] sm:$0xff]  ;;  %v898_v59 = vadd.f32 %v882_v61, %v800_v24  ;;  %v888_v42 = vmul.f32 %v872_v53, %v859_v4  ;;  %v9116_v23 = vld [vmem:[#allocation54_spill] sm:$0xff]  ;;  %v9117_v35 = vld [vmem:[#allocation43_spill] sm:$0xff]  ;;  %v889_v28 = vmul.f32 %v873_v48, %v851_v1 }
 0x1e4   : > { %v854_v60 = vsel %vm846_vm2, %v9115_v37, %v9114_v10  ;;  %v862_v47 = vsel %vm846_vm2, %v9114_v10, %v9115_v37  ;;  %v853_v38 = vsel %vm846_vm2, %v9117_v35, %v9116_v23  ;;  %v861_v30 = vsel %vm846_vm2, %v9116_v23, %v9117_v35  ;;  %v964_v34 = vld [vmem:[#allocation2 + $0x190] sm:$0xff]  ;;  %v965_v0 = vld [vmem:[#allocation2 + $0x198] sm:$0xff]  ;;  %v9118_v12 = vld [vmem:[#allocation53_spill] sm:$0xff] }
 0x1e5   : > { %v886_v62 = vmul.f32 %v870_v17, %v858_v40  ;;  %v9119_v31 = vld [vmem:[#allocation57_spill] sm:$0xff]  ;;  %v887_v53 = vmul.f32 %v871_v6, %v850_v33  ;;  %v894_v4 = vmul.f32 %v878_v63, %v862_v47  ;;  %v895_v36 = vmul.f32 %v879_v7, %v854_v60  ;;  %v9120_v37 = vld [vmem:[#allocation60_spill] sm:$0xff]  ;;  %v971_v35 = vld [vmem:[#allocation2 + $0x1c8] sm:$0xff] }
 0x1e6   : > { %v946_v24 = vsel %vm944_vm3, %v9119_v31, %v9118_v12  ;;  %v954_v61 = vsel %vm944_vm3, %v9118_v12, %v9119_v31  ;;  %v970_v10 = vld [vmem:[#allocation2 + $0x1c0] sm:$0xff]  ;;  %v9121_v23 = vld [vmem:[#allocation56_spill] sm:$0xff]  ;;  %v899_v1 = vadd.f32 %v883_v58, %v801_v57  ;;  %v892_v17 = vmul.f32 %v876_v56, %v861_v30 }
 0x1e7   : > { %v957_v48 = vsel %vm944_vm3, %v9121_v23, %v9120_v37  ;;  %v893_v40 = vmul.f32 %v877_v50, %v853_v38  ;;  %v949_v54 = vsel %vm944_vm3, %v9120_v37, %v9121_v23  ;;  %v5708_v12 = vadd.f32 %v880_v46, %v5529_v44  ;;  %v5725_v46 = vpop.permute.xlu2 %1308  ;;  %v9126_v38 = vld [vmem:[#allocation44_spill] sm:$0xff] }
 0x1e8   : > { %v5659_v21 = vpop.permute.xlu1 %1222  ;;  %v5669_v49 = vpop.permute.xlu0 %1220  ;;  %v5711_v6 = vadd.f32 %v881_v2, %v5535_v19  ;;  %v980_v33 = vmul.f32 %v964_v34, %v954_v61  ;;  %v981_v63 = vmul.f32 %v965_v0, %v946_v24  ;;  %v904_v7 = vadd.f32 %v888_v42, %v806_v16  ;;  %9123 = vst [vmem:[#allocation21_spill] sm:$0xff] %v5725_v46  ;;  %v963_v42 = vld [vmem:[#allocation2 + $0x188] sm:$0xff]  ;;  %v968_v24 = vld [vmem:[#allocation2 + $0x1b0] sm:$0xff]  ;;  %v969_v61 = vld [vmem:[#allocation2 + $0x1b8] sm:$0xff] }
 0x1e9   : > { %9113 = vst [vmem:[#allocation26_spill] sm:$0xff] %v5669_v49  ;;  %v905_v60 = vadd.f32 %v889_v28, %v807_v26  ;;  %v5714_v57 = vadd.f32 %v886_v62, %v5537_v29  ;;  %v986_v58 = vmul.f32 %v970_v10, %v957_v48  ;;  %v5719_v56 = vadd.f32 %v887_v53, %v5550_v45  ;;  %v962_v26 = vld [vmem:[#allocation2 + $0x180] sm:$0xff]  ;;  %v977_v28 = vld [vmem:[#allocation2 + $0x1f8] sm:$0xff]  ;;  %v9128_v62 = vld [vmem:[#allocation63_spill] sm:$0xff] }
 0x1ea   : > { %v910_v50 = vadd.f32 %v894_v4, %v5627_v14  ;;  %v5723_v44 = vadd.f32 %v895_v36, %v5630_v32  ;;  %v987_v19 = vmul.f32 %v971_v35, %v949_v54  ;;  %v5730_v16 = vadd.f32 %v892_v17, %v5564_v3  ;;  %v9125_v45 = vld [vmem:[#allocation61_spill] sm:$0xff]  ;;  %v976_v3 = vld [vmem:[#allocation2 + $0x1f0] sm:$0xff]  ;;  %v9132_v17 = vld [vmem:[#allocation66_spill] sm:$0xff] }
 0x1eb   : > { %v5733_v29 = vadd.f32 %v893_v40, %v5612_v43  ;;  %v945_v14 = vsel %vm944_vm3, %v9126_v38, %v9125_v45  ;;  %v953_v54 = vsel %vm944_vm3, %v9125_v45, %v9126_v38  ;;  %v5743_v32 = vadd.f32 %v980_v33, %v898_v59  ;;  %v9127_v43 = vld [vmem:[#allocation59_spill] sm:$0xff]  ;;  %v9129_v59 = vld [vmem:[#allocation64_spill] sm:$0xff]  ;;  %v966_v48 = vld [vmem:[#allocation2 + $0x1a0] sm:$0xff] }
 0x1ec   : > { %v5745_v30 = vadd.f32 %v981_v63, %v899_v1  ;;  %v952_v34 = vsel %vm944_vm3, %v9128_v62, %v9127_v43  ;;  %v960_v0 = vsel %vm944_vm3, %v9127_v43, %v9128_v62  ;;  %v5755_v31 = vadd.f32 %v986_v58, %v904_v7  ;;  %v9130_v53 = vld [vmem:[#allocation47_spill] sm:$0xff]  ;;  %v967_v63 = vld [vmem:[#allocation2 + $0x1a8] sm:$0xff]  ;;  %v974_v58 = vld [vmem:[#allocation2 + $0x1e0] sm:$0xff] }
 0x1ed   : > { %v948_v4 = vsel %vm944_vm3, %v9130_v53, %v9129_v59  ;;  %v956_v36 = vsel %vm944_vm3, %v9129_v59, %v9130_v53  ;;  %v5766_v10 = vadd.f32 %v987_v19, %v905_v60  ;;  %v978_v37 = vmul.f32 %v962_v26, %v953_v54  ;;  %v9131_v1 = vld [vmem:[#allocation55_spill] sm:$0xff]  ;;  %v9133_v45 = vld [vmem:[#allocation50_spill] sm:$0xff]  ;;  %v9137_v59 = vld [vmem:[#allocation68_spill] sm:$0xff] }
 0x1ee   : > { %v979_v23 = vmul.f32 %v963_v42, %v945_v14  ;;  %v955_v40 = vsel %vm944_vm3, %v9132_v17, %v9131_v1  ;;  %v992_v35 = vmul.f32 %v976_v3, %v960_v0  ;;  %v993_v33 = vmul.f32 %v977_v28, %v952_v34  ;;  %v9134_v60 = vld [vmem:[#allocation67_spill] sm:$0xff]  ;;  %v975_v38 = vld [vmem:[#allocation2 + $0x1e8] sm:$0xff]  ;;  %v9136_v28 = vld [vmem:[#allocation69_spill] sm:$0xff] }
 0x1ef   : > { %v947_v7 = vsel %vm944_vm3, %v9131_v1, %v9132_v17  ;;  %v959_v19 = vsel %vm944_vm3, %v9134_v60, %v9133_v45  ;;  %v984_v26 = vmul.f32 %v968_v24, %v956_v36  ;;  %v985_v42 = vmul.f32 %v969_v61, %v948_v4  ;;  %v972_v54 = vld [vmem:[#allocation2 + $0x1d0] sm:$0xff]  ;;  %v9135_v3 = vld [vmem:[#allocation58_spill] sm:$0xff]  ;;  %v973_v34 = vld [vmem:[#allocation2 + $0x1d8] sm:$0xff] }
 0x1f0   : > { %v5716_v47 = vpop.permute.xlu1 %1228  ;;  %v5727_v2 = vpop.permute.xlu0 %1226  ;;  %v951_v14 = vsel %vm944_vm3, %v9133_v45, %v9134_v60  ;;  %v958_v43 = vsel %vm944_vm3, %v9136_v28, %v9135_v3  ;;  %v982_v62 = vmul.f32 %v966_v48, %v955_v40  ;;  %v950_v0 = vsel %vm944_vm3, %v9135_v3, %v9136_v28  ;;  %v1060_v24 = vld [vmem:[#allocation2 + $0x280] sm:$0xff]  ;;  %v1061_v61 = vld [vmem:[#allocation2 + $0x288] sm:$0xff]  ;;  %v9138_v53 = vld [vmem:[#allocation72_spill] sm:$0xff] }
 0x1f1   : > { %9122 = vst [vmem:[#allocation31_spill] sm:$0xff] %v5716_v47  ;;  %v1043_v4 = vsel %vm1042_vm4, %v9138_v53, %v9137_v59  ;;  %v1051_v36 = vsel %vm1042_vm4, %v9137_v59, %v9138_v53  ;;  %v983_v48 = vmul.f32 %v967_v63, %v947_v7  ;;  %v990_v17 = vmul.f32 %v974_v58, %v959_v19  ;;  %v1066_v40 = vld [vmem:[#allocation2 + $0x2b0] sm:$0xff]  ;;  %v1067_v45 = vld [vmem:[#allocation2 + $0x2b8] sm:$0xff] }
 0x1f2   : > { %9124 = vst [vmem:[#allocation33_spill] sm:$0xff] %v5727_v2  ;;  %v9140_v60 = vld [vmem:[#allocation71_spill] sm:$0xff]  ;;  %v994_v59 = vadd.f32 %v978_v37, %v5708_v12  ;;  %v995_v53 = vadd.f32 %v979_v23, %v5711_v6  ;;  %v991_v63 = vmul.f32 %v975_v38, %v951_v14  ;;  %v988_v7 = vmul.f32 %v972_v54, %v958_v43  ;;  %v1072_v38 = vld [vmem:[#allocation2 + $0x2e0] sm:$0xff]  ;;  %v1073_v14 = vld [vmem:[#allocation2 + $0x2e8] sm:$0xff] }
 0x1f3   : > { %v9141_v3 = vld [vmem:[#allocation75_spill] sm:$0xff]  ;;  %v5814_v58 = vadd.f32 %v992_v35, %v910_v50  ;;  %v989_v19 = vmul.f32 %v973_v34, %v950_v0  ;;  %v1076_v2 = vmul.f32 %v1060_v24, %v1043_v4  ;;  %v1077_v9 = vmul.f32 %v1061_v61, %v1051_v36  ;;  %v1065_v43 = vld [vmem:[#allocation2 + $0x2a8] sm:$0xff]  ;;  %v1063_v0 = vld [vmem:[#allocation2 + $0x298] sm:$0xff] }
 0x1f4   : > { %v1046_v28 = vsel %vm1042_vm4, %v9141_v3, %v9140_v60  ;;  %v1054_v46 = vsel %vm1042_vm4, %v9140_v60, %v9141_v3  ;;  %v5819_v47 = vadd.f32 %v993_v33, %v5723_v44  ;;  %v1000_v60 = vadd.f32 %v984_v26, %v5714_v57  ;;  %v9144_v44 = vld [vmem:[#allocation74_spill] sm:$0xff]  ;;  %v1062_v34 = vld [vmem:[#allocation2 + $0x290] sm:$0xff]  ;;  %v9149_v24 = vld [vmem:[#allocation81_spill] sm:$0xff] }
 0x1f5   : > { %v1082_v3 = vmul.f32 %v1066_v40, %v1046_v28  ;;  %v1001_v12 = vadd.f32 %v985_v42, %v5719_v56  ;;  %v998_v6 = vadd.f32 %v982_v62, %v5640_v15  ;;  %v999_v37 = vadd.f32 %v983_v48, %v5642_v52  ;;  %v9145_v33 = vld [vmem:[#allocation78_spill] sm:$0xff]  ;;  %v1071_v40 = vld [vmem:[#allocation2 + $0x2d8] sm:$0xff]  ;;  %v9153_v28 = vld [vmem:[#allocation65_spill] sm:$0xff] }
 0x1f6   : > { %v1006_v50 = vadd.f32 %v990_v17, %v5730_v16  ;;  %v1007_v23 = vadd.f32 %v991_v63, %v5733_v29  ;;  %v1004_v35 = vadd.f32 %v988_v7, %v5650_v18  ;;  %v1049_v57 = vsel %vm1042_vm4, %v9145_v33, %v9144_v44  ;;  %v1064_v16 = vld [vmem:[#allocation2 + $0x2a0] sm:$0xff]  ;;  %v9146_v18 = vld [vmem:[#allocation79_spill] sm:$0xff]  ;;  %v9147_v29 = vld [vmem:[#allocation62_spill] sm:$0xff] }
 0x1f7   : > { %v1057_v15 = vsel %vm1042_vm4, %v9144_v44, %v9145_v33  ;;  %v1005_v52 = vadd.f32 %v989_v19, %v5652_v5  ;;  %v5837_v56 = vadd.f32 %v1076_v2, %v994_v59  ;;  %v1045_v26 = vsel %vm1042_vm4, %v9147_v29, %v9146_v18  ;;  %v9150_v61 = vld [vmem:[#allocation70_spill] sm:$0xff]  ;;  %v1070_v17 = vld [vmem:[#allocation2 + $0x2d0] sm:$0xff]  ;;  %v1068_v63 = vld [vmem:[#allocation2 + $0x2c0] sm:$0xff] }
 0x1f8   : > { %v5800_v1 = vpop.permute.xlu1 %1234  ;;  %v5810_v51 = vpop.permute.xlu0 %1232  ;;  %v5845_v42 = vadd.f32 %v1082_v3, %v1000_v60  ;;  %v1053_v5 = vsel %vm1042_vm4, %v9146_v18, %v9147_v29  ;;  %v1088_v2 = vmul.f32 %v1072_v38, %v1049_v57  ;;  %v1089_v62 = vmul.f32 %v1073_v14, %v1057_v15  ;;  %v9154_v7 = vld [vmem:[#allocation84_spill] sm:$0xff]  ;;  %v9155_v19 = vld [vmem:[#allocation73_spill] sm:$0xff]  ;;  %v1074_v14 = vld [vmem:[#allocation2 + $0x2f0] sm:$0xff] }
 0x1f9   : > { %9139 = vst [vmem:[#allocation23_spill] sm:$0xff] %v5800_v1  ;;  %v5816_v1 = vpop.permute.xlu2 %1314  ;;  %v1052_v4 = vsel %vm1042_vm4, %v9149_v24, %v9150_v61  ;;  %v1080_v48 = vmul.f32 %v1064_v16, %v1045_v26  ;;  %v1047_v60 = vsel %vm1042_vm4, %v9155_v19, %v9154_v7  ;;  %v1081_v3 = vmul.f32 %v1065_v43, %v1053_v5  ;;  %v1075_v44 = vld [vmem:[#allocation2 + $0x2f8] sm:$0xff]  ;;  %v9156_v33 = vld [vmem:[#allocation87_spill] sm:$0xff]  ;;  %v1162_v26 = vld [vmem:[#allocation2 + $0x320] sm:$0xff] }
 0x1fa   : > { %9142 = vst [vmem:[#allocation34_spill] sm:$0xff] %v5810_v51  ;;  %v1083_v51 = vmul.f32 %v1067_v45, %v1054_v46  ;;  %v5839_v46 = vadd.f32 %v1077_v9, %v995_v53  ;;  %v9152_v45 = vld [vmem:[#allocation82_spill] sm:$0xff]  ;;  %v1055_v38 = vsel %vm1042_vm4, %v9154_v7, %v9155_v19  ;;  %v9157_v57 = vld [vmem:[#allocation76_spill] sm:$0xff]  ;;  %v1079_v29 = vmul.f32 %v1063_v0, %v1052_v4 }
 0x1fb   : > { %9143 = vst [vmem:[#allocation22_spill] sm:$0xff] %v5816_v1  ;;  %v1048_v59 = vsel %vm1042_vm4, %v9153_v28, %v9152_v45  ;;  %v1056_v53 = vsel %vm1042_vm4, %v9152_v45, %v9153_v28  ;;  %v1050_v15 = vsel %vm1042_vm4, %v9157_v57, %v9156_v33  ;;  %v1058_v16 = vsel %vm1042_vm4, %v9156_v33, %v9157_v57  ;;  %v1163_v43 = vld [vmem:[#allocation2 + $0x328] sm:$0xff]  ;;  %v9161_v33 = vld [vmem:[#allocation93_spill] sm:$0xff] }
 0x1fc   : > { %v5847_v54 = vadd.f32 %v1083_v51, %v1001_v12  ;;  %v1044_v51 = vsel %vm1042_vm4, %v9150_v61, %v9149_v24  ;;  %v1069_v12 = vld [vmem:[#allocation2 + $0x2c8] sm:$0xff]  ;;  %v1086_v28 = vmul.f32 %v1070_v17, %v1048_v59  ;;  %v1087_v7 = vmul.f32 %v1071_v40, %v1056_v53 }
 0x1fd   : > { %v1078_v18 = vmul.f32 %v1062_v34, %v1044_v51  ;;  %v9158_v5 = vld [vmem:[#allocation86_spill] sm:$0xff]  ;;  %v1084_v19 = vmul.f32 %v1068_v63, %v1047_v60  ;;  %v5904_v51 = vadd.f32 %v1088_v2, %v1006_v50  ;;  %v1085_v4 = vmul.f32 %v1069_v12, %v1055_v38  ;;  %v1169_v38 = vld [vmem:[#allocation2 + $0x358] sm:$0xff] }
 0x1fe   : > { %v9159_v24 = vld [vmem:[#allocation90_spill] sm:$0xff]  ;;  %v1090_v57 = vmul.f32 %v1074_v14, %v1050_v15  ;;  %v1091_v1 = vmul.f32 %v1075_v44, %v1058_v16  ;;  %v5906_v49 = vadd.f32 %v1089_v62, %v1007_v23  ;;  %v1096_v41 = vadd.f32 %v1080_v48, %v998_v6  ;;  %v1161_v48 = vld [vmem:[#allocation2 + $0x318] sm:$0xff] }
 0x1ff   : > { %v1143_v61 = vsel %vm1140_vm5, %v9159_v24, %v9158_v5  ;;  %v1151_v45 = vsel %vm1140_vm5, %v9158_v5, %v9159_v24  ;;  %v1097_v40 = vadd.f32 %v1081_v3, %v999_v37  ;;  %v5909_v59 = vadd.f32 %v1078_v18, %v5743_v32  ;;  %v9164_v3 = vld [vmem:[#allocation96_spill] sm:$0xff]  ;;  %v1159_v15 = vld [vmem:[#allocation2 + $0x308] sm:$0xff]  ;;  %v1166_v18 = vld [vmem:[#allocation2 + $0x340] sm:$0xff] }
 0x200   : > { %v5854_v9 = vpop.permute.xlu1 %1306  ;;  %v5864_v36 = vpop.permute.xlu0 %1304  ;;  %v1178_v5 = vmul.f32 %v1162_v26, %v1143_v61  ;;  %v1179_v17 = vmul.f32 %v1163_v43, %v1151_v45  ;;  %v5912_v53 = vadd.f32 %v1079_v29, %v5745_v30  ;;  %v1102_v50 = vadd.f32 %v1086_v28, %v1004_v35  ;;  %v1160_v35 = vld [vmem:[#allocation2 + $0x310] sm:$0xff]  ;;  %v1167_v29 = vld [vmem:[#allocation2 + $0x348] sm:$0xff]  ;;  %v9166_v26 = vld [vmem:[#allocation80_spill] sm:$0xff] }
 0x201   : > { %9148 = vst [vmem:[#allocation36_spill] sm:$0xff] %v5854_v9  ;;  %v1168_v9 = vld [vmem:[#allocation2 + $0x350] sm:$0xff]  ;;  %v5902_v0 = vpop.permute.xlu2 %1320  ;;  %v1103_v2 = vadd.f32 %v1087_v7, %v1005_v52  ;;  %v1100_v12 = vadd.f32 %v1084_v19, %v5755_v31  ;;  %v5924_v32 = vadd.f32 %v1085_v4, %v5766_v10  ;;  %v5927_v30 = vadd.f32 %v1090_v57, %v5814_v58  ;;  %v9162_v52 = vld [vmem:[#allocation94_spill] sm:$0xff]  ;;  %v9163_v31 = vld [vmem:[#allocation77_spill] sm:$0xff] }
 0x202   : > { %9151 = vst [vmem:[#allocation25_spill] sm:$0xff] %v5864_v36  ;;  %v9160_v36 = vld [vmem:[#allocation89_spill] sm:$0xff]  ;;  %v5930_v23 = vadd.f32 %v1091_v1, %v5819_v47  ;;  %v5936_v62 = vadd.f32 %v1178_v5, %v1096_v41  ;;  %v1150_v10 = vsel %vm1140_vm5, %v9162_v52, %v9163_v31  ;;  %v1145_v43 = vsel %vm1140_vm5, %v9166_v26, %v5364_v39  ;;  %v1164_v61 = vld [vmem:[#allocation2 + $0x330] sm:$0xff]  ;;  %v9167_v45 = vld [vmem:[#allocation88_spill] sm:$0xff] }
 0x203   : > { %v1146_v34 = vsel %vm1140_vm5, %v9161_v33, %v9160_v36  ;;  %v1154_v6 = vsel %vm1140_vm5, %v9160_v36, %v9161_v33  ;;  %v5938_v36 = vadd.f32 %v1179_v17, %v1097_v40  ;;  %v1158_v58 = vld [vmem:[#allocation2 + $0x300] sm:$0xff]  ;;  %v1153_v24 = vsel %vm1140_vm5, %v5364_v39, %v9166_v26  ;;  %v1165_v33 = vld [vmem:[#allocation2 + $0x338] sm:$0xff]  ;;  %v1172_v4 = vld [vmem:[#allocation2 + $0x370] sm:$0xff] }
 0x204   : > { %v1184_v63 = vmul.f32 %v1168_v9, %v1146_v34  ;;  %v1142_v9 = vsel %vm1140_vm5, %v9163_v31, %v9162_v52  ;;  %v9165_v47 = vld [vmem:[#allocation85_spill] sm:$0xff]  ;;  %v1185_v14 = vmul.f32 %v1169_v38, %v1154_v6  ;;  %v1144_v28 = vsel %vm1140_vm5, %v9167_v45, %v5377_v55  ;;  %v9168_v57 = vld [vmem:[#allocation83_spill] sm:$0xff]  ;;  %v1173_v17 = vld [vmem:[#allocation2 + $0x378] sm:$0xff] }
 0x205   : > { %v1141_v1 = vsel %vm1140_vm5, %v9165_v47, %v9164_v3  ;;  %v1149_v41 = vsel %vm1140_vm5, %v9164_v3, %v9165_v47  ;;  %v1176_v16 = vmul.f32 %v1160_v35, %v1142_v9  ;;  %v1177_v7 = vmul.f32 %v1161_v48, %v1150_v10  ;;  %v9169_v38 = vld [vmem:[#allocation91_spill] sm:$0xff]  ;;  %v1259_v47 = vld [vmem:[#allocation2 + $0x398] sm:$0xff] }
 0x206   : > { %v5948_v44 = vadd.f32 %v1184_v63, %v1102_v50  ;;  %v1174_v19 = vmul.f32 %v1158_v58, %v1141_v1  ;;  %v1152_v34 = vsel %vm1140_vm5, %v5377_v55, %v9167_v45  ;;  %v1148_v39 = vsel %vm1140_vm5, %v9168_v57, %v5444_v22  ;;  %v1170_v63 = vld [vmem:[#allocation2 + $0x360] sm:$0xff]  ;;  %v1171_v50 = vld [vmem:[#allocation2 + $0x368] sm:$0xff]  ;;  %v1258_v3 = vld [vmem:[#allocation2 + $0x390] sm:$0xff] }
 0x207   : > { %v1175_v5 = vmul.f32 %v1159_v15, %v1149_v41  ;;  %v1156_v40 = vsel %vm1140_vm5, %v5444_v22, %v9168_v57  ;;  %v1147_v55 = vsel %vm1140_vm5, %v9169_v38, %v5454_v8  ;;  %v1155_v6 = vsel %vm1140_vm5, %v5454_v8, %v9169_v38  ;;  %v9172_v57 = vld [vmem:[#allocation26_spill] sm:$0xff] }
 0x208   : > { %v5914_v60 = vpop.permute.xlu1 %1312  ;;  %v5921_v37 = vpop.permute.xlu0 %1310  ;;  %v5989_v52 = vadd.f32 %v1185_v14, %v1103_v2  ;;  %v1182_v31 = vmul.f32 %v1166_v18, %v1145_v43  ;;  %v1183_v9 = vmul.f32 %v1167_v29, %v1153_v24  ;;  %v1180_v48 = vmul.f32 %v1164_v61, %v1144_v28  ;;  %v1264_v18 = vld [vmem:[#allocation2 + $0x3c0] sm:$0xff]  ;;  %v1265_v28 = vld [vmem:[#allocation2 + $0x3c8] sm:$0xff] }
 0x209   : > { %v5987_v35 = vpop.permute.xlu2 %1326  ;;  %v1181_v10 = vmul.f32 %v1165_v33, %v1152_v34  ;;  %v1188_v58 = vmul.f32 %v1172_v4, %v1148_v39  ;;  %v1240_v1 = vsel %vm1238_vm6, %v5521_v27, %v5476_v25  ;;  %v1248_v8 = vsel %vm1238_vm6, %v5476_v25, %v5521_v27  ;;  %v1256_v4 = vld [vmem:[#allocation2 + $0x380] sm:$0xff]  ;;  %v9174_v39 = vld [vmem:[#allocation95_spill] sm:$0xff] }
 0x20a   : > { %v1189_v14 = vmul.f32 %v1173_v17, %v1156_v40  ;;  %v1186_v15 = vmul.f32 %v1170_v63, %v1147_v55  ;;  %v1187_v41 = vmul.f32 %v1171_v50, %v1155_v6  ;;  %v1243_v29 = vsel %vm1238_vm6, %v5610_v20, %v5574_v11  ;;  %v1268_v17 = vld [vmem:[#allocation2 + $0x3e0] sm:$0xff]  ;;  %v9175_v40 = vld [vmem:[#allocation23_spill] sm:$0xff] }
 0x20b   : > { %v1192_v26 = vadd.f32 %v1176_v16, %v5909_v59  ;;  %v1193_v43 = vadd.f32 %v1177_v7, %v5912_v53  ;;  %v6010_v24 = vadd.f32 %v1174_v19, %v5837_v56  ;;  %v6013_v25 = vadd.f32 %v1175_v5, %v5839_v46  ;;  %v9176_v63 = vld [vmem:[#allocation97_spill] sm:$0xff] }
 0x20c   : > { %v1198_v27 = vadd.f32 %v1182_v31, %v1100_v12  ;;  %v1274_v61 = vmul.f32 %v1258_v3, %v1240_v1  ;;  %v1275_v45 = vmul.f32 %v1259_v47, %v1248_v8  ;;  %v1251_v33 = vsel %vm1238_vm6, %v5574_v11, %v5610_v20  ;;  %v9170_v11 = vld [vmem:[#allocation92_spill] sm:$0xff]  ;;  %v1257_v47 = vld [vmem:[#allocation2 + $0x388] sm:$0xff] }
 0x20d   : > { %v1199_v34 = vadd.f32 %v1183_v9, %v5924_v32  ;;  %v6021_v59 = vadd.f32 %v1180_v48, %v5845_v42  ;;  %v6024_v56 = vadd.f32 %v1181_v10, %v5847_v54  ;;  %v1280_v53 = vmul.f32 %v1264_v18, %v1243_v29  ;;  %v1270_v42 = vld [vmem:[#allocation2 + $0x3f0] sm:$0xff]  ;;  %v1271_v32 = vld [vmem:[#allocation2 + $0x3f8] sm:$0xff]  ;;  %v9171_v54 = vld [vmem:[#allocation30_spill] sm:$0xff] }
 0x20e   : > { %v1202_v46 = vadd.f32 %v1186_v15, %v5904_v51  ;;  %v1203_v12 = vadd.f32 %v1187_v41, %v5906_v49  ;;  %v1204_v16 = vadd.f32 %v1188_v58, %v5927_v30  ;;  %v1205_v7 = vadd.f32 %v1189_v14, %v5930_v23  ;;  %v1262_v30 = vld [vmem:[#allocation2 + $0x3b0] sm:$0xff]  ;;  %v1269_v9 = vld [vmem:[#allocation2 + $0x3e8] sm:$0xff]  ;;  %v1366_v15 = vld [vmem:[#allocation2 + $0x460] sm:$0xff] }
 0x20f   : > { %v1281_v19 = vmul.f32 %v1265_v28, %v1251_v33  ;;  %v1239_v20 = vsel %vm1238_vm6, %v9170_v11, %v5659_v21  ;;  %v1246_v51 = vsel %vm1238_vm6, %v9172_v57, %v9171_v54  ;;  %v1254_v49 = vsel %vm1238_vm6, %v9171_v54, %v9172_v57  ;;  %v9173_v23 = vld [vmem:[#allocation31_spill] sm:$0xff]  ;;  %v1263_v41 = vld [vmem:[#allocation2 + $0x3b8] sm:$0xff]  ;;  %v1367_v57 = vld [vmem:[#allocation2 + $0x468] sm:$0xff] }
 0x210   : > { %v5991_v22 = vpop.permute.xlu1 %1318  ;;  %v6001_v2 = vpop.permute.xlu0 %1316  ;;  %v1242_v5 = vsel %vm1238_vm6, %v9174_v39, %v9173_v23  ;;  %v1245_v50 = vsel %vm1238_vm6, %v9176_v63, %v9175_v40  ;;  %v6052_v55 = vadd.f32 %v1274_v61, %v1192_v26  ;;  %v6054_v6 = vadd.f32 %v1275_v45, %v1193_v43  ;;  %v9177_v61 = vld [vmem:[#allocation33_spill] sm:$0xff]  ;;  %v9178_v45 = vld [vmem:[#allocation27_spill] sm:$0xff] }
 0x211   : > { %v1247_v31 = vsel %vm1238_vm6, %v5659_v21, %v9170_v11  ;;  %v1253_v48 = vsel %vm1238_vm6, %v9175_v40, %v9176_v63  ;;  %v1333_v10 = vpop.permute.xlu2 %1332  ;;  %v6067_v3 = vadd.f32 %v1280_v53, %v1198_v27  ;;  %v1272_v1 = vmul.f32 %v1256_v4, %v1239_v20  ;;  %v1260_v27 = vld [vmem:[#allocation2 + $0x3a0] sm:$0xff]  ;;  %v1266_v53 = vld [vmem:[#allocation2 + $0x3d0] sm:$0xff]  ;;  %v1267_v4 = vld [vmem:[#allocation2 + $0x3d8] sm:$0xff] }
 0x212   : > { %v1286_v8 = vmul.f32 %v1270_v42, %v1246_v51  ;;  %v1287_v14 = vmul.f32 %v1271_v32, %v1254_v49  ;;  %v1343_v21 = vsel %vm1336_vm7, %v6001_v2, %v1333_v10  ;;  %v1250_v18 = vsel %vm1238_vm6, %v9173_v23, %v9174_v39  ;;  %v9179_v11 = vld [vmem:[#allocation34_spill] sm:$0xff]  ;;  %v9180_v20 = vld [vmem:[#allocation24_spill] sm:$0xff] }
 0x213   : > { %v1278_v29 = vmul.f32 %v1262_v30, %v1242_v5  ;;  %v1284_v26 = vmul.f32 %v1268_v17, %v1245_v50  ;;  %v6076_v43 = vadd.f32 %v1281_v19, %v1199_v34  ;;  %v1241_v28 = vsel %vm1238_vm6, %v9178_v45, %v9177_v61  ;;  %v1261_v32 = vld [vmem:[#allocation2 + $0x3a8] sm:$0xff]  ;;  %v1364_v50 = vld [vmem:[#allocation2 + $0x450] sm:$0xff] }
 0x214   : > { %v1285_v33 = vmul.f32 %v1269_v9, %v1253_v48  ;;  %v1244_v42 = vsel %vm1238_vm6, %v9180_v20, %v9179_v11  ;;  %v1252_v34 = vsel %vm1238_vm6, %v9179_v11, %v9180_v20  ;;  %v6090_v19 = vmul.f32 %v1257_v47, %v1247_v31  ;;  %v1365_v31 = vld [vmem:[#allocation2 + $0x458] sm:$0xff] }
 0x215   : > { %v1249_v54 = vsel %vm1238_vm6, %v9177_v61, %v9178_v45  ;;  %v1351_v51 = vsel %vm1336_vm7, %v1333_v10, %v6001_v2  ;;  %v1382_v49 = vmul.f32 %v1366_v15, %v1343_v21  ;;  %v1279_v30 = vmul.f32 %v1263_v41, %v1250_v18  ;;  %v1362_v45 = vld [vmem:[#allocation2 + $0x440] sm:$0xff] }
 0x216   : > { %v6099_v23 = vadd.f32 %v1286_v8, %v1204_v16  ;;  %v6101_v39 = vadd.f32 %v1287_v14, %v1205_v7  ;;  %v6104_v5 = vadd.f32 %v1272_v1, %v6010_v24  ;;  %v1276_v17 = vmul.f32 %v1260_v27, %v1241_v28  ;;  %v1360_v16 = vld [vmem:[#allocation2 + $0x430] sm:$0xff]  ;;  %v9181_v7 = vld [vmem:[#allocation22_spill] sm:$0xff]  ;;  %v9182_v18 = vld [vmem:[#allocation25_spill] sm:$0xff] }
 0x217   : > { %v1282_v40 = vmul.f32 %v1266_v53, %v1244_v42  ;;  %v1283_v63 = vmul.f32 %v1267_v4, %v1252_v34  ;;  %v1300_v9 = vadd.f32 %v1284_v26, %v1202_v46  ;;  %v1277_v48 = vmul.f32 %v1261_v32, %v1249_v54  ;;  %v1363_v8 = vld [vmem:[#allocation2 + $0x448] sm:$0xff]  ;;  %v1361_v53 = vld [vmem:[#allocation2 + $0x438] sm:$0xff]  ;;  %v1358_v54 = vld [vmem:[#allocation2 + $0x420] sm:$0xff] }
 0x218   : > { %v6050_v38 = vpop.permute.xlu1 %1324  ;;  %v6065_v58 = vpop.permute.xlu0 %1322  ;;  %v1383_v47 = vmul.f32 %v1367_v57, %v1351_v51  ;;  %v1301_v2 = vadd.f32 %v1285_v33, %v1203_v12  ;;  %v1294_v10 = vadd.f32 %v1278_v29, %v6021_v59  ;;  %v1340_v24 = vsel %vm1336_vm7, %v5921_v37, %v5987_v35  ;;  %v1354_v33 = vld [vmem:[#allocation2 + $0x400] sm:$0xff] }
 0x219   : > { %v6117_v15 = vadd.f32 %v1382_v49, %v1300_v9  ;;  %v1337_v29 = vsel %vm1336_vm7, %v9182_v18, %v5902_v0  ;;  %v1298_v27 = vadd.f32 %v1282_v40, %v5948_v44  ;;  %v1299_v28 = vadd.f32 %v1283_v63, %v5989_v52 }
 0x21a   : > { %v1348_v4 = vsel %vm1336_vm7, %v5987_v35, %v5921_v37  ;;  %v1376_v11 = vmul.f32 %v1360_v16, %v1340_v24  ;;  %v1295_v32 = vadd.f32 %v1279_v30, %v6024_v56  ;;  %v1292_v44 = vadd.f32 %v1276_v17, %v5936_v62  ;;  %v9183_v37 = vld [vmem:[#allocation21_spill] sm:$0xff]  ;;  %v1359_v56 = vld [vmem:[#allocation2 + $0x428] sm:$0xff]  ;;  %v1356_v30 = vld [vmem:[#allocation2 + $0x410] sm:$0xff] }
 0x21b   : > { %v1414_v42 = vmul.f32 0.5, %v6117_v15  ;;  %v1345_v52 = vsel %vm1336_vm7, %v5902_v0, %v9182_v18  ;;  %v1339_v35 = vsel %vm1336_vm7, %v9183_v37, %v6050_v38  ;;  %v1293_v51 = vadd.f32 %v1277_v48, %v5938_v36  ;;  %v9184_v17 = vld [vmem:[#allocation36_spill] sm:$0xff]  ;;  %v1355_v24 = vld [vmem:[#allocation2 + $0x408] sm:$0xff] }
 0x21c   : > { %v1370_v49 = vmul.f32 %v1354_v33, %v1337_v29  ;;  %v1377_v40 = vmul.f32 %v1361_v53, %v1348_v4  ;;  %v1347_v62 = vsel %vm1336_vm7, %v6050_v38, %v9183_v37  ;;  %v1338_v63 = vsel %vm1336_vm7, %v9184_v17, %v6065_v58  ;;  %v1357_v38 = vld [vmem:[#allocation2 + $0x418] sm:$0xff] }
 0x21d   : > { %v6168_v48 = vadd.f32 %v1376_v11, %v1294_v10  ;;  %4182 = vtanh.f32 %v1414_v42  ;;  %v1289_v53 = vadd.f32 %v6090_v19, %v6013_v25 }
 0x21e   : > { %v6204_v11 = vadd.f32 %v1370_v49, %v6104_v5 }
 0x21f   : > { %v1408_v18 = vmul.f32 0.5, %v6168_v48 }
 0x220   : > { %v1331_v61 = vpop.permute.xlu1 %1330  ;;  %v1329_v14 = vpop.permute.xlu0 %1328 }
 0x221   : > { %v1342_v1 = vsel %vm1336_vm7, %v9181_v7, %v1331_v61  ;;  %v1350_v46 = vsel %vm1336_vm7, %v1331_v61, %v9181_v7  ;;  %v1341_v21 = vsel %vm1336_vm7, %v5914_v60, %v1329_v14  ;;  %v1349_v41 = vsel %vm1336_vm7, %v1329_v14, %v5914_v60 }
 0x222   : > { %v1380_v12 = vmul.f32 %v1364_v50, %v1342_v1  ;;  %v1381_v59 = vmul.f32 %v1365_v31, %v1350_v46  ;;  %v1378_v26 = vmul.f32 %v1362_v45, %v1341_v21  ;;  %v1379_v20 = vmul.f32 %v1363_v8, %v1349_v41  ;;  %v1368_v50 = vld [vmem:[#allocation2 + $0x470] sm:$0xff]  ;;  %v1369_v31 = vld [vmem:[#allocation2 + $0x478] sm:$0xff] }
 0x223   : > { %v6135_v60 = vadd.f32 %v1383_v47, %v1301_v2  ;;  %v1374_v47 = vmul.f32 %v1358_v54, %v1339_v35  ;;  %v1375_v2 = vmul.f32 %v1359_v56, %v1347_v62  ;;  %v1372_v7 = vmul.f32 %v1356_v30, %v1338_v63 }
 0x224   : > { %v6138_v34 = vadd.f32 %v1380_v12, %v1298_v27  ;;  %v6150_v57 = vadd.f32 %v1381_v59, %v1299_v28  ;;  %v6158_v0 = vadd.f32 %v1378_v26, %v6067_v3  ;;  %v6166_v9 = vadd.f32 %v1379_v20, %v6076_v43  ;;  %v4183_v26 = vpop.eup %4182 }
 0x225   : > { %v1415_v36 = vmul.f32 0.5, %v6135_v60  ;;  %v1346_v3 = vsel %vm1336_vm7, %v6065_v58, %v9184_v17  ;;  %v6184_v12 = vadd.f32 %v1377_v40, %v1295_v32  ;;  %v1371_v41 = vmul.f32 %v1355_v24, %v1345_v52 }
 0x226   : > { %v1412_v45 = vmul.f32 0.5, %v6138_v34  ;;  %v1413_v10 = vmul.f32 0.5, %v6150_v57  ;;  %v1410_v58 = vmul.f32 0.5, %v6158_v0  ;;  %v1373_v8 = vmul.f32 %v1357_v38, %v1346_v3 }
 0x227   : > { %4184 = vtanh.f32 %v1415_v36  ;;  %v1411_v14 = vmul.f32 0.5, %v6166_v9  ;;  %v6191_v29 = vadd.f32 %v1375_v2, %v1293_v51  ;;  %v6194_v33 = vadd.f32 %v1372_v7, %v6052_v55 }
 0x228   : > { %v1335_v61 = vpop.permute.xlu0 %1334  ;;  %4186 = vtanh.f32 %v1412_v45  ;;  %v6207_v42 = vadd.f32 %v1371_v41, %v1289_v53  ;;  %v1402_v52 = vmul.f32 0.5, %v6204_v11  ;;  %v1446_v54 = vmul.f32 0.5, %v4183_v26 }
 0x229   : > { %v1344_v16 = vsel %vm1336_vm7, %v5991_v22, %v1335_v61  ;;  %v1352_v43 = vsel %vm1336_vm7, %v1335_v61, %v5991_v22  ;;  %v6188_v22 = vadd.f32 %v1374_v47, %v1292_v44  ;;  %4188 = vtanh.f32 %v1413_v10 }
 0x22a   : > { %v1384_v1 = vmul.f32 %v1368_v50, %v1344_v16  ;;  %v1385_v46 = vmul.f32 %v1369_v31, %v1352_v43  ;;  %4190 = vtanh.f32 %v1410_v58  ;;  %v1407_v55 = vmul.f32 0.5, %v6191_v29 }
 0x22b   : > { %4192 = vtanh.f32 %v1411_v14  ;;  %v1406_v4 = vmul.f32 0.5, %v6188_v22  ;;  %v1403_v37 = vmul.f32 0.5, %v6207_v42  ;;  %v1462_v31 = vadd.f32 0.5, %v1446_v54 }
 0x22c   : > { %v1400_v59 = vadd.f32 %v1384_v1, %v6099_v23  ;;  %v1401_v21 = vadd.f32 %v1385_v46, %v6101_v39  ;;  %v1409_v23 = vmul.f32 0.5, %v6184_v12  ;;  %v6198_v39 = vadd.f32 %v1373_v8, %v6054_v6 }
 0x22d   : > { %v4185_v20 = vpop.eup %4184  ;;  %v1404_v6 = vmul.f32 0.5, %v6194_v33  ;;  %v1478_v58 = vmul.f32 %v1462_v31, %v6117_v15 }
 0x22e   : > { %v1416_v27 = vmul.f32 0.5, %v1400_v59  ;;  %v1417_v28 = vmul.f32 0.5, %v1401_v21  ;;  %v4187_v32 = vpop.eup %4186  ;;  %v1405_v25 = vmul.f32 0.5, %v6198_v39  ;;  %v1447_v51 = vmul.f32 0.5, %v4185_v20 }
 0x22f   : > { %v4189_v44 = vpop.eup %4188  ;;  %v1444_v56 = vmul.f32 0.5, %v4187_v32 }
 0x230   : > { %4194 = vtanh.f32 %v1416_v27  ;;  %v4191_v19 = vpop.eup %4190  ;;  %v1445_v17 = vmul.f32 0.5, %v4189_v44  ;;  %v1463_v3 = vadd.f32 0.5, %v1447_v51  ;;  %v1489_v51 = vld [vmem:[%s8791_s2 + $0x38] sm:$0xff] }
 0x231   : > { %4196 = vtanh.f32 %v1417_v28  ;;  %v4193_v5 = vpop.eup %4192  ;;  %v1442_v36 = vmul.f32 0.5, %v4191_v19  ;;  %v1460_v16 = vadd.f32 0.5, %v1444_v56 }
 0x232   : > { %4198 = vtanh.f32 %v1408_v18  ;;  %v1443_v61 = vmul.f32 0.5, %v4193_v5  ;;  %v1461_v7 = vadd.f32 0.5, %v1445_v17  ;;  %v1479_v18 = vmul.f32 %v1463_v3, %v6135_v60  ;;  %v1506_v17 = vpop.permute.xlu2 %1505 }
 0x233   : > { %4200 = vtanh.f32 %v1409_v23  ;;  %v1458_v8 = vadd.f32 0.5, %v1442_v36 }
 0x234   : > { %4202 = vtanh.f32 %v1406_v4  ;;  %v1459_v26 = vadd.f32 0.5, %v1443_v61  ;;  %v1477_v53 = vmul.f32 %v1461_v7, %v6150_v57  ;;  %v1511_v61 = vpop.permute.xlu0 %1510 }
 0x235   : > { %4204 = vtanh.f32 %v1407_v55  ;;  %v1474_v15 = vmul.f32 %v1458_v8, %v6158_v0 }
 0x236   : > { %v4195_v35 = vpop.eup %4194  ;;  %4206 = vtanh.f32 %v1404_v6  ;;  %v1475_v60 = vmul.f32 %v1459_v26, %v6166_v9 }
 0x237   : > { %v4197_v49 = vpop.eup %4196  ;;  %v1448_v40 = vmul.f32 0.5, %v4195_v35  ;;  %4208 = vtanh.f32 %v1405_v25  ;;  %v1488_v35 = vld [vmem:[%s8791_s2 + $0x30] sm:$0xff] }
 0x238   : > { %v4199_v62 = vpop.eup %4198  ;;  %v1449_v30 = vmul.f32 0.5, %v4197_v49  ;;  %4210 = vtanh.f32 %v1402_v52  ;;  %v1501_v49 = vpop.permute.xlu1 %1500 }
 0x239   : > { %v4201_v63 = vpop.eup %4200  ;;  %v1464_v50 = vadd.f32 0.5, %v1448_v40  ;;  %4212 = vtanh.f32 %v1403_v37  ;;  %v1440_v43 = vmul.f32 0.5, %v4199_v62 }
 0x23a   : > { %v4203_v47 = vpop.eup %4202  ;;  %v1465_v38 = vadd.f32 0.5, %v1449_v30  ;;  %v1441_v1 = vmul.f32 0.5, %v4201_v63 }
 0x23b   : > { %v4205_v45 = vpop.eup %4204  ;;  %v1480_v2 = vmul.f32 %v1464_v50, %v1400_v59  ;;  %v1438_v14 = vmul.f32 0.5, %v4203_v47  ;;  %v1476_v59 = vmul.f32 %v1460_v16, %v6138_v34  ;;  %v1456_v23 = vadd.f32 0.5, %v1440_v43 }
 0x23c   : > { %v4207_v10 = vpop.eup %4206  ;;  %v1481_v24 = vmul.f32 %v1465_v38, %v1401_v21  ;;  %v1439_v27 = vmul.f32 0.5, %v4205_v45  ;;  %v1457_v4 = vadd.f32 0.5, %v1441_v1 }
 0x23d   : > { %v4209_v46 = vpop.eup %4208  ;;  %1571 = vmatpush.msra.mxu0 %v1480_v2  ;;  %v1436_v21 = vmul.f32 0.5, %v4207_v10  ;;  %v1454_v55 = vadd.f32 0.5, %v1438_v14  ;;  %v1472_v34 = vmul.f32 %v1456_v23, %v6168_v48 }
 0x23e   : > { %v4211_v41 = vpop.eup %4210  ;;  %1612 = vmatpush.msra.mxu1 %v1481_v24  ;;  %v1437_v20 = vmul.f32 0.5, %v4209_v46  ;;  %v1455_v6 = vadd.f32 0.5, %v1439_v27  ;;  %v1473_v19 = vmul.f32 %v1457_v4, %v6184_v12  ;;  %v1482_v12 = vld [vmem:[%s8791_s2] sm:$0xff] }
 0x23f   : > { %v4213_v28 = vpop.eup %4212  ;;  %1572 = vmatpush.msra.mxu0 %v1478_v58  ;;  %v1434_v32 = vmul.f32 0.5, %v4211_v41  ;;  %v1452_v25 = vadd.f32 0.5, %v1436_v21  ;;  %v1470_v52 = vmul.f32 %v1454_v55, %v6188_v22 }
 0x240   : > { %1613 = vmatpush.msra.mxu1 %v1479_v18  ;;  %v1435_v44 = vmul.f32 0.5, %v4213_v28  ;;  %v1453_v57 = vadd.f32 0.5, %v1437_v20  ;;  %v1471_v0 = vmul.f32 %v1455_v6, %v6191_v29  ;;  %v1483_v29 = vld [vmem:[%s8791_s2 + $0x8] sm:$0xff]  ;;  %v1516_v46 = vpop.permute.xlu1 %1515  ;;  %v1526_v6 = vpop.permute.xlu0 %1525 }
 0x241   : > { %1573 = vmatpush.msra.mxu0 %v1476_v59  ;;  %v1450_v5 = vadd.f32 0.5, %v1434_v32  ;;  %v1468_v9 = vmul.f32 %v1452_v25, %v6194_v33  ;;  %v1484_v33 = vld [vmem:[%s8791_s2 + $0x10] sm:$0xff]  ;;  %v1521_v59 = vpop.permute.xlu2 %1520 }
 0x242   : > { %1614 = vmatpush.msra.mxu1 %v1477_v53  ;;  %v1451_v54 = vadd.f32 0.5, %v1435_v44  ;;  %v1469_v37 = vmul.f32 %v1453_v57, %v6198_v39  ;;  %v1485_v39 = vld [vmem:[%s8791_s2 + $0x18] sm:$0xff] }
 0x243   : > { %1574 = vmatpush.msra.mxu0 %v1474_v15  ;;  %v1466_v48 = vmul.f32 %v1450_v5, %v6204_v11  ;;  %v1486_v11 = vld [vmem:[%s8791_s2 + $0x20] sm:$0xff] }
 0x244   : > { %1615 = vmatpush.msra.mxu1 %v1475_v60  ;;  %v1467_v22 = vmul.f32 %v1451_v54, %v6207_v42  ;;  %v1487_v42 = vld [vmem:[%s8791_s2 + $0x28] sm:$0xff] }
 0x245   : > { %1575 = vmatpush.msra.mxu0 %v1472_v34 }
 0x246   : > { %1616 = vmatpush.msra.mxu1 %v1473_v19 }
 0x247   : > { %1576 = vmatpush.msra.mxu0 %v1470_v52 }
 0x248   : > { %1617 = vmatpush.msra.mxu1 %v1471_v0 }
 0x249   : > { %1577 = vmatpush.msra.mxu0 %v1468_v9 }
 0x24a   : > { %1618 = vmatpush.msra.mxu1 %v1469_v37  ;;  %v1531_v37 = vpop.permute.xlu1 %1530 }
 0x24b   : > { %1578 = vmatpush.msra.mxu0 %v1466_v48 }
 0x24c   : > { %1619 = vmatpush.msra.mxu1 %v1467_v22  ;;  %4045 = vmatmul.msk.f32.vlgmr.msra.gmra.mxu0 %vm1538_vm8, %v1482_v12 }
 0x24d   : > { %4053 = vmatmul.msk.f32.vlgmr.msra.gmra.mxu1 %vm1538_vm8, %v1482_v12 }
 0x254   : > { %4046 = vmatmul.msk.f32.gmra.mxu0 %vm1538_vm8, %v1483_v29 }
 0x255   : > { %4054 = vmatmul.msk.f32.gmra.mxu1 %vm1538_vm8, %v1483_v29 }
 0x25c   : > { %4047 = vmatmul.msk.f32.gmra.mxu0 %vm1538_vm8, %v1484_v33 }
 0x25d   : > { %4055 = vmatmul.msk.f32.gmra.mxu1 %vm1538_vm8, %v1484_v33 }
 0x264   : > { %4048 = vmatmul.msk.f32.gmra.mxu0 %vm1538_vm8, %v1485_v39 }
 0x265   : > { %4056 = vmatmul.msk.f32.gmra.mxu1 %vm1538_vm8, %v1485_v39 }
 0x26c   : > { %4049 = vmatmul.msk.f32.gmra.mxu0 %vm1538_vm8, %v1486_v11 }
 0x26d   : > { %4057 = vmatmul.msk.f32.gmra.mxu1 %vm1538_vm8, %v1486_v11 }
 0x274   : > { %4050 = vmatmul.msk.f32.gmra.mxu0 %vm1538_vm8, %v1487_v42 }
 0x275   : > { %4058 = vmatmul.msk.f32.gmra.mxu1 %vm1538_vm8, %v1487_v42 }
 0x27c   : > { %4051 = vmatmul.msk.f32.gmra.mxu0 %vm1538_vm8, %v1488_v35 }
 0x27d   : > { %4059 = vmatmul.msk.f32.gmra.mxu1 %vm1538_vm8, %v1488_v35 }
 0x284   : > { %4052 = vmatmul.msk.f32.gmra.mxu0 %vm1538_vm8, %v1489_v51 }
 0x285   : > { %4060 = vmatmul.msk.f32.gmra.mxu1 %vm1538_vm8, %v1489_v51 }
 0x2c9   : > { %v1580_v40 = vpop.f32.mrf.mxu0 }
 0x2ca   : > { %v1581_v56 = vadd.f32 %v1580_v40, %v1501_v49  ;;  %v1621_v62 = vpop.f32.mrf.mxu1 }
 0x2cb   : > { %v1622_v32 = vadd.f32 %v1621_v62, %v1501_v49 }
 0x2cc   : > { %v1645_v30 = vmul.f32 0.5, %v1581_v56 }
 0x2cd   : > { %v1646_v57 = vmul.f32 0.5, %v1622_v32 }
 0x2ce   : > { %4214 = vtanh.f32 %v1645_v30 }
 0x2d1   : > { %v1583_v63 = vpop.f32.mrf.mxu0 }
 0x2d2   : > { %v1584_v50 = vadd.f32 %v1583_v63, %v1506_v17  ;;  %v1624_v31 = vpop.f32.mrf.mxu1 }
 0x2d3   : > { %v6283_v48 = vadd.f32 %v1624_v31, %v1506_v17  ;;  %v1536_v17 = vpop.permute.xlu2 %1535 }
 0x2d4   : > { %v4215_v36 = vpop.eup %4214  ;;  %v1647_v47 = vmul.f32 0.5, %v1584_v50 }
 0x2d5   : > { %v1677_v38 = vmul.f32 0.5, %v4215_v36  ;;  %v1648_v51 = vmul.f32 0.5, %v6283_v48 }
 0x2d6   : > { %4216 = vtanh.f32 %v1647_v47 }
 0x2d7   : > { %v1693_v3 = vadd.f32 0.5, %v1677_v38 }
 0x2d9   : > { %v6267_v45 = vmul.f32 %v1693_v3, %v1581_v56  ;;  %v1586_v2 = vpop.f32.mrf.mxu0 }
 0x2da   : > { %v1587_v16 = vadd.f32 %v1586_v2, %v1511_v61  ;;  %v1627_v43 = vpop.f32.mrf.mxu1 }
 0x2db   : > { %1822 = vrot.lane.b32.xlu2 %v6267_v45, %s4563_s27  ;;  %v1628_v40 = vadd.f32 %v1627_v43, %v1511_v61 }
 0x2dc   : > { %v4217_v10 = vpop.eup %4216  ;;  %v1649_v24 = vmul.f32 0.5, %v1587_v16 }
 0x2dd   : > { %v1679_v7 = vmul.f32 0.5, %v4217_v10  ;;  %v1650_v47 = vmul.f32 0.5, %v1628_v40 }
 0x2de   : > { %4218 = vtanh.f32 %v1649_v24 }
 0x2df   : > { %v1695_v1 = vadd.f32 0.5, %v1679_v7 }
 0x2e1   : > { %v6271_v58 = vmul.f32 %v1695_v1, %v1584_v50  ;;  %v1589_v8 = vpop.f32.mrf.mxu0 }
 0x2e2   : > { %v1590_v14 = vadd.f32 %v1589_v8, %v1516_v46  ;;  %v1630_v41 = vpop.f32.mrf.mxu1 }
 0x2e3   : > { %1824 = vrot.lane.b32.xlu0 %v6271_v58, %s4563_s27  ;;  %v1631_v9 = vadd.f32 %v1630_v41, %v1516_v46 }
 0x2e4   : > { %v4219_v18 = vpop.eup %4218  ;;  %v1651_v26 = vmul.f32 0.5, %v1590_v14 }
 0x2e5   : > { %v1681_v27 = vmul.f32 0.5, %v4219_v18  ;;  %v1652_v39 = vmul.f32 0.5, %v1631_v9 }
 0x2e6   : > { %4220 = vtanh.f32 %v1651_v26 }
 0x2e7   : > { %v1697_v28 = vadd.f32 0.5, %v1681_v27 }
 0x2e9   : > { %v6275_v23 = vmul.f32 %v1697_v28, %v1587_v16  ;;  %v1592_v21 = vpop.f32.mrf.mxu0 }
 0x2ea   : > { %v1593_v53 = vadd.f32 %v1592_v21, %v1521_v59  ;;  %v1633_v4 = vpop.f32.mrf.mxu1 }
 0x2eb   : > { %1826 = vrot.lane.b32.xlu1 %v6275_v23, %s4563_s27  ;;  %v1634_v63 = vadd.f32 %v1633_v4, %v1521_v59 }
 0x2ec   : > { %v4221_v20 = vpop.eup %4220  ;;  %v1653_v15 = vmul.f32 0.5, %v1593_v53 }
 0x2ed   : > { %v1683_v55 = vmul.f32 0.5, %v4221_v20  ;;  %v1654_v61 = vmul.f32 0.5, %v1634_v63 }
 0x2ee   : > { %4222 = vtanh.f32 %v1653_v15 }
 0x2ef   : > { %v1699_v60 = vadd.f32 0.5, %v1683_v55 }
 0x2f1   : > { %v6279_v44 = vmul.f32 %v1699_v60, %v1590_v14  ;;  %v1595_v34 = vpop.f32.mrf.mxu0 }
 0x2f2   : > { %v1596_v25 = vadd.f32 %v1595_v34, %v1526_v6  ;;  %v1636_v19 = vpop.f32.mrf.mxu1 }
 0x2f3   : > { %1828 = vrot.lane.b32.xlu2 %v6279_v44, %s4563_s27  ;;  %v1637_v8 = vadd.f32 %v1636_v19, %v1526_v6 }
 0x2f4   : > { %v4223_v52 = vpop.eup %4222  ;;  %v1655_v5 = vmul.f32 0.5, %v1596_v25 }
 0x2f5   : > { %v1685_v0 = vmul.f32 0.5, %v4223_v52  ;;  %v1656_v28 = vmul.f32 0.5, %v1637_v8 }
 0x2f6   : > { %4224 = vtanh.f32 %v1655_v5 }
 0x2f7   : > { %4226 = vtanh.f32 %v1646_v57  ;;  %v1701_v54 = vadd.f32 0.5, %v1685_v0 }
 0x2f9   : > { %v6285_v12 = vmul.f32 %v1701_v54, %v1593_v53  ;;  %v1598_v22 = vpop.f32.mrf.mxu0 }
 0x2fa   : > { %v1599_v29 = vadd.f32 %v1598_v22, %v1531_v37  ;;  %v1639_v42 = vpop.f32.mrf.mxu1 }
 0x2fb   : > { %1830 = vrot.lane.b32.xlu0 %v6285_v12, %s4563_s27  ;;  %v1640_v30 = vadd.f32 %v1639_v42, %v1531_v37 }
 0x2fc   : > { %v4225_v33 = vpop.eup %4224  ;;  %v1657_v11 = vmul.f32 0.5, %v1599_v29 }
 0x2fd   : > { %v4227_v35 = vpop.eup %4226  ;;  %v1687_v49 = vmul.f32 0.5, %v4225_v33  ;;  %v1658_v2 = vmul.f32 0.5, %v1640_v30 }
 0x2fe   : > { %4228 = vtanh.f32 %v1657_v11  ;;  %v1678_v62 = vmul.f32 0.5, %v4227_v35 }
 0x2ff   : > { %v1703_v56 = vadd.f32 0.5, %v1687_v49  ;;  %4230 = vtanh.f32 %v1652_v39 }
 0x300   : > { %4232 = vtanh.f32 %v1648_v51  ;;  %v1694_v3 = vadd.f32 0.5, %v1678_v62  ;;  %v6355_v51 = vpop.permute.xlu2 %1778  ;;  %v6381_v62 = vpop.permute.xlu0 %1768 }
 0x301   : > { %v6290_v50 = vmul.f32 %v1703_v56, %v1596_v25  ;;  %v1601_v31 = vpop.f32.mrf.mxu0 }
 0x302   : > { %v1602_v36 = vadd.f32 %v1601_v31, %v1536_v17  ;;  %v1642_v24 = vpop.f32.mrf.mxu1  ;;  %v6294_v46 = vmul.f32 %v1694_v3, %v1622_v32 }
 0x303   : > { %1832 = vrot.lane.b32.xlu1 %v6290_v50, %s4563_s27  ;;  %v1643_v18 = vadd.f32 %v1642_v24, %v1536_v17 }
 0x304   : > { %v4229_v38 = vpop.eup %4228  ;;  %v1659_v16 = vmul.f32 0.5, %v1602_v36 }
 0x305   : > { %v1689_v43 = vmul.f32 0.5, %v4229_v38  ;;  %v4231_v10 = vpop.eup %4230  ;;  %v1660_v4 = vmul.f32 0.5, %v1643_v18 }
 0x306   : > { %4234 = vtanh.f32 %v1659_v16  ;;  %v4233_v7 = vpop.eup %4232  ;;  %v1684_v14 = vmul.f32 0.5, %v4231_v10 }
 0x307   : > { %4236 = vtanh.f32 %v1650_v47  ;;  %v1705_v1 = vadd.f32 0.5, %v1689_v43  ;;  %v1680_v26 = vmul.f32 0.5, %v4233_v7 }
 0x308   : > { %4238 = vtanh.f32 %v1658_v2  ;;  %v1700_v21 = vadd.f32 0.5, %v1684_v14  ;;  %v6369_v49 = vpop.permute.xlu2 %1793 }
 0x309   : > { %4240 = vtanh.f32 %v1654_v61  ;;  %v6296_v41 = vmul.f32 %v1705_v1, %v1599_v29  ;;  %v1696_v15 = vadd.f32 0.5, %v1680_v26 }
 0x30a   : > { %4242 = vtanh.f32 %v1656_v28  ;;  %v6302_v6 = vmul.f32 %v1700_v21, %v1631_v9 }
 0x30b   : > { %1838 = vrot.lane.b32.xlu1 %v6294_v46, %s4563_s27  ;;  %1834 = vrot.lane.b32.xlu2 %v6296_v41, %s4563_s27  ;;  %4244 = vtanh.f32 %v1660_v4  ;;  %v6307_v19 = vmul.f32 %v1696_v15, %v6283_v48 }
 0x30c   : > { %v4235_v27 = vpop.eup %4234 }
 0x30d   : > { %v4237_v59 = vpop.eup %4236  ;;  %v1691_v53 = vmul.f32 0.5, %v4235_v27 }
 0x30e   : > { %v4239_v20 = vpop.eup %4238  ;;  %v1682_v60 = vmul.f32 0.5, %v4237_v59 }
 0x30f   : > { %v4241_v55 = vpop.eup %4240  ;;  %v1707_v32 = vadd.f32 0.5, %v1691_v53  ;;  %v1690_v34 = vmul.f32 0.5, %v4239_v20 }
 0x310   : > { %v1686_v57 = vmul.f32 0.5, %v4241_v55  ;;  %v1698_v52 = vadd.f32 0.5, %v1682_v60  ;;  %v4243_v0 = vpop.eup %4242 }
 0x311   : > { %v6304_v25 = vmul.f32 %v1707_v32, %v1602_v36  ;;  %v1706_v5 = vadd.f32 0.5, %v1690_v34  ;;  %v4245_v9 = vpop.eup %4244  ;;  %v1688_v22 = vmul.f32 0.5, %v4243_v0 }
 0x312   : > { %v1702_v54 = vadd.f32 0.5, %v1686_v57  ;;  %v6315_v37 = vmul.f32 %v1698_v52, %v1628_v40  ;;  %v1692_v33 = vmul.f32 0.5, %v4245_v9  ;;  %v6371_v40 = vpop.permute.xlu1 %1773 }
 0x313   : > { %1844 = vrot.lane.b32.xlu1 %v6302_v6, %s4563_s27  ;;  %1836 = vrot.lane.b32.xlu0 %v6304_v25, %s4563_s27  ;;  %v6317_v48 = vmul.f32 %v1706_v5, %v1640_v30  ;;  %v1704_v39 = vadd.f32 0.5, %v1688_v22 }
 0x314   : > { %1840 = vrot.lane.b32.xlu2 %v6307_v19, %s4563_s27  ;;  %v6319_v29 = vmul.f32 %v1702_v54, %v1634_v63  ;;  %v1708_v11 = vadd.f32 0.5, %v1692_v33  ;;  %v6393_v63 = vpop.permute.xlu0 %1783 }
 0x315   : > { %v6327_v42 = vmul.f32 %v1704_v39, %v1637_v8 }
 0x316   : > { %v6329_v35 = vmul.f32 %v1708_v11, %v1643_v18 }
 0x31a   : > { %v6383_v30 = vpop.permute.xlu1 %1788 }
 0x31b   : > { %1850 = vrot.lane.b32.xlu1 %v6317_v48, %s4563_s27  ;;  %1842 = vrot.lane.b32.xlu0 %v6315_v37, %s4563_s27 }
 0x31c   : > { %1846 = vrot.lane.b32.xlu2 %v6319_v29, %s4563_s27  ;;  %v6411_v47 = vpop.permute.xlu0 %1798 }
 0x322   : > { %v6401_v31 = vpop.permute.xlu1 %1803 }
 0x323   : > { %1920 = vrot.lane.b32.xlu1 %v6271_v58, %s4564_s30  ;;  %1848 = vrot.lane.b32.xlu0 %v6327_v42, %s4563_s27 }
 0x324   : > { %1852 = vrot.lane.b32.xlu2 %v6329_v35, %s4563_s27 }
 0x32b   : > { %1926 = vrot.lane.b32.xlu1 %v6285_v12, %s4564_s30  ;;  %1918 = vrot.lane.b32.xlu0 %v6267_v45, %s4564_s30 }
 0x32c   : > { %1922 = vrot.lane.b32.xlu2 %v6275_v23, %s4564_s30 }
 0x333   : > { %1932 = vrot.lane.b32.xlu1 %v6304_v25, %s4564_s30  ;;  %1924 = vrot.lane.b32.xlu0 %v6279_v44, %s4564_s30 }
 0x334   : > { %1928 = vrot.lane.b32.xlu2 %v6290_v50, %s4564_s30 }
 0x335   : > { %v6379_v56 = vpop.permute.xlu2 %1822 }
 0x33b   : > { %1938 = vrot.lane.b32.xlu1 %v6315_v37, %s4564_s30  ;;  %1930 = vrot.lane.b32.xlu0 %v6296_v41, %s4564_s30 }
 0x33c   : > { %1934 = vrot.lane.b32.xlu2 %v6294_v46, %s4564_s30 }
 0x343   : > { %1944 = vrot.lane.b32.xlu1 %v6327_v42, %s4564_s30  ;;  %1936 = vrot.lane.b32.xlu0 %v6307_v19, %s4564_s30 }
 0x344   : > { %1940 = vrot.lane.b32.xlu2 %v6302_v6, %s4564_s30 }
 0x34b   : > { %2015 = vrot.lane.b32.xlu1 %v6267_v45, %s4565_s22  ;;  %1942 = vrot.lane.b32.xlu0 %v6319_v29, %s4564_s30 }
 0x34c   : > { %1946 = vrot.lane.b32.xlu2 %v6317_v48, %s4564_s30 }
 0x34d   : > { %v6391_v17 = vpop.permute.xlu2 %1828 }
 0x353   : > { %2021 = vrot.lane.b32.xlu1 %v6279_v44, %s4565_s22  ;;  %1948 = vrot.lane.b32.xlu0 %v6329_v35, %s4564_s30 }
 0x354   : > { %2017 = vrot.lane.b32.xlu2 %v6271_v58, %s4565_s22 }
 0x355   : > { %v6423_v2 = vpop.permute.xlu0 %1824 }
 0x35b   : > { %2027 = vrot.lane.b32.xlu1 %v6296_v41, %s4565_s22  ;;  %2019 = vrot.lane.b32.xlu0 %v6275_v23, %s4565_s22 }
 0x35c   : > { %2023 = vrot.lane.b32.xlu2 %v6285_v12, %s4565_s22 }
 0x35d   : > { %v6413_v38 = vpop.permute.xlu1 %1826 }
 0x363   : > { %2033 = vrot.lane.b32.xlu1 %v6307_v19, %s4565_s22  ;;  %2025 = vrot.lane.b32.xlu0 %v6290_v50, %s4565_s22 }
 0x364   : > { %2029 = vrot.lane.b32.xlu2 %v6304_v25, %s4565_s22 }
 0x365   : > { %v6403_v36 = vpop.permute.xlu2 %1834 }
 0x36b   : > { %2039 = vrot.lane.b32.xlu1 %v6319_v29, %s4565_s22  ;;  %2031 = vrot.lane.b32.xlu0 %v6294_v46, %s4565_s22 }
 0x36c   : > { %2035 = vrot.lane.b32.xlu2 %v6315_v37, %s4565_s22 }
 0x36d   : > { %v6435_v43 = vpop.permute.xlu0 %1830 }
 0x36e   : > { %v6415_v3 = vpop.permute.xlu2 %1840 }
 0x373   : > { %2045 = vrot.lane.b32.xlu1 %v6329_v35, %s4565_s22  ;;  %2037 = vrot.lane.b32.xlu0 %v6302_v6, %s4565_s22 }
 0x374   : > { %2041 = vrot.lane.b32.xlu2 %v6327_v42, %s4565_s22 }
 0x375   : > { %v6425_v16 = vpop.permute.xlu1 %1832 }
 0x376   : > { %v6427_v61 = vpop.permute.xlu2 %1846 }
 0x37b   : > { %2116 = vrot.lane.b32.xlu1 %v6275_v23, %s4566_s24  ;;  %2043 = vrot.lane.b32.xlu0 %v6317_v48, %s4565_s22 }
 0x37c   : > { %2112 = vrot.lane.b32.xlu2 %v6267_v45, %s4566_s24 }
 0x37d   : > { %v6437_v10 = vpop.permute.xlu1 %1838 }
 0x37e   : > { %v6439_v24 = vpop.permute.xlu2 %1852 }
 0x383   : > { %2122 = vrot.lane.b32.xlu1 %v6290_v50, %s4566_s24  ;;  %2114 = vrot.lane.b32.xlu0 %v6271_v58, %s4566_s24 }
 0x384   : > { %2118 = vrot.lane.b32.xlu2 %v6279_v44, %s4566_s24 }
 0x385   : > { %v6447_v7 = vpop.permute.xlu1 %1844  ;;  %v6449_v1 = vpop.permute.xlu0 %1836 }
 0x386   : > { %v6451_v8 = vpop.permute.xlu2 %1922 }
 0x387   : > { %9185 = vst [vmem:[#allocation39_spill] sm:$0xff] %v6451_v8  ;;  %v1737_v8 = vld [vmem:[#allocation5 + $0x258] sm:$0xff] }
 0x38b   : > { %2128 = vrot.lane.b32.xlu1 %v6294_v46, %s4566_s24  ;;  %2120 = vrot.lane.b32.xlu0 %v6285_v12, %s4566_s24 }
 0x38c   : > { %2124 = vrot.lane.b32.xlu2 %v6296_v41, %s4566_s24 }
 0x38d   : > { %v6459_v14 = vpop.permute.xlu1 %1850  ;;  %v6461_v18 = vpop.permute.xlu0 %1842 }
 0x38e   : > { %v6463_v26 = vpop.permute.xlu2 %1928 }
 0x38f   : > { %9186 = vst [vmem:[#allocation28_spill] sm:$0xff] %v6463_v26  ;;  %v1734_v26 = vld [vmem:[#allocation5 + $0x240] sm:$0xff] }
 0x393   : > { %2134 = vrot.lane.b32.xlu1 %v6302_v6, %s4566_s24  ;;  %2126 = vrot.lane.b32.xlu0 %v6304_v25, %s4566_s24 }
 0x394   : > { %2130 = vrot.lane.b32.xlu2 %v6307_v19, %s4566_s24 }
 0x395   : > { %v6471_v27 = vpop.permute.xlu1 %1920  ;;  %v6473_v28 = vpop.permute.xlu0 %1848 }
 0x396   : > { %9187 = vst [vmem:[#allocation38_spill] sm:$0xff] %v6471_v27  ;;  %v6475_v59 = vpop.permute.xlu2 %1934  ;;  %v1731_v27 = vld [vmem:[#allocation5 + $0x228] sm:$0xff] }
 0x39b   : > { %2140 = vrot.lane.b32.xlu1 %v6317_v48, %s4566_s24  ;;  %2132 = vrot.lane.b32.xlu0 %v6315_v37, %s4566_s24 }
 0x39c   : > { %2136 = vrot.lane.b32.xlu2 %v6319_v29, %s4566_s24 }
 0x39d   : > { %v6483_v21 = vpop.permute.xlu1 %1926  ;;  %v6485_v53 = vpop.permute.xlu0 %1918 }
 0x39e   : > { %9188 = vst [vmem:[#allocation42_spill] sm:$0xff] %v6483_v21  ;;  %v6487_v4 = vpop.permute.xlu2 %1940 }
 0x39f   : > { %9189 = vst [vmem:[#allocation41_spill] sm:$0xff] %v6487_v4 }
 0x3a3   : > { %2211 = vrot.lane.b32.xlu1 %v6271_v58, %s4567_s12  ;;  %2138 = vrot.lane.b32.xlu0 %v6327_v42, %s4566_s24 }
 0x3a4   : > { %2142 = vrot.lane.b32.xlu2 %v6329_v35, %s4566_s24 }
 0x3a5   : > { %v6495_v20 = vpop.permute.xlu1 %1932  ;;  %v6497_v15 = vpop.permute.xlu0 %1924 }
 0x3a6   : > { %9190 = vst [vmem:[#allocation45_spill] sm:$0xff] %v6495_v20  ;;  %v6499_v55 = vpop.permute.xlu2 %1946 }
 0x3a7   : > { %9191 = vst [vmem:[#allocation29_spill] sm:$0xff] %v6497_v15  ;;  %v1738_v15 = vld [vmem:[#allocation5 + $0x260] sm:$0xff] }
 0x3a8   : > { %9192 = vst [vmem:[#allocation46_spill] sm:$0xff] %v6499_v55  ;;  %v1736_v55 = vld [vmem:[#allocation5 + $0x250] sm:$0xff] }
 0x3a9   : > { %v1752_v4 = vmul.f32 %v1736_v55, %v6290_v50 }
 0x3ab   : > { %2217 = vrot.lane.b32.xlu1 %v6285_v12, %s4567_s12  ;;  %2209 = vrot.lane.b32.xlu0 %v6267_v45, %s4567_s12  ;;  %v6836_v55 = vadd.f32 %v6369_v49, %v1752_v4 }
 0x3ac   : > { %2213 = vrot.lane.b32.xlu2 %v6275_v23, %s4567_s12 }
 0x3ad   : > { %v6507_v32 = vpop.permute.xlu1 %1938  ;;  %v6509_v60 = vpop.permute.xlu0 %1930 }
 0x3ae   : > { %9193 = vst [vmem:[#allocation37_spill] sm:$0xff] %v6507_v32  ;;  %v6511_v34 = vpop.permute.xlu2 %2017 }
 0x3af   : > { %9194 = vst [vmem:[#allocation48_spill] sm:$0xff] %v6509_v60  ;;  %v1735_v60 = vld [vmem:[#allocation5 + $0x248] sm:$0xff] }
 0x3b0   : > { %9195 = vst [vmem:[#allocation32_spill] sm:$0xff] %v6511_v34 }
 0x3b3   : > { %2223 = vrot.lane.b32.xlu1 %v6304_v25, %s4567_s12  ;;  %2215 = vrot.lane.b32.xlu0 %v6279_v44, %s4567_s12 }
 0x3b4   : > { %2219 = vrot.lane.b32.xlu2 %v6290_v50, %s4567_s12 }
 0x3b5   : > { %v6519_v57 = vpop.permute.xlu1 %1944  ;;  %v6521_v52 = vpop.permute.xlu0 %1936 }
 0x3b6   : > { %9196 = vst [vmem:[#allocation49_spill] sm:$0xff] %v6519_v57  ;;  %v6523_v5 = vpop.permute.xlu2 %2023 }
 0x3b7   : > { %9197 = vst [vmem:[#allocation40_spill] sm:$0xff] %v6521_v52  ;;  %v1733_v52 = vld [vmem:[#allocation5 + $0x238] sm:$0xff] }
 0x3b8   : > { %9198 = vst [vmem:[#allocation51_spill] sm:$0xff] %v6523_v5 }
 0x3bb   : > { %2229 = vrot.lane.b32.xlu1 %v6315_v37, %s4567_s12  ;;  %2221 = vrot.lane.b32.xlu0 %v6296_v41, %s4567_s12 }
 0x3bc   : > { %2225 = vrot.lane.b32.xlu2 %v6294_v46, %s4567_s12 }
 0x3bd   : > { %v6531_v0 = vpop.permute.xlu1 %2015  ;;  %v6533_v54 = vpop.permute.xlu0 %1942 }
 0x3be   : > { %9199 = vst [vmem:[#allocation52_spill] sm:$0xff] %v6531_v0  ;;  %v6535_v9 = vpop.permute.xlu2 %2029 }
 0x3bf   : > { %9200 = vst [vmem:[#allocation35_spill] sm:$0xff] %v6533_v54  ;;  %v1732_v54 = vld [vmem:[#allocation5 + $0x230] sm:$0xff] }
 0x3c0   : > { %9201 = vst [vmem:[#allocation54_spill] sm:$0xff] %v6535_v9  ;;  %v1748_v32 = vmul.f32 %v1732_v54, %v6279_v44  ;;  %v1866_v54 = vsel %vm651_vm0, %v6427_v61, %v6435_v43 }
 0x3c3   : > { %2235 = vrot.lane.b32.xlu1 %v6327_v42, %s4567_s12  ;;  %2227 = vrot.lane.b32.xlu0 %v6307_v19, %s4567_s12 }
 0x3c4   : > { %2231 = vrot.lane.b32.xlu2 %v6302_v6, %s4567_s12 }
 0x3c5   : > { %v6543_v22 = vpop.permute.xlu1 %2021  ;;  %v6545_v33 = vpop.permute.xlu0 %1948 }
 0x3c6   : > { %9202 = vst [vmem:[#allocation43_spill] sm:$0xff] %v6543_v22  ;;  %v6547_v39 = vpop.permute.xlu2 %2035 }
 0x3c7   : > { %9203 = vst [vmem:[#allocation53_spill] sm:$0xff] %v6545_v33  ;;  %v1729_v33 = vld [vmem:[#allocation5 + $0x218] sm:$0xff] }
 0x3c8   : > { %9204 = vst [vmem:[#allocation57_spill] sm:$0xff] %v6547_v39 }
 0x3cb   : > { %2306 = vrot.lane.b32.xlu1 %v6267_v45, %s4568_s13  ;;  %2233 = vrot.lane.b32.xlu0 %v6319_v29, %s4567_s12 }
 0x3cc   : > { %2237 = vrot.lane.b32.xlu2 %v6317_v48, %s4567_s12 }
 0x3cd   : > { %v6555_v11 = vpop.permute.xlu1 %2027  ;;  %v6557_v9 = vpop.permute.xlu0 %2019 }
 0x3ce   : > { %9205 = vst [vmem:[#allocation60_spill] sm:$0xff] %v6555_v11  ;;  %v6559_v0 = vpop.permute.xlu2 %2041 }
 0x3cf   : > { %9206 = vst [vmem:[#allocation56_spill] sm:$0xff] %v6557_v9  ;;  %v2687_v9 = vld [vmem:[%s8796_s7 + $0x10] sm:$0xff] }
 0x3d0   : > { %9207 = vst [vmem:[#allocation61_spill] sm:$0xff] %v6559_v0 }
 0x3d3   : > { %2312 = vrot.lane.b32.xlu1 %v6279_v44, %s4568_s13  ;;  %2239 = vrot.lane.b32.xlu0 %v6329_v35, %s4567_s12 }
 0x3d4   : > { %2308 = vrot.lane.b32.xlu2 %v6271_v58, %s4568_s13 }
 0x3d5   : > { %v6567_v22 = vpop.permute.xlu1 %2033  ;;  %v6569_v5 = vpop.permute.xlu0 %2025 }
 0x3d6   : > { %9208 = vst [vmem:[#allocation44_spill] sm:$0xff] %v6567_v22  ;;  %v6571_v34 = vpop.permute.xlu2 %2112 }
 0x3d7   : > { %9209 = vst [vmem:[#allocation59_spill] sm:$0xff] %v6569_v5 }
 0x3d8   : > { %9210 = vst [vmem:[#allocation63_spill] sm:$0xff] %v6571_v34 }
 0x3db   : > { %2318 = vrot.lane.b32.xlu1 %v6296_v41, %s4568_s13  ;;  %2310 = vrot.lane.b32.xlu0 %v6275_v23, %s4568_s13 }
 0x3dc   : > { %2314 = vrot.lane.b32.xlu2 %v6285_v12, %s4568_s13 }
 0x3dd   : > { %v6579_v11 = vpop.permute.xlu1 %2039  ;;  %v6581_v0 = vpop.permute.xlu0 %2031 }
 0x3de   : > { %9211 = vst [vmem:[#allocation64_spill] sm:$0xff] %v6579_v11  ;;  %v6583_v39 = vpop.permute.xlu2 %2118 }
 0x3df   : > { %9212 = vst [vmem:[#allocation47_spill] sm:$0xff] %v6581_v0 }
 0x3e0   : > { %9213 = vst [vmem:[#allocation55_spill] sm:$0xff] %v6583_v39 }
 0x3e3   : > { %2324 = vrot.lane.b32.xlu1 %v6307_v19, %s4568_s13  ;;  %2316 = vrot.lane.b32.xlu0 %v6290_v50, %s4568_s13 }
 0x3e4   : > { %2320 = vrot.lane.b32.xlu2 %v6304_v25, %s4568_s13 }
 0x3e5   : > { %v6591_v34 = vpop.permute.xlu1 %2045  ;;  %v6593_v5 = vpop.permute.xlu0 %2037 }
 0x3e6   : > { %9214 = vst [vmem:[#allocation66_spill] sm:$0xff] %v6591_v34  ;;  %v6595_v22 = vpop.permute.xlu2 %2124 }
 0x3e7   : > { %9215 = vst [vmem:[#allocation50_spill] sm:$0xff] %v6593_v5 }
 0x3e8   : > { %9216 = vst [vmem:[#allocation67_spill] sm:$0xff] %v6595_v22 }
 0x3eb   : > { %2330 = vrot.lane.b32.xlu1 %v6319_v29, %s4568_s13  ;;  %2322 = vrot.lane.b32.xlu0 %v6294_v46, %s4568_s13 }
 0x3ec   : > { %2326 = vrot.lane.b32.xlu2 %v6315_v37, %s4568_s13 }
 0x3ed   : > { %v6603_v39 = vpop.permute.xlu1 %2116  ;;  %v6605_v0 = vpop.permute.xlu0 %2043 }
 0x3ee   : > { %9217 = vst [vmem:[#allocation58_spill] sm:$0xff] %v6603_v39  ;;  %v6607_v11 = vpop.permute.xlu2 %2130 }
 0x3ef   : > { %9218 = vst [vmem:[#allocation69_spill] sm:$0xff] %v6605_v0 }
 0x3f0   : > { %9219 = vst [vmem:[#allocation68_spill] sm:$0xff] %v6607_v11 }
 0x3f3   : > { %2336 = vrot.lane.b32.xlu1 %v6329_v35, %s4568_s13  ;;  %2328 = vrot.lane.b32.xlu0 %v6302_v6, %s4568_s13 }
 0x3f4   : > { %2332 = vrot.lane.b32.xlu2 %v6327_v42, %s4568_s13 }
 0x3f5   : > { %v6615_v22 = vpop.permute.xlu1 %2122  ;;  %v6617_v5 = vpop.permute.xlu0 %2114 }
 0x3f6   : > { %9220 = vst [vmem:[#allocation72_spill] sm:$0xff] %v6615_v22  ;;  %v6619_v34 = vpop.permute.xlu2 %2136 }
 0x3f7   : > { %9221 = vst [vmem:[#allocation71_spill] sm:$0xff] %v6617_v5 }
 0x3f8   : > { %9222 = vst [vmem:[#allocation75_spill] sm:$0xff] %v6619_v34 }
 0x3fb   : > { %2407 = vrot.lane.b32.xlu1 %v6275_v23, %s4569_s16  ;;  %2334 = vrot.lane.b32.xlu0 %v6317_v48, %s4568_s13 }
 0x3fc   : > { %2403 = vrot.lane.b32.xlu2 %v6267_v45, %s4569_s16 }
 0x3fd   : > { %v6627_v39 = vpop.permute.xlu1 %2128  ;;  %v6629_v11 = vpop.permute.xlu0 %2120 }
 0x3fe   : > { %9223 = vst [vmem:[#allocation74_spill] sm:$0xff] %v6627_v39  ;;  %v6631_v0 = vpop.permute.xlu2 %2142 }
 0x3ff   : > { %9224 = vst [vmem:[#allocation78_spill] sm:$0xff] %v6629_v11 }
 0x400   : > { %9225 = vst [vmem:[#allocation79_spill] sm:$0xff] %v6631_v0 }
 0x403   : > { %2413 = vrot.lane.b32.xlu1 %v6290_v50, %s4569_s16  ;;  %2405 = vrot.lane.b32.xlu0 %v6271_v58, %s4569_s16 }
 0x404   : > { %2409 = vrot.lane.b32.xlu2 %v6279_v44, %s4569_s16 }
 0x405   : > { %v6639_v22 = vpop.permute.xlu1 %2134  ;;  %v6641_v34 = vpop.permute.xlu0 %2126 }
 0x406   : > { %9226 = vst [vmem:[#allocation62_spill] sm:$0xff] %v6639_v22  ;;  %v6643_v5 = vpop.permute.xlu2 %2213 }
 0x407   : > { %9227 = vst [vmem:[#allocation81_spill] sm:$0xff] %v6641_v34 }
 0x408   : > { %9228 = vst [vmem:[#allocation70_spill] sm:$0xff] %v6643_v5 }
 0x40b   : > { %2419 = vrot.lane.b32.xlu1 %v6294_v46, %s4569_s16  ;;  %2411 = vrot.lane.b32.xlu0 %v6285_v12, %s4569_s16 }
 0x40c   : > { %2415 = vrot.lane.b32.xlu2 %v6296_v41, %s4569_s16 }
 0x40d   : > { %v6651_v0 = vpop.permute.xlu1 %2140  ;;  %v6653_v11 = vpop.permute.xlu0 %2132 }
 0x40e   : > { %9229 = vst [vmem:[#allocation82_spill] sm:$0xff] %v6651_v0  ;;  %v6655_v39 = vpop.permute.xlu2 %2219 }
 0x40f   : > { %9230 = vst [vmem:[#allocation65_spill] sm:$0xff] %v6653_v11 }
 0x410   : > { %9231 = vst [vmem:[#allocation84_spill] sm:$0xff] %v6655_v39 }
 0x413   : > { %2425 = vrot.lane.b32.xlu1 %v6302_v6, %s4569_s16  ;;  %2417 = vrot.lane.b32.xlu0 %v6304_v25, %s4569_s16 }
 0x414   : > { %2421 = vrot.lane.b32.xlu2 %v6307_v19, %s4569_s16 }
 0x415   : > { %v6663_v5 = vpop.permute.xlu1 %2211  ;;  %v6665_v34 = vpop.permute.xlu0 %2138 }
 0x416   : > { %9232 = vst [vmem:[#allocation73_spill] sm:$0xff] %v6663_v5  ;;  %v6667_v22 = vpop.permute.xlu2 %2225 }
 0x417   : > { %9233 = vst [vmem:[#allocation87_spill] sm:$0xff] %v6665_v34 }
 0x418   : > { %9234 = vst [vmem:[#allocation76_spill] sm:$0xff] %v6667_v22 }
 0x41b   : > { %2431 = vrot.lane.b32.xlu1 %v6317_v48, %s4569_s16  ;;  %2423 = vrot.lane.b32.xlu0 %v6315_v37, %s4569_s16 }
 0x41c   : > { %2427 = vrot.lane.b32.xlu2 %v6319_v29, %s4569_s16 }
 0x41d   : > { %v6675_v39 = vpop.permute.xlu1 %2217  ;;  %v6677_v11 = vpop.permute.xlu0 %2209 }
 0x41e   : > { %9235 = vst [vmem:[#allocation86_spill] sm:$0xff] %v6675_v39  ;;  %v6679_v0 = vpop.permute.xlu2 %2231 }
 0x41f   : > { %9236 = vst [vmem:[#allocation90_spill] sm:$0xff] %v6677_v11 }
 0x420   : > { %9237 = vst [vmem:[#allocation89_spill] sm:$0xff] %v6679_v0 }
 0x423   : > { %2502 = vrot.lane.b32.xlu1 %v6271_v58, %s4570_s25  ;;  %2429 = vrot.lane.b32.xlu0 %v6327_v42, %s4569_s16 }
 0x424   : > { %2433 = vrot.lane.b32.xlu2 %v6329_v35, %s4569_s16 }
 0x425   : > { %v6687_v5 = vpop.permute.xlu1 %2223  ;;  %v6689_v22 = vpop.permute.xlu0 %2215 }
 0x426   : > { %9238 = vst [vmem:[#allocation93_spill] sm:$0xff] %v6687_v5  ;;  %v6691_v34 = vpop.permute.xlu2 %2237 }
 0x427   : > { %9239 = vst [vmem:[#allocation94_spill] sm:$0xff] %v6689_v22 }
 0x428   : > { %9240 = vst [vmem:[#allocation77_spill] sm:$0xff] %v6691_v34 }
 0x42b   : > { %2508 = vrot.lane.b32.xlu1 %v6285_v12, %s4570_s25  ;;  %2500 = vrot.lane.b32.xlu0 %v6267_v45, %s4570_s25 }
 0x42c   : > { %2504 = vrot.lane.b32.xlu2 %v6275_v23, %s4570_s25 }
 0x42d   : > { %v6699_v39 = vpop.permute.xlu1 %2229  ;;  %v6701_v0 = vpop.permute.xlu0 %2221 }
 0x42e   : > { %9241 = vst [vmem:[#allocation96_spill] sm:$0xff] %v6699_v39  ;;  %v6703_v11 = vpop.permute.xlu2 %2308 }
 0x42f   : > { %9242 = vst [vmem:[#allocation85_spill] sm:$0xff] %v6701_v0 }
 0x430   : > { %9243 = vst [vmem:[#allocation80_spill] sm:$0xff] %v6703_v11 }
 0x433   : > { %2514 = vrot.lane.b32.xlu1 %v6304_v25, %s4570_s25  ;;  %2506 = vrot.lane.b32.xlu0 %v6279_v44, %s4570_s25 }
 0x434   : > { %2510 = vrot.lane.b32.xlu2 %v6290_v50, %s4570_s25  ;;  %v6818_v50 = vadd.f32 %v6393_v63, %v1748_v32 }
 0x435   : > { %v6711_v5 = vpop.permute.xlu1 %2235  ;;  %v6713_v34 = vpop.permute.xlu0 %2227 }
 0x436   : > { %9244 = vst [vmem:[#allocation88_spill] sm:$0xff] %v6711_v5  ;;  %v6715_v22 = vpop.permute.xlu2 %2314 }
 0x437   : > { %9245 = vst [vmem:[#allocation83_spill] sm:$0xff] %v6713_v34 }
 0x438   : > { %9246 = vst [vmem:[#allocation91_spill] sm:$0xff] %v6715_v22 }
 0x43b   : > { %2520 = vrot.lane.b32.xlu1 %v6315_v37, %s4570_s25  ;;  %2512 = vrot.lane.b32.xlu0 %v6296_v41, %s4570_s25 }
 0x43c   : > { %2516 = vrot.lane.b32.xlu2 %v6294_v46, %s4570_s25 }
 0x43d   : > { %v6723_v11 = vpop.permute.xlu1 %2306  ;;  %v6725_v0 = vpop.permute.xlu0 %2233 }
 0x43e   : > { %9247 = vst [vmem:[#allocation92_spill] sm:$0xff] %v6723_v11  ;;  %v6727_v39 = vpop.permute.xlu2 %2320  ;;  %v2685_v11 = vld [vmem:[%s8796_s7] sm:$0xff] }
 0x43f   : > { %9248 = vst [vmem:[#allocation30_spill] sm:$0xff] %v6725_v0 }
 0x440   : > { %9249 = vst [vmem:[#allocation26_spill] sm:$0xff] %v6727_v39 }
 0x443   : > { %2526 = vrot.lane.b32.xlu1 %v6327_v42, %s4570_s25  ;;  %2518 = vrot.lane.b32.xlu0 %v6307_v19, %s4570_s25 }
 0x444   : > { %2522 = vrot.lane.b32.xlu2 %v6302_v6, %s4570_s25 }
 0x445   : > { %v6735_v22 = vpop.permute.xlu1 %2312  ;;  %v6737_v34 = vpop.permute.xlu0 %2239 }
 0x446   : > { %9250 = vst [vmem:[#allocation31_spill] sm:$0xff] %v6735_v22  ;;  %v6739_v5 = vpop.permute.xlu2 %2326 }
 0x447   : > { %9251 = vst [vmem:[#allocation95_spill] sm:$0xff] %v6737_v34 }
 0x448   : > { %9252 = vst [vmem:[#allocation23_spill] sm:$0xff] %v6739_v5  ;;  %v2688_v5 = vld [vmem:[%s8796_s7 + $0x18] sm:$0xff] }
 0x44b   : > { %2695 = vperm.xlu1 %4180, %v2685_v11   ;;  %2524 = vrot.lane.b32.xlu0 %v6319_v29, %s4570_s25  ;;  %v2686_v11 = vld [vmem:[%s8796_s7 + $0x8] sm:$0xff] }
 0x44c   : > { %2528 = vrot.lane.b32.xlu2 %v6317_v48, %s4570_s25 }
 0x44d   : > { %v6748_v39 = vpop.permute.xlu1 %2318  ;;  %v6750_v0 = vpop.permute.xlu0 %2310 }
 0x44e   : > { %9253 = vst [vmem:[#allocation97_spill] sm:$0xff] %v6748_v39  ;;  %v6752_v22 = vpop.permute.xlu2 %2332 }
 0x44f   : > { %9254 = vst [vmem:[#allocation33_spill] sm:$0xff] %v6750_v0 }
 0x450   : > { %9255 = vst [vmem:[#allocation27_spill] sm:$0xff] %v6752_v22  ;;  %v2691_v22 = vld [vmem:[%s8796_s7 + $0x30] sm:$0xff] }
 0x453   : > { %2710 = vperm.xlu1 %4180, %v2688_v5   ;;  %2530 = vrot.lane.b32.xlu0 %v6329_v35, %s4570_s25  ;;  %v2689_v5 = vld [vmem:[%s8796_s7 + $0x20] sm:$0xff] }
 0x454   : > { %2700 = vperm.xlu2 %4181, %v2686_v11   ;;  %v1726_v11 = vld [vmem:[#allocation5 + $0x200] sm:$0xff] }
 0x455   : > { %v6762_v34 = vpop.permute.xlu1 %2324  ;;  %v6764_v39 = vpop.permute.xlu0 %2316 }
 0x456   : > { %9256 = vst [vmem:[#allocation34_spill] sm:$0xff] %v6762_v34  ;;  %v6766_v0 = vpop.permute.xlu2 %2403  ;;  %v1727_v34 = vld [vmem:[#allocation5 + $0x208] sm:$0xff] }
 0x457   : > { %9257 = vst [vmem:[#allocation24_spill] sm:$0xff] %v6764_v39  ;;  %v1728_v39 = vld [vmem:[#allocation5 + $0x210] sm:$0xff] }
 0x458   : > { %9258 = vst [vmem:[#allocation22_spill] sm:$0xff] %v6766_v0  ;;  %v1730_v0 = vld [vmem:[#allocation5 + $0x220] sm:$0xff] }
 0x45b   : > { %2725 = vperm.xlu1 %4180, %v2691_v22   ;;  %2705 = vperm.xlu0 %4179, %v2687_v9   ;;  %v1744_v9 = vmul.f32 %v1728_v39, %v6271_v58  ;;  %v1743_v22 = vmul.f32 %v1727_v34, %v6294_v46  ;;  %v1746_v58 = vmul.f32 %v1730_v0, %v6275_v23 }
 0x45c   : > { %2715 = vperm.xlu2 %4181, %v2689_v5   ;;  %v1742_v5 = vmul.f32 %v1726_v11, %v6267_v45  ;;  %v1747_v46 = vmul.f32 %v1731_v27, %v6315_v37  ;;  %v2692_v45 = vld [vmem:[%s8796_s7 + $0x38] sm:$0xff]  ;;  %v1750_v34 = vmul.f32 %v1734_v26, %v6285_v12  ;;  %v1751_v39 = vmul.f32 %v1735_v60, %v6319_v29  ;;  %v1739_v12 = vld [vmem:[#allocation5 + $0x268] sm:$0xff] }
 0x45d   : > { %v6777_v20 = vpop.permute.xlu1 %2330  ;;  %v6779_v21 = vpop.permute.xlu0 %2322  ;;  %v1749_v11 = vmul.f32 %v1733_v52, %v6302_v6  ;;  %v6805_v23 = vadd.f32 %v6371_v40, %v1744_v9  ;;  %v6808_v44 = vadd.f32 %v6381_v62, %v1743_v22  ;;  %v1754_v29 = vmul.f32 %v1738_v15, %v6296_v41  ;;  %v1741_v15 = vld [vmem:[#allocation5 + $0x278] sm:$0xff]  ;;  %v1871_v9 = vld [vmem:[#allocation5 + $0x8] sm:$0xff] }
 0x45e   : > { %9259 = vst [vmem:[#allocation25_spill] sm:$0xff] %v6777_v20  ;;  %v6781_v57 = vpop.permute.xlu2 %2409  ;;  %v2953_v20 = vld [vmem:[%s9262_s29 + $0x8] sm:$0xff]  ;;  %v6811_v37 = vadd.f32 %v6381_v62, %v1742_v5  ;;  %v6824_v26 = vadd.f32 %v6355_v51, %v1747_v46  ;;  %v1814_v41 = vadd.f32 %v6383_v30, %v1750_v34  ;;  %v1855_v60 = vsel %vm651_vm0, %v6423_v2, %v6415_v3  ;;  %v1877_v34 = vld [vmem:[#allocation5 + $0x38] sm:$0xff] }
 0x45f   : > { %9260 = vst [vmem:[#allocation21_spill] sm:$0xff] %v6779_v21  ;;  %v2690_v21 = vld [vmem:[%s8796_s7 + $0x28] sm:$0xff]  ;;  %v1755_v52 = vmul.f32 %v1739_v12, %v6317_v48  ;;  %v1858_v0 = vsel %vm651_vm0, %v6435_v43, %v6427_v61  ;;  %v2956_v48 = vld [vmem:[%s9262_s29 + $0x20] sm:$0xff]  ;;  %v1854_v61 = vsel %vm651_vm0, %v6379_v56, %v6437_v10  ;;  %v1876_v43 = vld [vmem:[#allocation5 + $0x30] sm:$0xff]  ;;  %v1865_v22 = vsel %vm651_vm0, %v6447_v7, %v6391_v17 }
 0x460   : > { %9261 = vst [vmem:[#allocation36_spill] sm:$0xff] %v6781_v57  ;;  %v1745_v57 = vmul.f32 %v1729_v33, %v6307_v19  ;;  %v1753_v19 = vmul.f32 %v1737_v8, %v6327_v42  ;;  %v1740_v42 = vld [vmem:[#allocation5 + $0x270] sm:$0xff]  ;;  %v6821_v8 = vadd.f32 %v6355_v51, %v1746_v58  ;;  %v1873_v51 = vld [vmem:[#allocation5 + $0x18] sm:$0xff]  ;;  %v1870_v33 = vld [vmem:[#allocation5] sm:$0xff]  ;;  %v1757_v5 = vmul.f32 %v1741_v15, %v6329_v35 }
 0x461   : > { %v2954_v58 = vld [vmem:[%s9262_s29 + $0x10] sm:$0xff]  ;;  %v1861_v12 = vsel %vm651_vm0, %v6449_v1, %v6439_v24 }
 0x462   : > { %v6815_v6 = vadd.f32 %v6371_v40, %v1745_v57  ;;  %v1815_v40 = vadd.f32 %v6383_v30, %v1751_v39  ;;  %v1863_v30 = vsel %vm651_vm0, %v6415_v3, %v6423_v2  ;;  %v1878_v57 = vld [vmem:[#allocation5 + $0x40] sm:$0xff]  ;;  %v6850_v4 = vadd.f32 %v6369_v49, %v1753_v19  ;;  %v1885_v19 = vld [vmem:[#allocation5 + $0x78] sm:$0xff] }
 0x463   : > { %2967 = vperm.xlu1 %4180, %v2953_v20   ;;  %2720 = vperm.xlu0 %4179, %v2690_v21   ;;  %v1872_v21 = vld [vmem:[#allocation5 + $0x10] sm:$0xff]  ;;  %v6833_v20 = vadd.f32 %v6393_v63, %v1749_v11  ;;  %v1879_v63 = vld [vmem:[#allocation5 + $0x48] sm:$0xff]  ;;  %v1756_v3 = vmul.f32 %v1740_v42, %v6304_v25  ;;  %v6862_v2 = vadd.f32 %v6411_v47, %v1754_v29  ;;  %v2952_v49 = vld [vmem:[%s9262_s29] sm:$0xff] }
 0x464   : > { %2730 = vperm.xlu2 %4181, %v2692_v45   ;;  %v1862_v25 = vsel %vm651_vm0, %v6437_v10, %v6379_v56  ;;  %v1888_v46 = vmul.f32 %v1872_v21, %v1863_v30  ;;  %v1889_v45 = vmul.f32 %v1873_v51, %v1855_v60  ;;  %v1857_v56 = vsel %vm651_vm0, %v6391_v17, %v6447_v7  ;;  %v1884_v10 = vld [vmem:[#allocation5 + $0x70] sm:$0xff]  ;;  %v1882_v51 = vld [vmem:[#allocation5 + $0x60] sm:$0xff]  ;;  %v1883_v60 = vld [vmem:[#allocation5 + $0x68] sm:$0xff] }
 0x465   : > { %v6826_v27 = vpop.permute.xlu1 %2336  ;;  %v6828_v62 = vpop.permute.xlu0 %2328  ;;  %v1869_v39 = vsel %vm651_vm0, %v6439_v24, %v6449_v1  ;;  %v1894_v11 = vmul.f32 %v1878_v57, %v1866_v54  ;;  %v1895_v35 = vmul.f32 %v1879_v63, %v1858_v0  ;;  %v1886_v29 = vmul.f32 %v1870_v33, %v1862_v25 }
 0x466   : > { %v6838_v32 = vpop.permute.xlu2 %2415  ;;  %v1887_v42 = vmul.f32 %v1871_v9, %v1854_v61  ;;  %v1892_v21 = vmul.f32 %v1876_v43, %v1865_v22  ;;  %v1819_v17 = vadd.f32 %v6411_v47, %v1755_v52  ;;  %v1893_v7 = vmul.f32 %v1877_v34, %v1857_v56  ;;  %v1875_v9 = vld [vmem:[#allocation5 + $0x28] sm:$0xff] }
 0x467   : > { %9263 = vst [vmem:[#allocation98_spill] sm:$0xff] %v6838_v32  ;;  %v1900_v15 = vmul.f32 %v1884_v10, %v1869_v39  ;;  %v1860_v30 = vsel %vm651_vm0, %v6403_v36, %v6459_v14  ;;  %v1868_v24 = vsel %vm651_vm0, %v6459_v14, %v6403_v36  ;;  %v6912_v47 = vadd.f32 %v1888_v46, %v6805_v23  ;;  %v1874_v36 = vld [vmem:[#allocation5 + $0x20] sm:$0xff] }
 0x468   : > { %v1820_v63 = vadd.f32 %v6401_v31, %v1756_v3  ;;  %v1821_v52 = vadd.f32 %v6401_v31, %v1757_v5  ;;  %v1901_v0 = vmul.f32 %v1885_v19, %v1861_v12  ;;  %v6917_v54 = vadd.f32 %v1889_v45, %v6815_v6  ;;  %v1880_v5 = vld [vmem:[#allocation5 + $0x50] sm:$0xff]  ;;  %v1967_v46 = vld [vmem:[#allocation5 + $0x80] sm:$0xff]  ;;  %v1968_v45 = vld [vmem:[#allocation5 + $0x88] sm:$0xff] }
 0x469   : > { %v6919_v33 = vadd.f32 %v1894_v11, %v1814_v41  ;;  %v1864_v14 = vsel %vm651_vm0, %v6461_v18, %v6413_v38  ;;  %v1902_v23 = vadd.f32 %v1886_v29, %v6811_v37  ;;  %v1899_v3 = vmul.f32 %v1883_v60, %v1860_v30  ;;  %v2959_v41 = vld [vmem:[%s9262_s29 + $0x38] sm:$0xff]  ;;  %v1973_v11 = vld [vmem:[#allocation5 + $0xb0] sm:$0xff] }
 0x46a   : > { %v1856_v31 = vsel %vm651_vm0, %v6413_v38, %v6461_v18  ;;  %v1903_v37 = vadd.f32 %v1887_v42, %v6808_v44  ;;  %v1908_v61 = vadd.f32 %v1892_v21, %v6818_v50  ;;  %v1909_v25 = vadd.f32 %v1893_v7, %v6833_v20  ;;  %v2957_v38 = vld [vmem:[%s9262_s29 + $0x28] sm:$0xff]  ;;  %v9267_v21 = vld [vmem:[#allocation37_spill] sm:$0xff] }
 0x46b   : > { %2982 = vperm.xlu1 %4180, %v2956_v48   ;;  %2962 = vperm.xlu0 %4179, %v2952_v49   ;;  %v6921_v48 = vadd.f32 %v1895_v35, %v1815_v40  ;;  %v1898_v49 = vmul.f32 %v1882_v51, %v1868_v24  ;;  %v2955_v40 = vld [vmem:[%s9262_s29 + $0x18] sm:$0xff]  ;;  %v6943_v43 = vadd.f32 %v1900_v15, %v1820_v63  ;;  %v9266_v35 = vld [vmem:[#allocation29_spill] sm:$0xff]  ;;  %v1972_v42 = vld [vmem:[#allocation5 + $0xa8] sm:$0xff] }
 0x46c   : > { %2972 = vperm.xlu2 %4181, %v2954_v58   ;;  %v6948_v18 = vadd.f32 %v1901_v0, %v1821_v52  ;;  %v1890_v22 = vmul.f32 %v1874_v36, %v1864_v14  ;;  %v1881_v58 = vld [vmem:[#allocation5 + $0x58] sm:$0xff]  ;;  %v1859_v44 = vsel %vm651_vm0, %v6425_v16, %v6473_v28  ;;  %v1867_v50 = vsel %vm651_vm0, %v6473_v28, %v6425_v16  ;;  %v9265_v28 = vld [vmem:[#allocation41_spill] sm:$0xff]  ;;  %v1980_v63 = vld [vmem:[#allocation5 + $0xe8] sm:$0xff] }
 0x46d   : > { %v6907_v1 = vpop.permute.xlu1 %2407  ;;  %v6909_v57 = vpop.permute.xlu0 %2334  ;;  %v1891_v20 = vmul.f32 %v1875_v9, %v1856_v31  ;;  %v1950_v34 = vsel %vm748_vm1, %v6485_v53, %v6475_v59  ;;  %v1958_v56 = vsel %vm748_vm1, %v6475_v59, %v6485_v53  ;;  %v1914_v10 = vadd.f32 %v1898_v49, %v6862_v2  ;;  %v1974_v16 = vld [vmem:[#allocation5 + $0xb8] sm:$0xff]  ;;  %v1971_v53 = vld [vmem:[#allocation5 + $0xa0] sm:$0xff]  ;;  %v9268_v2 = vld [vmem:[#allocation39_spill] sm:$0xff] }
 0x46e   : > { %9264 = vst [vmem:[#allocation99_spill] sm:$0xff] %v6907_v1  ;;  %v6932_v6 = vpop.permute.xlu2 %2421  ;;  %v1915_v39 = vadd.f32 %v1899_v3, %v1819_v17  ;;  %v1953_v19 = vsel %vm748_vm1, %v9266_v35, %v9265_v28  ;;  %v1961_v12 = vsel %vm748_vm1, %v9265_v28, %v9266_v35  ;;  %v1896_v29 = vmul.f32 %v1880_v5, %v1867_v50  ;;  %v1979_v24 = vld [vmem:[#allocation5 + $0xe0] sm:$0xff]  ;;  %v9270_v52 = vld [vmem:[#allocation46_spill] sm:$0xff]  ;;  %v9271_v0 = vld [vmem:[#allocation48_spill] sm:$0xff] }
 0x46f   : > { %v1897_v59 = vmul.f32 %v1881_v58, %v1859_v44  ;;  %v1952_v17 = vsel %vm748_vm1, %v9268_v2, %v9267_v21  ;;  %v1960_v7 = vsel %vm748_vm1, %v9267_v21, %v9268_v2  ;;  %v1983_v60 = vmul.f32 %v1967_v46, %v1958_v56  ;;  %v1977_v31 = vld [vmem:[#allocation5 + $0xd0] sm:$0xff]  ;;  %v1978_v50 = vld [vmem:[#allocation5 + $0xd8] sm:$0xff]  ;;  %v9274_v28 = vld [vmem:[#allocation38_spill] sm:$0xff] }
 0x470   : > { %v1984_v30 = vmul.f32 %v1968_v45, %v1950_v34  ;;  %v1956_v36 = vsel %vm748_vm1, %v9271_v0, %v9270_v52  ;;  %v1964_v14 = vsel %vm748_vm1, %v9270_v52, %v9271_v0  ;;  %v1906_v49 = vadd.f32 %v1890_v22, %v6821_v8  ;;  %v2958_v8 = vld [vmem:[%s9262_s29 + $0x30] sm:$0xff]  ;;  %v9275_v35 = vld [vmem:[#allocation40_spill] sm:$0xff]  ;;  %v1976_v21 = vld [vmem:[#allocation5 + $0xc8] sm:$0xff] }
 0x471   : > { %v1989_v3 = vmul.f32 %v1973_v11, %v1961_v12  ;;  %v1990_v9 = vmul.f32 %v1974_v16, %v1953_v19  ;;  %v1907_v5 = vadd.f32 %v1891_v20, %v6824_v26  ;;  %v1987_v58 = vmul.f32 %v1971_v53, %v1960_v7  ;;  %v1969_v16 = vld [vmem:[#allocation5 + $0x90] sm:$0xff]  ;;  %v9279_v52 = vld [vmem:[#allocation53_spill] sm:$0xff] }
 0x472   : > { %v1988_v44 = vmul.f32 %v1972_v42, %v1952_v17  ;;  %v1912_v22 = vadd.f32 %v1896_v29, %v6836_v55  ;;  %v1913_v45 = vadd.f32 %v1897_v59, %v6850_v4  ;;  %v1995_v34 = vmul.f32 %v1979_v24, %v1964_v14  ;;  %v1970_v29 = vld [vmem:[#allocation5 + $0x98] sm:$0xff]  ;;  %v1975_v42 = vld [vmem:[#allocation5 + $0xc0] sm:$0xff]  ;;  %v9276_v2 = vld [vmem:[#allocation35_spill] sm:$0xff] }
 0x473   : > { %2997 = vperm.xlu1 %4180, %v2959_v41   ;;  %2977 = vperm.xlu0 %4179, %v2955_v40   ;;  %v9272_v41 = vld [vmem:[#allocation28_spill] sm:$0xff]  ;;  %v9273_v40 = vld [vmem:[#allocation49_spill] sm:$0xff]  ;;  %v1996_v56 = vmul.f32 %v1980_v63, %v1956_v36  ;;  %v7010_v11 = vadd.f32 %v1983_v60, %v1902_v23  ;;  %v7012_v26 = vadd.f32 %v1984_v30, %v1903_v37  ;;  %v9277_v17 = vld [vmem:[#allocation42_spill] sm:$0xff] }
 0x474   : > { %2987 = vperm.xlu2 %4181, %v2957_v38   ;;  %v1963_v38 = vsel %vm748_vm1, %v9273_v40, %v9272_v41  ;;  %v1955_v46 = vsel %vm748_vm1, %v9272_v41, %v9273_v40  ;;  %v1959_v19 = vsel %vm748_vm1, %v9275_v35, %v9274_v28  ;;  %v7020_v53 = vadd.f32 %v1989_v3, %v1908_v61  ;;  %v1981_v24 = vld [vmem:[#allocation5 + $0xf0] sm:$0xff]  ;;  %v9278_v63 = vld [vmem:[#allocation45_spill] sm:$0xff] }
 0x475   : > { %v6983_v15 = vpop.permute.xlu1 %2413  ;;  %v6985_v51 = vpop.permute.xlu0 %2405  ;;  %v1993_v20 = vmul.f32 %v1977_v31, %v1963_v38  ;;  %v7022_v55 = vadd.f32 %v1990_v9, %v1909_v25  ;;  %v1994_v4 = vmul.f32 %v1978_v50, %v1955_v46  ;;  %v1951_v23 = vsel %vm748_vm1, %v9274_v28, %v9275_v35  ;;  %v1982_v9 = vld [vmem:[#allocation5 + $0xf8] sm:$0xff]  ;;  %v9282_v41 = vld [vmem:[#allocation57_spill] sm:$0xff]  ;;  %v9285_v28 = vld [vmem:[#allocation59_spill] sm:$0xff] }
 0x476   : > { %9269 = vst [vmem:[#allocation41_spill] sm:$0xff] %v6983_v15  ;;  %v7018_v12 = vpop.permute.xlu2 %2427  ;;  %v2003_v37 = vadd.f32 %v1987_v58, %v1906_v49  ;;  %v2004_v59 = vadd.f32 %v1988_v44, %v1907_v5  ;;  %v1954_v61 = vsel %vm748_vm1, %v9277_v17, %v9276_v2  ;;  %v1962_v25 = vsel %vm748_vm1, %v9276_v2, %v9277_v17  ;;  %v9281_v31 = vld [vmem:[#allocation56_spill] sm:$0xff]  ;;  %v2069_v44 = vld [vmem:[#allocation5 + $0x128] sm:$0xff]  ;;  %v9286_v35 = vld [vmem:[#allocation61_spill] sm:$0xff] }
 0x477   : > { %v7036_v7 = vadd.f32 %v1995_v34, %v1914_v10  ;;  %v7038_v60 = vadd.f32 %v1996_v56, %v1915_v39  ;;  %v1985_v30 = vmul.f32 %v1969_v16, %v1959_v19  ;;  %v1965_v0 = vsel %vm748_vm1, %v9279_v52, %v9278_v63  ;;  %v2068_v39 = vld [vmem:[#allocation5 + $0x120] sm:$0xff]  ;;  %v9283_v34 = vld [vmem:[#allocation44_spill] sm:$0xff]  ;;  %v2074_v16 = vld [vmem:[#allocation5 + $0x150] sm:$0xff] }
 0x478   : > { %v2009_v49 = vadd.f32 %v1993_v20, %v1912_v22  ;;  %v1986_v3 = vmul.f32 %v1970_v29, %v1951_v23  ;;  %v1957_v10 = vsel %vm748_vm1, %v9278_v63, %v9279_v52  ;;  %v2057_v40 = vsel %vm846_vm2, %v9282_v41, %v9281_v31  ;;  %v2067_v22 = vld [vmem:[#allocation5 + $0x118] sm:$0xff]  ;;  %v9287_v2 = vld [vmem:[#allocation51_spill] sm:$0xff]  ;;  %v2064_v52 = vld [vmem:[#allocation5 + $0x100] sm:$0xff] }
 0x479   : > { %v2010_v38 = vadd.f32 %v1994_v4, %v1913_v45  ;;  %v1991_v5 = vmul.f32 %v1975_v42, %v1962_v25  ;;  %v1992_v58 = vmul.f32 %v1976_v21, %v1954_v61  ;;  %v2049_v50 = vsel %vm846_vm2, %v9281_v31, %v9282_v41  ;;  %v9284_v56 = vld [vmem:[#allocation32_spill] sm:$0xff]  ;;  %v2072_v21 = vld [vmem:[#allocation5 + $0x140] sm:$0xff] }
 0x47a   : > { %v1997_v46 = vmul.f32 %v1981_v24, %v1965_v0  ;;  %v2048_v20 = vsel %vm846_vm2, %v9284_v56, %v9283_v34  ;;  %v2056_v45 = vsel %vm846_vm2, %v9283_v34, %v9284_v56  ;;  %v2060_v19 = vsel %vm846_vm2, %v9286_v35, %v9285_v28  ;;  %v2075_v23 = vld [vmem:[#allocation5 + $0x158] sm:$0xff]  ;;  %v2073_v24 = vld [vmem:[#allocation5 + $0x148] sm:$0xff] }
 0x47b   : > { %2992 = vperm.xlu0 %4179, %v2958_v8   ;;  %v2066_v8 = vld [vmem:[#allocation5 + $0x110] sm:$0xff]  ;;  %v1998_v4 = vmul.f32 %v1982_v9, %v1957_v10  ;;  %v2084_v29 = vmul.f32 %v2068_v39, %v2057_v40  ;;  %v2052_v42 = vsel %vm846_vm2, %v9285_v28, %v9286_v35  ;;  %v9288_v17 = vld [vmem:[#allocation64_spill] sm:$0xff]  ;;  %v2085_v25 = vmul.f32 %v2069_v44, %v2049_v50  ;;  %v2065_v0 = vld [vmem:[#allocation5 + $0x108] sm:$0xff] }
 0x47c   : > { %v2059_v61 = vsel %vm846_vm2, %v9288_v17, %v9287_v2  ;;  %v2051_v63 = vsel %vm846_vm2, %v9287_v2, %v9288_v17  ;;  %v9289_v9 = vld [vmem:[#allocation47_spill] sm:$0xff]  ;;  %v9290_v10 = vld [vmem:[#allocation52_spill] sm:$0xff]  ;;  %v2001_v41 = vadd.f32 %v1985_v30, %v6912_v47  ;;  %v2082_v40 = vmul.f32 %v2066_v8, %v2056_v45  ;;  %v9291_v8 = vld [vmem:[#allocation54_spill] sm:$0xff] }
 0x47d   : > { %v7044_v36 = vpop.permute.xlu1 %2419  ;;  %v7046_v14 = vpop.permute.xlu0 %2411  ;;  %v2047_v39 = vsel %vm846_vm2, %v9290_v10, %v9289_v9  ;;  %v2055_v31 = vsel %vm846_vm2, %v9289_v9, %v9290_v10  ;;  %v2083_v44 = vmul.f32 %v2067_v22, %v2048_v20  ;;  %v2090_v50 = vmul.f32 %v2074_v16, %v2060_v19  ;;  %v9292_v22 = vld [vmem:[#allocation66_spill] sm:$0xff]  ;;  %v2164_v10 = vld [vmem:[#allocation5 + $0x198] sm:$0xff] }
 0x47e   : > { %9280 = vst [vmem:[#allocation29_spill] sm:$0xff] %v7044_v36  ;;  %v2002_v34 = vadd.f32 %v1986_v3, %v6917_v54  ;;  %v2007_v56 = vadd.f32 %v1991_v5, %v6919_v33  ;;  %v2091_v28 = vmul.f32 %v2075_v23, %v2052_v42  ;;  %v2088_v35 = vmul.f32 %v2072_v21, %v2059_v61  ;;  %v7095_v2 = vpop.permute.xlu2 %2433  ;;  %v9294_v16 = vld [vmem:[#allocation50_spill] sm:$0xff]  ;;  %v2076_v21 = vld [vmem:[#allocation5 + $0x160] sm:$0xff] }
 0x47f   : > { %v2008_v17 = vadd.f32 %v1992_v58, %v6921_v48  ;;  %v2089_v1 = vmul.f32 %v2073_v24, %v2051_v63  ;;  %v2080_v15 = vmul.f32 %v2064_v52, %v2055_v31  ;;  %v2081_v32 = vmul.f32 %v2065_v0, %v2047_v39  ;;  %v2078_v58 = vld [vmem:[#allocation5 + $0x170] sm:$0xff]  ;;  %v2077_v61 = vld [vmem:[#allocation5 + $0x168] sm:$0xff]  ;;  %v9296_v24 = vld [vmem:[#allocation60_spill] sm:$0xff] }
 0x480   : > { %v2013_v47 = vadd.f32 %v1997_v46, %v6943_v43  ;;  %v2014_v30 = vadd.f32 %v1998_v4, %v6948_v18  ;;  %v7104_v54 = vadd.f32 %v2084_v29, %v2003_v37  ;;  %v7106_v33 = vadd.f32 %v2085_v25, %v2004_v59  ;;  %v2079_v18 = vld [vmem:[#allocation5 + $0x178] sm:$0xff]  ;;  %v2070_v59 = vld [vmem:[#allocation5 + $0x130] sm:$0xff]  ;;  %v9295_v25 = vld [vmem:[#allocation69_spill] sm:$0xff] }
 0x481   : > { %v7108_v3 = vadd.f32 %v2082_v40, %v2001_v41  ;;  %v7110_v5 = vadd.f32 %v2083_v44, %v2002_v34  ;;  %v7112_v48 = vadd.f32 %v2090_v50, %v2009_v49  ;;  %v2062_v20 = vsel %vm846_vm2, %v9292_v22, %v9291_v8  ;;  %v9293_v46 = vld [vmem:[#allocation43_spill] sm:$0xff]  ;;  %v2161_v31 = vld [vmem:[#allocation5 + $0x180] sm:$0xff]  ;;  %v9300_v40 = vld [vmem:[#allocation74_spill] sm:$0xff] }
 0x482   : > { %v7118_v45 = vadd.f32 %v2091_v28, %v2010_v38  ;;  %v2104_v43 = vadd.f32 %v2088_v35, %v2007_v56  ;;  %v2054_v37 = vsel %vm846_vm2, %v9291_v8, %v9292_v22  ;;  %v2058_v49 = vsel %vm846_vm2, %v9294_v16, %v9293_v46  ;;  %v2071_v38 = vld [vmem:[#allocation5 + $0x138] sm:$0xff]  ;;  %v9299_v41 = vld [vmem:[#allocation63_spill] sm:$0xff]  ;;  %v2162_v34 = vld [vmem:[#allocation5 + $0x188] sm:$0xff] }
 0x483   : > { %v2105_v19 = vadd.f32 %v2089_v1, %v2008_v17  ;;  %v2096_v4 = vadd.f32 %v2080_v15, %v7010_v11  ;;  %v2097_v29 = vadd.f32 %v2081_v32, %v7012_v26  ;;  %v2050_v23 = vsel %vm846_vm2, %v9293_v46, %v9294_v16  ;;  %v2163_v32 = vld [vmem:[#allocation5 + $0x190] sm:$0xff]  ;;  %v9298_v11 = vld [vmem:[#allocation68_spill] sm:$0xff]  ;;  %v2169_v28 = vld [vmem:[#allocation5 + $0x1c0] sm:$0xff] }
 0x484   : > { %v2094_v42 = vmul.f32 %v2078_v58, %v2062_v20  ;;  %v2053_v63 = vsel %vm846_vm2, %v9296_v24, %v9295_v25  ;;  %v2061_v1 = vsel %vm846_vm2, %v9295_v25, %v9296_v24  ;;  %v9297_v15 = vld [vmem:[#allocation71_spill] sm:$0xff]  ;;  %v2095_v52 = vmul.f32 %v2079_v18, %v2054_v37  ;;  %v2170_v35 = vld [vmem:[#allocation5 + $0x1c8] sm:$0xff] }
 0x485   : > { %v7098_v36 = vpop.permute.xlu1 %2425  ;;  %v7100_v9 = vpop.permute.xlu0 %2417  ;;  %v2153_v26 = vsel %vm944_vm3, %v9298_v11, %v9297_v15  ;;  %v2086_v0 = vmul.f32 %v2070_v59, %v2058_v49  ;;  %v2145_v39 = vsel %vm944_vm3, %v9297_v15, %v9298_v11  ;;  %v2152_v44 = vsel %vm944_vm3, %v9300_v40, %v9299_v41  ;;  %v9301_v17 = vld [vmem:[#allocation75_spill] sm:$0xff]  ;;  %v9302_v58 = vld [vmem:[#allocation78_spill] sm:$0xff]  ;;  %v2168_v15 = vld [vmem:[#allocation5 + $0x1b8] sm:$0xff] }
 0x486   : > { %v2087_v50 = vmul.f32 %v2071_v38, %v2050_v23  ;;  %v2144_v56 = vsel %vm944_vm3, %v9299_v41, %v9300_v40  ;;  %v2148_v8 = vsel %vm944_vm3, %v9302_v58, %v9301_v17  ;;  %v2156_v22 = vsel %vm944_vm3, %v9301_v17, %v9302_v58  ;;  %v2167_v59 = vld [vmem:[#allocation5 + $0x1b0] sm:$0xff]  ;;  %v9304_v16 = vld [vmem:[#allocation62_spill] sm:$0xff]  ;;  %v7182_v11 = vpop.permute.xlu2 %2504 }
 0x487   : > { %v2092_v20 = vmul.f32 %v2076_v21, %v2061_v1  ;;  %v2093_v18 = vmul.f32 %v2077_v61, %v2053_v63  ;;  %v2179_v37 = vmul.f32 %v2163_v32, %v2153_v26  ;;  %v9303_v46 = vld [vmem:[#allocation55_spill] sm:$0xff]  ;;  %v2180_v25 = vmul.f32 %v2164_v10, %v2145_v39  ;;  %v9306_v63 = vld [vmem:[#allocation81_spill] sm:$0xff]  ;;  %9308 = vst [vmem:[#allocation39_spill] sm:$0xff] %v7182_v11 }
 0x488   : > { %v2155_v49 = vsel %vm944_vm3, %v9304_v16, %v9303_v46  ;;  %v2177_v24 = vmul.f32 %v2161_v31, %v2152_v44  ;;  %v2147_v21 = vsel %vm944_vm3, %v9303_v46, %v9304_v16  ;;  %v2175_v61 = vld [vmem:[#allocation5 + $0x1f0] sm:$0xff]  ;;  %v2110_v26 = vadd.f32 %v2094_v42, %v2013_v47  ;;  %v2176_v16 = vld [vmem:[#allocation5 + $0x1f8] sm:$0xff] }
 0x489   : > { %v9307_v1 = vld [vmem:[#allocation79_spill] sm:$0xff]  ;;  %v2178_v41 = vmul.f32 %v2162_v34, %v2144_v56  ;;  %v2185_v40 = vmul.f32 %v2169_v28, %v2156_v22  ;;  %v2186_v17 = vmul.f32 %v2170_v35, %v2148_v8  ;;  %v2111_v10 = vadd.f32 %v2095_v52, %v2014_v30  ;;  %v9310_v34 = vld [vmem:[#allocation82_spill] sm:$0xff] }
 0x48a   : > { %v2159_v32 = vsel %vm944_vm3, %v9307_v1, %v9306_v63  ;;  %v2102_v39 = vadd.f32 %v2086_v0, %v7020_v53  ;;  %v2103_v31 = vadd.f32 %v2087_v50, %v7022_v55  ;;  %v2183_v44 = vmul.f32 %v2167_v59, %v2155_v49  ;;  %v2173_v0 = vld [vmem:[#allocation5 + $0x1e0] sm:$0xff]  ;;  %v9309_v50 = vld [vmem:[#allocation67_spill] sm:$0xff]  ;;  %v2174_v35 = vld [vmem:[#allocation5 + $0x1e8] sm:$0xff] }
 0x48b   : > { %v2108_v58 = vadd.f32 %v2092_v20, %v7036_v7  ;;  %v2184_v46 = vmul.f32 %v2168_v15, %v2147_v21  ;;  %v2191_v11 = vmul.f32 %v2175_v61, %v2159_v32  ;;  %v2109_v47 = vadd.f32 %v2093_v18, %v7038_v60  ;;  %v2166_v22 = vld [vmem:[#allocation5 + $0x1a8] sm:$0xff]  ;;  %v2171_v18 = vld [vmem:[#allocation5 + $0x1d0] sm:$0xff]  ;;  %v2172_v15 = vld [vmem:[#allocation5 + $0x1d8] sm:$0xff] }
 0x48c   : > { %v7193_v42 = vadd.f32 %v2179_v37, %v7108_v3  ;;  %v7196_v53 = vadd.f32 %v2180_v25, %v7110_v5  ;;  %v2193_v55 = vadd.f32 %v2177_v24, %v2096_v4  ;;  %v2194_v30 = vadd.f32 %v2178_v41, %v2097_v29  ;;  %v2165_v5 = vld [vmem:[#allocation5 + $0x1a0] sm:$0xff]  ;;  %v9311_v4 = vld [vmem:[#allocation58_spill] sm:$0xff]  ;;  %v9313_v37 = vld [vmem:[#allocation72_spill] sm:$0xff] }
 0x48d   : > { %v7170_v38 = vpop.permute.xlu1 %2431  ;;  %v7172_v23 = vpop.permute.xlu0 %2423  ;;  %v7198_v52 = vadd.f32 %v2185_v40, %v2104_v43  ;;  %v7200_v7 = vadd.f32 %v2186_v17, %v2105_v19  ;;  %v2158_v56 = vsel %vm944_vm3, %v9310_v34, %v9309_v50  ;;  %v2199_v28 = vadd.f32 %v2183_v44, %v2102_v39  ;;  %v9312_v43 = vld [vmem:[#allocation65_spill] sm:$0xff]  ;;  %v9314_v59 = vld [vmem:[#allocation87_spill] sm:$0xff]  ;;  %v9318_v32 = vld [vmem:[#allocation90_spill] sm:$0xff] }
 0x48e   : > { %9305 = vst [vmem:[#allocation37_spill] sm:$0xff] %v7172_v23  ;;  %v2151_v23 = vsel %vm944_vm3, %v9306_v63, %v9307_v1  ;;  %v2150_v3 = vsel %vm944_vm3, %v9309_v50, %v9310_v34  ;;  %v2154_v19 = vsel %vm944_vm3, %v9312_v43, %v9311_v4  ;;  %v2200_v29 = vadd.f32 %v2184_v46, %v2103_v31  ;;  %v2258_v61 = vld [vmem:[#allocation5 + $0x280] sm:$0xff]  ;;  %v2259_v63 = vld [vmem:[#allocation5 + $0x288] sm:$0xff]  ;;  %v9317_v1 = vld [vmem:[#allocation76_spill] sm:$0xff] }
 0x48f   : > { %v2192_v60 = vmul.f32 %v2176_v16, %v2151_v23  ;;  %v7214_v8 = vadd.f32 %v2191_v11, %v2110_v26  ;;  %v2146_v20 = vsel %vm944_vm3, %v9311_v4, %v9312_v43  ;;  %v2157_v49 = vsel %vm944_vm3, %v9314_v59, %v9313_v37  ;;  %v2264_v17 = vld [vmem:[#allocation5 + $0x2b0] sm:$0xff]  ;;  %v2265_v39 = vld [vmem:[#allocation5 + $0x2b8] sm:$0xff]  ;;  %v9319_v31 = vld [vmem:[#allocation89_spill] sm:$0xff] }
 0x490   : > { %v2189_v24 = vmul.f32 %v2173_v0, %v2158_v56  ;;  %v2149_v21 = vsel %vm944_vm3, %v9313_v37, %v9314_v59  ;;  %v2241_v11 = vsel %vm1042_vm4, %v9318_v32, %v9317_v1  ;;  %v2249_v26 = vsel %vm1042_vm4, %v9317_v1, %v9318_v32  ;;  %v9320_v44 = vld [vmem:[#allocation94_spill] sm:$0xff]  ;;  %v2262_v34 = vld [vmem:[#allocation5 + $0x2a0] sm:$0xff]  ;;  %v9321_v4 = vld [vmem:[#allocation96_spill] sm:$0xff] }
 0x491   : > { %v2190_v41 = vmul.f32 %v2174_v35, %v2150_v3  ;;  %v2181_v40 = vmul.f32 %v2165_v5, %v2154_v19  ;;  %v2244_v46 = vsel %vm1042_vm4, %v9320_v44, %v9319_v31  ;;  %v2252_v16 = vsel %vm1042_vm4, %v9319_v31, %v9320_v44  ;;  %v2263_v56 = vld [vmem:[#allocation5 + $0x2a8] sm:$0xff]  ;;  %v7256_v5 = vpop.permute.xlu2 %2510  ;;  %v2270_v1 = vld [vmem:[#allocation5 + $0x2e0] sm:$0xff] }
 0x492   : > { %v2182_v0 = vmul.f32 %v2166_v22, %v2146_v20  ;;  %v2187_v50 = vmul.f32 %v2171_v18, %v2157_v49  ;;  %v9322_v43 = vld [vmem:[#allocation70_spill] sm:$0xff]  ;;  %v2188_v19 = vmul.f32 %v2172_v15, %v2149_v21  ;;  %v2274_v37 = vmul.f32 %v2258_v61, %v2241_v11  ;;  %v9323_v22 = vld [vmem:[#allocation77_spill] sm:$0xff]  ;;  %v9326_v11 = vld [vmem:[#allocation84_spill] sm:$0xff] }
 0x493   : > { %v2243_v35 = vsel %vm1042_vm4, %v9322_v43, %v9321_v4  ;;  %v2251_v3 = vsel %vm1042_vm4, %v9321_v4, %v9322_v43  ;;  %v2275_v59 = vmul.f32 %v2259_v63, %v2249_v26  ;;  %v9324_v20 = vld [vmem:[#allocation85_spill] sm:$0xff]  ;;  %v7262_v49 = vadd.f32 %v2192_v60, %v2111_v10  ;;  %v2271_v61 = vld [vmem:[#allocation5 + $0x2e8] sm:$0xff] }
 0x494   : > { %v2247_v18 = vsel %vm1042_vm4, %v9324_v20, %v9323_v22  ;;  %v2205_v32 = vadd.f32 %v2189_v24, %v2108_v58  ;;  %v2280_v31 = vmul.f32 %v2264_v17, %v2244_v46  ;;  %v2281_v44 = vmul.f32 %v2265_v39, %v2252_v16  ;;  %v9325_v24 = vld [vmem:[#allocation88_spill] sm:$0xff]  ;;  %v9329_v39 = vld [vmem:[#allocation73_spill] sm:$0xff] }
 0x495   : > { %v7224_v23 = vpop.permute.xlu1 %2502  ;;  %v7226_v25 = vpop.permute.xlu0 %2429  ;;  %v2278_v4 = vmul.f32 %v2262_v34, %v2243_v35  ;;  %v2279_v43 = vmul.f32 %v2263_v56, %v2251_v3  ;;  %v2198_v15 = vadd.f32 %v2182_v0, %v7106_v33  ;;  %v2203_v21 = vadd.f32 %v2187_v50, %v7112_v48  ;;  %v2269_v17 = vld [vmem:[#allocation5 + $0x2d8] sm:$0xff]  ;;  %v2266_v35 = vld [vmem:[#allocation5 + $0x2c0] sm:$0xff]  ;;  %v2267_v3 = vld [vmem:[#allocation5 + $0x2c8] sm:$0xff] }
 0x496   : > { %9315 = vst [vmem:[#allocation46_spill] sm:$0xff] %v7224_v23  ;;  %v2206_v23 = vadd.f32 %v2190_v41, %v2109_v47  ;;  %v2255_v63 = vsel %vm1042_vm4, %v9323_v22, %v9324_v20  ;;  %v2286_v10 = vmul.f32 %v2270_v1, %v2247_v18  ;;  %v2204_v58 = vadd.f32 %v2188_v19, %v7118_v45  ;;  %v2261_v34 = vld [vmem:[#allocation5 + $0x298] sm:$0xff]  ;;  %v9330_v19 = vld [vmem:[#allocation30_spill] sm:$0xff]  ;;  %v2272_v20 = vld [vmem:[#allocation5 + $0x2f0] sm:$0xff] }
 0x497   : > { %9316 = vst [vmem:[#allocation48_spill] sm:$0xff] %v7226_v25  ;;  %v2197_v25 = vadd.f32 %v2181_v40, %v7104_v54  ;;  %v7272_v60 = vadd.f32 %v2274_v37, %v2193_v55  ;;  %v7274_v47 = vadd.f32 %v2275_v59, %v2194_v30  ;;  %v2268_v54 = vld [vmem:[#allocation5 + $0x2d0] sm:$0xff]  ;;  %v2246_v33 = vsel %vm1042_vm4, %v9326_v11, %v9325_v24  ;;  %v9331_v37 = vld [vmem:[#allocation86_spill] sm:$0xff]  ;;  %v2273_v18 = vld [vmem:[#allocation5 + $0x2f8] sm:$0xff] }
 0x498   : > { %v7284_v41 = vadd.f32 %v2280_v31, %v2199_v28  ;;  %v7286_v40 = vadd.f32 %v2281_v44, %v2200_v29  ;;  %v2254_v45 = vsel %vm1042_vm4, %v9325_v24, %v9326_v11  ;;  %v2260_v55 = vld [vmem:[#allocation5 + $0x290] sm:$0xff]  ;;  %v2295_v0 = vadd.f32 %v2279_v43, %v2198_v15  ;;  %v2359_v15 = vld [vmem:[#allocation5 + $0x320] sm:$0xff] }
 0x499   : > { %v9328_v30 = vld [vmem:[#allocation83_spill] sm:$0xff]  ;;  %v2294_v16 = vadd.f32 %v2278_v4, %v2197_v25  ;;  %v2287_v50 = vmul.f32 %v2271_v61, %v2255_v63  ;;  %v7300_v29 = vadd.f32 %v2286_v10, %v2205_v32  ;;  %v2284_v56 = vmul.f32 %v2268_v54, %v2246_v33  ;;  %v9333_v32 = vld [vmem:[#allocation93_spill] sm:$0xff]  ;;  %v2360_v61 = vld [vmem:[#allocation5 + $0x328] sm:$0xff] }
 0x49a   : > { %v2242_v46 = vsel %vm1042_vm4, %v9329_v39, %v9328_v30  ;;  %v2250_v28 = vsel %vm1042_vm4, %v9328_v30, %v9329_v39  ;;  %v2245_v59 = vsel %vm1042_vm4, %v9331_v37, %v9330_v19  ;;  %v2253_v25 = vsel %vm1042_vm4, %v9330_v19, %v9331_v37  ;;  %v9332_v31 = vld [vmem:[#allocation95_spill] sm:$0xff]  ;;  %v9335_v10 = vld [vmem:[#allocation33_spill] sm:$0xff]  ;;  %v9336_v33 = vld [vmem:[#allocation34_spill] sm:$0xff] }
 0x49b   : > { %v2285_v1 = vmul.f32 %v2269_v17, %v2254_v45  ;;  %v2276_v22 = vmul.f32 %v2260_v55, %v2242_v46  ;;  %v2248_v44 = vsel %vm1042_vm4, %v9333_v32, %v9332_v31  ;;  %v2256_v4 = vsel %vm1042_vm4, %v9332_v31, %v9333_v32  ;;  %v9334_v63 = vld [vmem:[#allocation23_spill] sm:$0xff]  ;;  %v9337_v17 = vld [vmem:[#allocation80_spill] sm:$0xff]  ;;  %v7330_v55 = vpop.permute.xlu2 %2516 }
 0x49c   : > { %v2277_v43 = vmul.f32 %v2261_v34, %v2250_v28  ;;  %v2340_v54 = vsel %vm1140_vm5, %v9335_v10, %v9334_v63  ;;  %v2348_v24 = vsel %vm1140_vm5, %v9334_v63, %v9335_v10  ;;  %v2357_v11 = vld [vmem:[#allocation5 + $0x310] sm:$0xff]  ;;  %v2339_v45 = vsel %vm1140_vm5, %v9337_v17, %v9336_v33  ;;  %9338 = vst [vmem:[#allocation49_spill] sm:$0xff] %v7330_v55  ;;  %v2358_v34 = vld [vmem:[#allocation5 + $0x318] sm:$0xff] }
 0x49d   : > { %v7280_v48 = vpop.permute.xlu1 %2508  ;;  %v7282_v26 = vpop.permute.xlu0 %2500  ;;  %v7332_v30 = vadd.f32 %v2287_v50, %v2206_v23  ;;  %v2282_v39 = vmul.f32 %v2266_v35, %v2245_v59  ;;  %v2283_v46 = vmul.f32 %v2267_v3, %v2253_v25  ;;  %v2347_v28 = vsel %vm1140_vm5, %v9336_v33, %v9337_v17  ;;  %v2365_v32 = vld [vmem:[#allocation5 + $0x350] sm:$0xff]  ;;  %v9340_v10 = vld [vmem:[#allocation24_spill] sm:$0xff] }
 0x49e   : > { %9327 = vst [vmem:[#allocation28_spill] sm:$0xff] %v7282_v26  ;;  %v2300_v19 = vadd.f32 %v2284_v56, %v2203_v21  ;;  %v2288_v37 = vmul.f32 %v2272_v20, %v2248_v44  ;;  %v2289_v31 = vmul.f32 %v2273_v18, %v2256_v4  ;;  %v9339_v63 = vld [vmem:[#allocation27_spill] sm:$0xff]  ;;  %v2375_v55 = vmul.f32 %v2359_v15, %v2340_v54  ;;  %v2366_v35 = vld [vmem:[#allocation5 + $0x358] sm:$0xff]  ;;  %v9341_v54 = vld [vmem:[#allocation25_spill] sm:$0xff] }
 0x49f   : > { %v2343_v26 = vsel %vm1140_vm5, %v9340_v10, %v9339_v63  ;;  %v2376_v23 = vmul.f32 %v2360_v61, %v2348_v24  ;;  %v2373_v50 = vmul.f32 %v2357_v11, %v2339_v45  ;;  %v2351_v3 = vsel %vm1140_vm5, %v9339_v63, %v9340_v10  ;;  %v2363_v61 = vld [vmem:[#allocation5 + $0x340] sm:$0xff]  ;;  %v9342_v24 = vld [vmem:[#allocation91_spill] sm:$0xff]  ;;  %v9344_v17 = vld [vmem:[#allocation92_spill] sm:$0xff] }
 0x4a0   : > { %v2301_v56 = vadd.f32 %v2285_v1, %v2204_v58  ;;  %v2292_v25 = vadd.f32 %v2276_v22, %v7193_v42  ;;  %v2293_v20 = vadd.f32 %v2277_v43, %v7196_v53  ;;  %v2374_v18 = vmul.f32 %v2358_v34, %v2347_v28  ;;  %v2364_v1 = vld [vmem:[#allocation5 + $0x348] sm:$0xff]  ;;  %v2355_v22 = vld [vmem:[#allocation5 + $0x300] sm:$0xff]  ;;  %v2362_v63 = vld [vmem:[#allocation5 + $0x338] sm:$0xff] }
 0x4a1   : > { %v2298_v44 = vadd.f32 %v2282_v39, %v7198_v52  ;;  %v2299_v4 = vadd.f32 %v2283_v46, %v7200_v7  ;;  %v2381_v15 = vmul.f32 %v2365_v32, %v2343_v26  ;;  %v2342_v11 = vsel %vm1140_vm5, %v9342_v24, %v9341_v54  ;;  %v9343_v43 = vld [vmem:[#allocation21_spill] sm:$0xff]  ;;  %v2356_v39 = vld [vmem:[#allocation5 + $0x308] sm:$0xff] }
 0x4a2   : > { %v2304_v33 = vadd.f32 %v2288_v37, %v7214_v8  ;;  %v7360_v58 = vadd.f32 %v2289_v31, %v7262_v49  ;;  %v2382_v42 = vmul.f32 %v2366_v35, %v2351_v3  ;;  %v2350_v53 = vsel %vm1140_vm5, %v9341_v54, %v9342_v24  ;;  %v2369_v37 = vld [vmem:[#allocation5 + $0x370] sm:$0xff]  ;;  %v9346_v31 = vld [vmem:[#allocation26_spill] sm:$0xff]  ;;  %v2370_v35 = vld [vmem:[#allocation5 + $0x378] sm:$0xff] }
 0x4a3   : > { %v7366_v52 = vadd.f32 %v2375_v55, %v2294_v16  ;;  %v7368_v7 = vadd.f32 %v2376_v23, %v2295_v0  ;;  %v7370_v26 = vadd.f32 %v2373_v50, %v2292_v25  ;;  %v2338_v8 = vsel %vm1140_vm5, %v9344_v17, %v9343_v43  ;;  %v2361_v55 = vld [vmem:[#allocation5 + $0x330] sm:$0xff]  ;;  %v2367_v3 = vld [vmem:[#allocation5 + $0x360] sm:$0xff] }
 0x4a4   : > { %v7376_v49 = vadd.f32 %v2374_v18, %v2293_v20  ;;  %v2379_v45 = vmul.f32 %v2363_v61, %v2342_v11  ;;  %v2346_v16 = vsel %vm1140_vm5, %v9343_v43, %v9344_v17  ;;  %v9345_v0 = vld [vmem:[#allocation31_spill] sm:$0xff]  ;;  %v7386_v34 = vadd.f32 %v2381_v15, %v2300_v19  ;;  %v9347_v25 = vld [vmem:[#allocation97_spill] sm:$0xff]  ;;  %v7406_v18 = vpop.permute.xlu2 %2522 }
 0x4a5   : > { %v7346_v59 = vpop.permute.xlu1 %2514  ;;  %v7348_v21 = vpop.permute.xlu0 %2506  ;;  %v2341_v46 = vsel %vm1140_vm5, %v9345_v0, %v6828_v62  ;;  %v2380_v28 = vmul.f32 %v2364_v1, %v2350_v53  ;;  %v2345_v32 = vsel %vm1140_vm5, %v9346_v31, %v6826_v27  ;;  %v2349_v10 = vsel %vm1140_vm5, %v6828_v62, %v9345_v0  ;;  %v2368_v62 = vld [vmem:[#allocation5 + $0x368] sm:$0xff]  ;;  %v2454_v54 = vld [vmem:[#allocation5 + $0x390] sm:$0xff] }
 0x4a6   : > { %v7396_v23 = vadd.f32 %v2382_v42, %v2301_v56  ;;  %v2371_v50 = vmul.f32 %v2355_v22, %v2338_v8  ;;  %v2353_v19 = vsel %vm1140_vm5, %v6826_v27, %v9346_v31  ;;  %v2344_v20 = vsel %vm1140_vm5, %v9347_v25, %v6909_v57  ;;  %v2455_v22 = vld [vmem:[#allocation5 + $0x398] sm:$0xff]  ;;  %v2461_v31 = vld [vmem:[#allocation5 + $0x3c8] sm:$0xff] }
 0x4a7   : > { %v2372_v15 = vmul.f32 %v2356_v39, %v2346_v16  ;;  %v2377_v61 = vmul.f32 %v2361_v55, %v2341_v46  ;;  %v2352_v56 = vsel %vm1140_vm5, %v6909_v57, %v9347_v25  ;;  %v2436_v27 = vsel %vm1238_vm6, %v6985_v51, %v6932_v6  ;;  %v2460_v39 = vld [vmem:[#allocation5 + $0x3c0] sm:$0xff]  ;;  %v9349_v46 = vld [vmem:[#allocation22_spill] sm:$0xff]  ;;  %v2467_v25 = vld [vmem:[#allocation5 + $0x3f8] sm:$0xff] }
 0x4a8   : > { %v2395_v42 = vadd.f32 %v2379_v45, %v2298_v44  ;;  %v2385_v1 = vmul.f32 %v2369_v37, %v2345_v32  ;;  %v2378_v53 = vmul.f32 %v2362_v63, %v2349_v10  ;;  %v2444_v43 = vsel %vm1238_vm6, %v6932_v6, %v6985_v51  ;;  %v2452_v44 = vld [vmem:[#allocation5 + $0x380] sm:$0xff]  ;;  %v2453_v10 = vld [vmem:[#allocation5 + $0x388] sm:$0xff] }
 0x4a9   : > { %v2396_v57 = vadd.f32 %v2380_v28, %v2299_v4  ;;  %v2386_v17 = vmul.f32 %v2370_v35, %v2353_v19  ;;  %v2383_v8 = vmul.f32 %v2367_v3, %v2344_v20  ;;  %v2439_v16 = vsel %vm1238_vm6, %v7046_v14, %v7018_v12  ;;  %v9348_v45 = vld [vmem:[#allocation29_spill] sm:$0xff] }
 0x4aa   : > { %v2384_v55 = vmul.f32 %v2368_v62, %v2352_v56  ;;  %v2470_v0 = vmul.f32 %v2454_v54, %v2436_v27  ;;  %v2435_v37 = vsel %vm1238_vm6, %v9349_v46, %v9348_v45  ;;  %v2447_v6 = vsel %vm1238_vm6, %v7018_v12, %v7046_v14  ;;  %v9350_v62 = vld [vmem:[#allocation36_spill] sm:$0xff] }
 0x4ab   : > { %v2387_v51 = vadd.f32 %v2371_v50, %v7272_v60  ;;  %v7438_v4 = vadd.f32 %v2372_v15, %v7274_v47  ;;  %v7441_v28 = vadd.f32 %v2377_v61, %v7284_v41  ;;  %v2471_v32 = vmul.f32 %v2455_v22, %v2444_v43  ;;  %v2466_v50 = vld [vmem:[#allocation5 + $0x3f0] sm:$0xff] }
 0x4ac   : > { %v7444_v63 = vadd.f32 %v2378_v53, %v7286_v40  ;;  %v2443_v35 = vsel %vm1238_vm6, %v9348_v45, %v9349_v46  ;;  %v2476_v19 = vmul.f32 %v2460_v39, %v2439_v16  ;;  %v2401_v12 = vadd.f32 %v2385_v1, %v2304_v33  ;;  %v2458_v61 = vld [vmem:[#allocation5 + $0x3b0] sm:$0xff]  ;;  %v2465_v1 = vld [vmem:[#allocation5 + $0x3e8] sm:$0xff]  ;;  %v2529_v22 = vpop.permute.xlu2 %2528  ;;  %v2463_v45 = vld [vmem:[#allocation5 + $0x3d8] sm:$0xff] }
 0x4ad   : > { %v7416_v24 = vpop.permute.xlu1 %2520  ;;  %v7418_v11 = vpop.permute.xlu0 %2512  ;;  %v2468_v14 = vmul.f32 %v2452_v44, %v2435_v37  ;;  %v2477_v60 = vmul.f32 %v2461_v31, %v2447_v6  ;;  %v2442_v47 = vsel %vm1238_vm6, %v7100_v9, %v7095_v2  ;;  %v2402_v41 = vadd.f32 %v2386_v17, %v7360_v58  ;;  %v2462_v44 = vld [vmem:[#allocation5 + $0x3d0] sm:$0xff]  ;;  %v9352_v46 = vld [vmem:[#allocation48_spill] sm:$0xff] }
 0x4ae   : > { %v2399_v40 = vadd.f32 %v2383_v8, %v7300_v29  ;;  %v2400_v3 = vadd.f32 %v2384_v55, %v7332_v30  ;;  %v2450_v33 = vsel %vm1238_vm6, %v7095_v2, %v7100_v9  ;;  %v7462_v20 = vadd.f32 %v2470_v0, %v7370_v26  ;;  %v2464_v29 = vld [vmem:[#allocation5 + $0x3e0] sm:$0xff]  ;;  %v9351_v30 = vld [vmem:[#allocation98_spill] sm:$0xff]  ;;  %v2459_v9 = vld [vmem:[#allocation5 + $0x3b8] sm:$0xff] }
 0x4af   : > { %v7464_v15 = vmul.f32 %v2453_v10, %v2443_v35  ;;  %v2438_v58 = vsel %vm1238_vm6, %v9350_v62, %v7098_v36  ;;  %v2441_v56 = vsel %vm1238_vm6, %v9351_v30, %v7170_v38  ;;  %v7477_v2 = vadd.f32 %v2471_v32, %v7376_v49  ;;  %v2561_v8 = vld [vmem:[#allocation5 + $0x460] sm:$0xff]  ;;  %v2562_v35 = vld [vmem:[#allocation5 + $0x468] sm:$0xff] }
 0x4b0   : > { %v2446_v26 = vsel %vm1238_vm6, %v7098_v36, %v9350_v62  ;;  %v2482_v27 = vmul.f32 %v2466_v50, %v2442_v47  ;;  %v2449_v53 = vsel %vm1238_vm6, %v7170_v38, %v9351_v30  ;;  %v7487_v43 = vadd.f32 %v2476_v19, %v2395_v42  ;;  %v9353_v38 = vld [vmem:[#allocation41_spill] sm:$0xff]  ;;  %v2559_v47 = vld [vmem:[#allocation5 + $0x450] sm:$0xff] }
 0x4b1   : > { %v2483_v17 = vmul.f32 %v2467_v25, %v2450_v33  ;;  %v2538_v49 = vsel %vm1336_vm7, %v7418_v11, %v2529_v22  ;;  %v7492_v16 = vadd.f32 %v2477_v60, %v2396_v57  ;;  %v7494_v36 = vadd.f32 %v2468_v14, %v2387_v51  ;;  %v2456_v57 = vld [vmem:[#allocation5 + $0x3a0] sm:$0xff]  ;;  %v9355_v51 = vld [vmem:[#allocation99_spill] sm:$0xff]  ;;  %v2457_v14 = vld [vmem:[#allocation5 + $0x3a8] sm:$0xff] }
 0x4b2   : > { %v2474_v55 = vmul.f32 %v2458_v61, %v2438_v58  ;;  %v2480_v0 = vmul.f32 %v2464_v29, %v2441_v56  ;;  %v2440_v42 = vsel %vm1238_vm6, %v9353_v38, %v9352_v46  ;;  %v2448_v37 = vsel %vm1238_vm6, %v9352_v46, %v9353_v38  ;;  %v9354_v32 = vld [vmem:[#allocation37_spill] sm:$0xff]  ;;  %v2560_v58 = vld [vmem:[#allocation5 + $0x458] sm:$0xff] }
 0x4b3   : > { %v2475_v31 = vmul.f32 %v2459_v9, %v2446_v26  ;;  %v2481_v6 = vmul.f32 %v2465_v1, %v2449_v53  ;;  %v2437_v10 = vsel %vm1238_vm6, %v9355_v51, %v9354_v32  ;;  %v2546_v19 = vsel %vm1336_vm7, %v2529_v22, %v7418_v11  ;;  %v2557_v9 = vld [vmem:[#allocation5 + $0x440] sm:$0xff]  ;;  %v2555_v22 = vld [vmem:[#allocation5 + $0x430] sm:$0xff]  ;;  %v2556_v38 = vld [vmem:[#allocation5 + $0x438] sm:$0xff] }
 0x4b4   : > { %v2445_v60 = vsel %vm1238_vm6, %v9354_v32, %v9355_v51  ;;  %v2577_v50 = vmul.f32 %v2561_v8, %v2538_v49  ;;  %v7518_v33 = vadd.f32 %v2482_v27, %v2401_v12  ;;  %v2478_v61 = vmul.f32 %v2462_v44, %v2440_v42  ;;  %v2558_v8 = vld [vmem:[#allocation5 + $0x448] sm:$0xff]  ;;  %v2549_v46 = vld [vmem:[#allocation5 + $0x400] sm:$0xff] }
 0x4b5   : > { %v7474_v54 = vpop.permute.xlu0 %2518  ;;  %v2527_v39 = vpop.permute.xlu1 %2526  ;;  %v2479_v62 = vmul.f32 %v2463_v45, %v2448_v37  ;;  %v7523_v29 = vadd.f32 %v2483_v17, %v2402_v41  ;;  %v2472_v30 = vmul.f32 %v2456_v57, %v2437_v10  ;;  %v2578_v56 = vmul.f32 %v2562_v35, %v2546_v19  ;;  %v9356_v17 = vld [vmem:[#allocation49_spill] sm:$0xff]  ;;  %v2554_v10 = vld [vmem:[#allocation5 + $0x428] sm:$0xff]  ;;  %v9358_v35 = vld [vmem:[#allocation39_spill] sm:$0xff] }
 0x4b6   : > { %v2537_v25 = vsel %vm1336_vm7, %v7256_v5, %v2527_v39  ;;  %v2545_v11 = vsel %vm1336_vm7, %v2527_v39, %v7256_v5  ;;  %v2496_v26 = vadd.f32 %v2480_v0, %v2399_v40  ;;  %v2490_v1 = vadd.f32 %v2474_v55, %v7441_v28  ;;  %v9357_v39 = vld [vmem:[#allocation28_spill] sm:$0xff] }
 0x4b7   : > { %v2473_v53 = vmul.f32 %v2457_v14, %v2445_v60  ;;  %v2535_v12 = vsel %vm1336_vm7, %v7348_v21, %v7406_v18  ;;  %v2575_v27 = vmul.f32 %v2559_v47, %v2537_v25  ;;  %v2497_v44 = vadd.f32 %v2481_v6, %v2400_v3  ;;  %v2551_v60 = vld [vmem:[#allocation5 + $0x410] sm:$0xff]  ;;  %v2564_v25 = vld [vmem:[#allocation5 + $0x478] sm:$0xff] }
 0x4b8   : > { %v2576_v5 = vmul.f32 %v2560_v58, %v2545_v11  ;;  %v7536_v40 = vadd.f32 %v2577_v50, %v2496_v26  ;;  %v2532_v55 = vsel %vm1336_vm7, %v9357_v39, %v9356_v17  ;;  %v2494_v45 = vadd.f32 %v2478_v61, %v7386_v34  ;;  %v9359_v50 = vld [vmem:[#allocation46_spill] sm:$0xff]  ;;  %v2563_v47 = vld [vmem:[#allocation5 + $0x470] sm:$0xff] }
 0x4b9   : > { %v2495_v3 = vadd.f32 %v2479_v62, %v7396_v23  ;;  %v2543_v42 = vsel %vm1336_vm7, %v7406_v18, %v7348_v21  ;;  %v7548_v6 = vadd.f32 %v2578_v56, %v2497_v44  ;;  %v2491_v32 = vadd.f32 %v2475_v31, %v7444_v63  ;;  %v2553_v23 = vld [vmem:[#allocation5 + $0x420] sm:$0xff]  ;;  %v2552_v56 = vld [vmem:[#allocation5 + $0x418] sm:$0xff] }
 0x4ba   : > { %v7550_v57 = vadd.f32 %v2575_v27, %v2494_v45  ;;  %v2488_v51 = vadd.f32 %v2472_v30, %v7366_v52  ;;  %v2489_v34 = vadd.f32 %v2473_v53, %v7368_v7  ;;  %v2534_v19 = vsel %vm1336_vm7, %v9358_v35, %v7416_v24 }
 0x4bb   : > { %v2542_v21 = vsel %vm1336_vm7, %v7416_v24, %v9358_v35  ;;  %v2609_v18 = vmul.f32 0.5, %v7536_v40  ;;  %v7564_v14 = vadd.f32 %v2576_v5, %v2495_v3  ;;  %v2540_v52 = vsel %vm1336_vm7, %v9356_v17, %v9357_v39 }
 0x4bc   : > { %v2565_v7 = vmul.f32 %v2549_v46, %v2532_v55  ;;  %v2572_v63 = vmul.f32 %v2556_v38, %v2543_v42  ;;  %v2533_v24 = vsel %vm1336_vm7, %v9359_v50, %v7474_v54  ;;  %v2610_v61 = vmul.f32 0.5, %v7548_v6 }
 0x4bd   : > { %v2525_v49 = vpop.permute.xlu0 %2524  ;;  %v2569_v11 = vmul.f32 %v2553_v23, %v2534_v19  ;;  %v2570_v30 = vmul.f32 %v2554_v10, %v2542_v21  ;;  %v2607_v26 = vmul.f32 0.5, %v7550_v57  ;;  %4246 = vtanh.f32 %v2609_v18 }
 0x4be   : > { %v2536_v41 = vsel %vm1336_vm7, %v7280_v48, %v2525_v49  ;;  %v2544_v28 = vsel %vm1336_vm7, %v2525_v49, %v7280_v48  ;;  %v2571_v48 = vmul.f32 %v2555_v22, %v2535_v12  ;;  %v2550_v22 = vld [vmem:[#allocation5 + $0x408] sm:$0xff]  ;;  %v2567_v12 = vmul.f32 %v2551_v60, %v2533_v24 }
 0x4bf   : > { %v2573_v0 = vmul.f32 %v2557_v9, %v2536_v41  ;;  %v2574_v37 = vmul.f32 %v2558_v8, %v2544_v28  ;;  %4248 = vtanh.f32 %v2610_v61  ;;  %v7597_v5 = vadd.f32 %v2572_v63, %v2491_v32 }
 0x4c0   : > { %v7581_v58 = vadd.f32 %v2571_v48, %v2490_v1  ;;  %v2608_v1 = vmul.f32 0.5, %v7564_v14  ;;  %4250 = vtanh.f32 %v2607_v26  ;;  %v2566_v17 = vmul.f32 %v2550_v22, %v2540_v52 }
 0x4c1   : > { %v7571_v31 = vadd.f32 %v2573_v0, %v7487_v43  ;;  %v7579_v62 = vadd.f32 %v2574_v37, %v7492_v16  ;;  %v2541_v43 = vsel %vm1336_vm7, %v7474_v54, %v9359_v50  ;;  %v7604_v55 = vadd.f32 %v2570_v30, %v2489_v34 }
 0x4c2   : > { %v2568_v49 = vmul.f32 %v2552_v56, %v2541_v43  ;;  %4252 = vtanh.f32 %v2608_v1  ;;  %v2603_v39 = vmul.f32 0.5, %v7581_v58  ;;  %v7607_v3 = vadd.f32 %v2567_v12, %v7462_v20 }
 0x4c3   : > { %v2605_v54 = vmul.f32 0.5, %v7571_v31  ;;  %v2606_v44 = vmul.f32 0.5, %v7579_v62  ;;  %v4247_v46 = vpop.eup %4246  ;;  %v2485_v38 = vadd.f32 %v7464_v15, %v7438_v4  ;;  %v7617_v48 = vadd.f32 %v2565_v7, %v7494_v36 }
 0x4c4   : > { %v2602_v20 = vmul.f32 0.5, %v7604_v55  ;;  %v2641_v10 = vmul.f32 0.5, %v4247_v46 }
 0x4c5   : > { %v2531_v9 = vpop.permute.xlu0 %2530  ;;  %4254 = vtanh.f32 %v2605_v54  ;;  %v4249_v37 = vpop.eup %4248  ;;  %v7620_v32 = vadd.f32 %v2566_v17, %v2485_v38  ;;  %v2597_v23 = vmul.f32 0.5, %v7617_v48 }
 0x4c6   : > { %v2539_v53 = vsel %vm1336_vm7, %v7346_v59, %v2531_v9  ;;  %v2547_v16 = vsel %vm1336_vm7, %v2531_v9, %v7346_v59  ;;  %v7601_v59 = vadd.f32 %v2569_v11, %v2488_v51  ;;  %4256 = vtanh.f32 %v2606_v44  ;;  %v4251_v51 = vpop.eup %4250 }
 0x4c7   : > { %v2579_v27 = vmul.f32 %v2563_v47, %v2539_v53  ;;  %v2580_v8 = vmul.f32 %v2564_v25, %v2547_v16  ;;  %v2598_v35 = vmul.f32 0.5, %v7620_v32  ;;  %v2642_v21 = vmul.f32 0.5, %v4249_v37 }
 0x4c8   : > { %v2601_v42 = vmul.f32 0.5, %v7601_v59  ;;  %v4253_v34 = vpop.eup %4252  ;;  %v2639_v7 = vmul.f32 0.5, %v4251_v51  ;;  %v2657_v25 = vadd.f32 0.5, %v2641_v10 }
 0x4c9   : > { %v2595_v41 = vadd.f32 %v2579_v27, %v7518_v33  ;;  %v2596_v28 = vadd.f32 %v2580_v8, %v7523_v29  ;;  %v2604_v33 = vmul.f32 0.5, %v7597_v5  ;;  %v7611_v29 = vadd.f32 %v2568_v49, %v7477_v2 }
 0x4ca   : > { %v2599_v2 = vmul.f32 0.5, %v7607_v3  ;;  %v2640_v50 = vmul.f32 0.5, %v4253_v34  ;;  %v2658_v56 = vadd.f32 0.5, %v2642_v21  ;;  %v2655_v53 = vadd.f32 0.5, %v2639_v7  ;;  %v2684_v21 = vld [vmem:[#allocation7 + $0x38] sm:$0xff] }
 0x4cb   : > { %v2611_v0 = vmul.f32 0.5, %v2595_v41  ;;  %v2612_v45 = vmul.f32 0.5, %v2596_v28  ;;  %v2600_v4 = vmul.f32 0.5, %v7611_v29  ;;  %v4255_v15 = vpop.eup %4254  ;;  %v2673_v54 = vmul.f32 %v2657_v25, %v7536_v40 }
 0x4cc   : > { %v4257_v36 = vpop.eup %4256  ;;  %v2637_v61 = vmul.f32 0.5, %v4255_v15  ;;  %v2656_v12 = vadd.f32 0.5, %v2640_v50  ;;  %v2701_v50 = vpop.permute.xlu2 %2700 }
 0x4cd   : > { %4258 = vtanh.f32 %v2611_v0  ;;  %v2638_v43 = vmul.f32 0.5, %v4257_v36 }
 0x4ce   : > { %4260 = vtanh.f32 %v2612_v45  ;;  %v2653_v49 = vadd.f32 0.5, %v2637_v61  ;;  %v2672_v38 = vmul.f32 %v2656_v12, %v7564_v14 }
 0x4cf   : > { %4262 = vtanh.f32 %v2603_v39  ;;  %v2674_v39 = vmul.f32 %v2658_v56, %v7548_v6  ;;  %v2654_v0 = vadd.f32 0.5, %v2638_v43  ;;  %v2706_v43 = vpop.permute.xlu0 %2705 }
 0x4d0   : > { %4264 = vtanh.f32 %v2604_v33  ;;  %v2669_v40 = vmul.f32 %v2653_v49, %v7571_v31 }
 0x4d1   : > { %4266 = vtanh.f32 %v2601_v42  ;;  %v2670_v6 = vmul.f32 %v2654_v0, %v7579_v62 }
 0x4d2   : > { %4268 = vtanh.f32 %v2602_v20 }
 0x4d3   : > { %v4259_v19 = vpop.eup %4258  ;;  %4270 = vtanh.f32 %v2599_v2 }
 0x4d4   : > { %v4261_v18 = vpop.eup %4260  ;;  %v2643_v52 = vmul.f32 0.5, %v4259_v19  ;;  %4272 = vtanh.f32 %v2600_v4  ;;  %v2677_v19 = vld [vmem:[#allocation7] sm:$0xff] }
 0x4d5   : > { %v4263_v63 = vpop.eup %4262  ;;  %v2644_v60 = vmul.f32 0.5, %v4261_v18  ;;  %4274 = vtanh.f32 %v2597_v23  ;;  %v2696_v18 = vpop.permute.xlu1 %2695 }
 0x4d6   : > { %v4265_v24 = vpop.eup %4264  ;;  %v2659_v47 = vadd.f32 0.5, %v2643_v52  ;;  %4276 = vtanh.f32 %v2598_v35  ;;  %v2635_v16 = vmul.f32 0.5, %v4263_v63 }
 0x4d7   : > { %v4267_v11 = vpop.eup %4266  ;;  %v2660_v30 = vadd.f32 0.5, %v2644_v60  ;;  %v2636_v27 = vmul.f32 0.5, %v4265_v24 }
 0x4d8   : > { %v4269_v9 = vpop.eup %4268  ;;  %v2675_v26 = vmul.f32 %v2659_v47, %v2595_v41  ;;  %v2633_v44 = vmul.f32 0.5, %v4267_v11  ;;  %v2671_v41 = vmul.f32 %v2655_v53, %v7550_v57  ;;  %v2651_v33 = vadd.f32 0.5, %v2635_v16 }
 0x4d9   : > { %v4271_v1 = vpop.eup %4270  ;;  %v2676_v22 = vmul.f32 %v2660_v30, %v2596_v28  ;;  %v2634_v45 = vmul.f32 0.5, %v4269_v9  ;;  %v2652_v42 = vadd.f32 0.5, %v2636_v27 }
 0x4da   : > { %v4273_v8 = vpop.eup %4272  ;;  %2765 = vmatpush.msra.mxu2 %v2675_v26  ;;  %v2631_v28 = vmul.f32 0.5, %v4271_v1  ;;  %v2649_v20 = vadd.f32 0.5, %v2633_v44  ;;  %v2667_v57 = vmul.f32 %v2651_v33, %v7581_v58 }
 0x4db   : > { %v4275_v17 = vpop.eup %4274  ;;  %2806 = vmatpush.msra.mxu3 %v2676_v22  ;;  %v2632_v37 = vmul.f32 0.5, %v4273_v8  ;;  %v2650_v2 = vadd.f32 0.5, %v2634_v45  ;;  %v2668_v15 = vmul.f32 %v2652_v42, %v7597_v5 }
 0x4dc   : > { %v4277_v46 = vpop.eup %4276  ;;  %2766 = vmatpush.msra.mxu2 %v2673_v54  ;;  %v2629_v51 = vmul.f32 0.5, %v4275_v17  ;;  %v2647_v4 = vadd.f32 0.5, %v2631_v28  ;;  %v2665_v23 = vmul.f32 %v2649_v20, %v7601_v59  ;;  %v2678_v59 = vld [vmem:[#allocation7 + $0x8] sm:$0xff] }
 0x4dd   : > { %2807 = vmatpush.msra.mxu3 %v2674_v39  ;;  %v2630_v34 = vmul.f32 0.5, %v4277_v46  ;;  %v2648_v14 = vadd.f32 0.5, %v2632_v37  ;;  %v2666_v31 = vmul.f32 %v2650_v2, %v7604_v55  ;;  %v2679_v55 = vld [vmem:[#allocation7 + $0x10] sm:$0xff]  ;;  %v2711_v8 = vpop.permute.xlu1 %2710  ;;  %v2721_v2 = vpop.permute.xlu0 %2720 }
 0x4de   : > { %2767 = vmatpush.msra.mxu2 %v2671_v41  ;;  %v2645_v36 = vadd.f32 0.5, %v2629_v51  ;;  %v2663_v62 = vmul.f32 %v2647_v4, %v7607_v3  ;;  %v2680_v3 = vld [vmem:[#allocation7 + $0x18] sm:$0xff]  ;;  %v2716_v41 = vpop.permute.xlu2 %2715 }
 0x4df   : > { %2808 = vmatpush.msra.mxu3 %v2672_v38  ;;  %v2646_v10 = vadd.f32 0.5, %v2630_v34  ;;  %v2664_v35 = vmul.f32 %v2648_v14, %v7611_v29  ;;  %v2681_v29 = vld [vmem:[#allocation7 + $0x20] sm:$0xff] }
 0x4e0   : > { %2768 = vmatpush.msra.mxu2 %v2669_v40  ;;  %v2661_v58 = vmul.f32 %v2645_v36, %v7617_v48  ;;  %v2682_v48 = vld [vmem:[#allocation7 + $0x28] sm:$0xff] }
 0x4e1   : > { %2809 = vmatpush.msra.mxu3 %v2670_v6  ;;  %v2662_v5 = vmul.f32 %v2646_v10, %v7620_v32  ;;  %v2683_v32 = vld [vmem:[#allocation7 + $0x30] sm:$0xff] }
 0x4e2   : > { %2769 = vmatpush.msra.mxu2 %v2667_v57 }
 0x4e3   : > { %2810 = vmatpush.msra.mxu3 %v2668_v15 }
 0x4e4   : > { %2770 = vmatpush.msra.mxu2 %v2665_v23 }
 0x4e5   : > { %2811 = vmatpush.msra.mxu3 %v2666_v31 }
 0x4e6   : > { %2771 = vmatpush.msra.mxu2 %v2663_v62 }
 0x4e7   : > { %2812 = vmatpush.msra.mxu3 %v2664_v35  ;;  %v2726_v35 = vpop.permute.xlu1 %2725 }
 0x4e8   : > { %2772 = vmatpush.msra.mxu2 %v2661_v58 }
 0x4e9   : > { %2813 = vmatpush.msra.mxu3 %v2662_v5  ;;  %4061 = vmatmul.msk.f32.vlgmr.msra.gmra.mxu2 %vm1538_vm8, %v2677_v19 }
 0x4ea   : > { %4069 = vmatmul.msk.f32.vlgmr.msra.gmra.mxu3 %vm1538_vm8, %v2677_v19 }
 0x4f1   : > { %4062 = vmatmul.msk.f32.gmra.mxu2 %vm1538_vm8, %v2678_v59 }
 0x4f2   : > { %4070 = vmatmul.msk.f32.gmra.mxu3 %vm1538_vm8, %v2678_v59 }
 0x4f9   : > { %4063 = vmatmul.msk.f32.gmra.mxu2 %vm1538_vm8, %v2679_v55 }
 0x4fa   : > { %4071 = vmatmul.msk.f32.gmra.mxu3 %vm1538_vm8, %v2679_v55 }
 0x501   : > { %4064 = vmatmul.msk.f32.gmra.mxu2 %vm1538_vm8, %v2680_v3 }
 0x502   : > { %4072 = vmatmul.msk.f32.gmra.mxu3 %vm1538_vm8, %v2680_v3 }
 0x509   : > { %4065 = vmatmul.msk.f32.gmra.mxu2 %vm1538_vm8, %v2681_v29 }
 0x50a   : > { %4073 = vmatmul.msk.f32.gmra.mxu3 %vm1538_vm8, %v2681_v29 }
 0x511   : > { %4066 = vmatmul.msk.f32.gmra.mxu2 %vm1538_vm8, %v2682_v48 }
 0x512   : > { %4074 = vmatmul.msk.f32.gmra.mxu3 %vm1538_vm8, %v2682_v48 }
 0x519   : > { %4067 = vmatmul.msk.f32.gmra.mxu2 %vm1538_vm8, %v2683_v32 }
 0x51a   : > { %4075 = vmatmul.msk.f32.gmra.mxu3 %vm1538_vm8, %v2683_v32 }
 0x521   : > { %4068 = vmatmul.msk.f32.gmra.mxu2 %vm1538_vm8, %v2684_v21 }
 0x522   : > { %4076 = vmatmul.msk.f32.gmra.mxu3 %vm1538_vm8, %v2684_v21 }
 0x56c   : > { %v2774_v52 = vpop.f32.mrf.mxu2 }
 0x56d   : > { %v2775_v7 = vadd.f32 %v2774_v52, %v2696_v18  ;;  %v2815_v63 = vpop.f32.mrf.mxu3 }
 0x56e   : > { %v2816_v51 = vadd.f32 %v2815_v63, %v2696_v18 }
 0x56f   : > { %v2839_v60 = vmul.f32 0.5, %v2775_v7 }
 0x570   : > { %v2840_v14 = vmul.f32 0.5, %v2816_v51 }
 0x571   : > { %4278 = vtanh.f32 %v2839_v60 }
 0x574   : > { %v2777_v24 = vpop.f32.mrf.mxu2 }
 0x575   : > { %v2778_v47 = vadd.f32 %v2777_v24, %v2701_v50  ;;  %v2818_v25 = vpop.f32.mrf.mxu3 }
 0x576   : > { %v7672_v58 = vadd.f32 %v2818_v25, %v2701_v50  ;;  %v2731_v50 = vpop.permute.xlu2 %2730 }
 0x577   : > { %v4279_v61 = vpop.eup %4278  ;;  %v2841_v11 = vmul.f32 0.5, %v2778_v47 }
 0x578   : > { %v2871_v30 = vmul.f32 0.5, %v4279_v61  ;;  %v2842_v21 = vmul.f32 0.5, %v7672_v58 }
 0x579   : > { %4280 = vtanh.f32 %v2841_v11 }
 0x57a   : > { %v2887_v56 = vadd.f32 0.5, %v2871_v30 }
 0x57c   : > { %v7656_v9 = vmul.f32 %v2887_v56, %v2775_v7  ;;  %v2780_v26 = vpop.f32.mrf.mxu2 }
 0x57d   : > { %v2781_v53 = vadd.f32 %v2780_v26, %v2706_v43  ;;  %v2821_v16 = vpop.f32.mrf.mxu3 }
 0x57e   : > { %3016 = vrot.lane.b32.xlu2 %v7656_v9, %s4563_s27  ;;  %v2822_v52 = vadd.f32 %v2821_v16, %v2706_v43 }
 0x57f   : > { %v4281_v1 = vpop.eup %4280  ;;  %v2843_v22 = vmul.f32 0.5, %v2781_v53 }
 0x580   : > { %v2873_v12 = vmul.f32 0.5, %v4281_v1  ;;  %v2844_v11 = vmul.f32 0.5, %v2822_v52 }
 0x581   : > { %4282 = vtanh.f32 %v2843_v22 }
 0x582   : > { %v2889_v27 = vadd.f32 0.5, %v2873_v12 }
 0x584   : > { %v7660_v54 = vmul.f32 %v2889_v27, %v2778_v47  ;;  %v2783_v49 = vpop.f32.mrf.mxu2 }
 0x585   : > { %v2784_v44 = vadd.f32 %v2783_v49, %v2711_v8  ;;  %v2824_v17 = vpop.f32.mrf.mxu3 }
 0x586   : > { %3018 = vrot.lane.b32.xlu0 %v7660_v54, %s4563_s27  ;;  %v2825_v62 = vadd.f32 %v2824_v17, %v2711_v8 }
 0x587   : > { %v4283_v39 = vpop.eup %4282  ;;  %v2845_v0 = vmul.f32 0.5, %v2784_v44 }
 0x588   : > { %v2875_v45 = vmul.f32 0.5, %v4283_v39  ;;  %v2846_v3 = vmul.f32 0.5, %v2825_v62 }
 0x589   : > { %4284 = vtanh.f32 %v2845_v0 }
 0x58a   : > { %v2891_v46 = vadd.f32 0.5, %v2875_v45 }
 0x58c   : > { %v7664_v33 = vmul.f32 %v2891_v46, %v2781_v53  ;;  %v2786_v28 = vpop.f32.mrf.mxu2 }
 0x58d   : > { %v2787_v38 = vadd.f32 %v2786_v28, %v2716_v41  ;;  %v2827_v42 = vpop.f32.mrf.mxu3 }
 0x58e   : > { %3020 = vrot.lane.b32.xlu1 %v7664_v33, %s4563_s27  ;;  %v2828_v24 = vadd.f32 %v2827_v42, %v2716_v41 }
 0x58f   : > { %v4285_v37 = vpop.eup %4284  ;;  %v2847_v40 = vmul.f32 0.5, %v2787_v38 }
 0x590   : > { %v2877_v20 = vmul.f32 0.5, %v4285_v37  ;;  %v2848_v43 = vmul.f32 0.5, %v2828_v24 }
 0x591   : > { %4286 = vtanh.f32 %v2847_v40 }
 0x592   : > { %v2893_v6 = vadd.f32 0.5, %v2877_v20 }
 0x594   : > { %v7668_v34 = vmul.f32 %v2893_v6, %v2784_v44  ;;  %v2789_v57 = vpop.f32.mrf.mxu2 }
 0x595   : > { %v2790_v4 = vadd.f32 %v2789_v57, %v2721_v2  ;;  %v2830_v15 = vpop.f32.mrf.mxu3 }
 0x596   : > { %3022 = vrot.lane.b32.xlu2 %v7668_v34, %s4563_s27  ;;  %v2831_v49 = vadd.f32 %v2830_v15, %v2721_v2 }
 0x597   : > { %v4287_v23 = vpop.eup %4286  ;;  %v2849_v36 = vmul.f32 0.5, %v2790_v4 }
 0x598   : > { %v2879_v31 = vmul.f32 0.5, %v4287_v23  ;;  %v2850_v46 = vmul.f32 0.5, %v2831_v49 }
 0x599   : > { %4288 = vtanh.f32 %v2849_v36 }
 0x59a   : > { %4290 = vtanh.f32 %v2840_v14  ;;  %v2895_v10 = vadd.f32 0.5, %v2879_v31 }
 0x59c   : > { %v7674_v19 = vmul.f32 %v2895_v10, %v2787_v38  ;;  %v2792_v5 = vpop.f32.mrf.mxu2 }
 0x59d   : > { %v2793_v59 = vadd.f32 %v2792_v5, %v2726_v35  ;;  %v2833_v48 = vpop.f32.mrf.mxu3 }
 0x59e   : > { %3024 = vrot.lane.b32.xlu0 %v7674_v19, %s4563_s27  ;;  %v2834_v60 = vadd.f32 %v2833_v48, %v2726_v35 }
 0x59f   : > { %v4289_v55 = vpop.eup %4288  ;;  %v2851_v29 = vmul.f32 0.5, %v2793_v59 }
 0x5a0   : > { %v4291_v32 = vpop.eup %4290  ;;  %v2881_v18 = vmul.f32 0.5, %v4289_v55  ;;  %v2852_v26 = vmul.f32 0.5, %v2834_v60 }
 0x5a1   : > { %4292 = vtanh.f32 %v2851_v29  ;;  %v2872_v63 = vmul.f32 0.5, %v4291_v32 }
 0x5a2   : > { %v2897_v7 = vadd.f32 0.5, %v2881_v18  ;;  %4294 = vtanh.f32 %v2846_v3 }
 0x5a3   : > { %4296 = vtanh.f32 %v2842_v21  ;;  %v2888_v56 = vadd.f32 0.5, %v2872_v63  ;;  %v7744_v21 = vpop.permute.xlu2 %2972 }
 0x5a4   : > { %v7679_v47 = vmul.f32 %v2897_v7, %v2790_v4  ;;  %v2795_v25 = vpop.f32.mrf.mxu2  ;;  %v7762_v7 = vpop.permute.xlu0 %2962 }
 0x5a5   : > { %v2796_v61 = vadd.f32 %v2795_v25, %v2731_v50  ;;  %v2836_v22 = vpop.f32.mrf.mxu3  ;;  %v7683_v8 = vmul.f32 %v2888_v56, %v2816_v51 }
 0x5a6   : > { %3026 = vrot.lane.b32.xlu1 %v7679_v47, %s4563_s27  ;;  %v2837_v39 = vadd.f32 %v2836_v22, %v2731_v50 }
 0x5a7   : > { %v4293_v30 = vpop.eup %4292  ;;  %v2853_v53 = vmul.f32 0.5, %v2796_v61 }
 0x5a8   : > { %v2883_v16 = vmul.f32 0.5, %v4293_v30  ;;  %v4295_v1 = vpop.eup %4294  ;;  %v2854_v42 = vmul.f32 0.5, %v2837_v39 }
 0x5a9   : > { %4298 = vtanh.f32 %v2853_v53  ;;  %v4297_v12 = vpop.eup %4296  ;;  %v2878_v44 = vmul.f32 0.5, %v4295_v1 }
 0x5aa   : > { %4300 = vtanh.f32 %v2844_v11  ;;  %v2899_v27 = vadd.f32 0.5, %v2883_v16  ;;  %v2874_v0 = vmul.f32 0.5, %v4297_v12 }
 0x5ab   : > { %4302 = vtanh.f32 %v2852_v26  ;;  %v2894_v28 = vadd.f32 0.5, %v2878_v44  ;;  %v7758_v18 = vpop.permute.xlu2 %2987 }
 0x5ac   : > { %4304 = vtanh.f32 %v2848_v43  ;;  %v7685_v17 = vmul.f32 %v2899_v27, %v2793_v59  ;;  %v2890_v40 = vadd.f32 0.5, %v2874_v0  ;;  %v7776_v50 = vpop.permute.xlu0 %2977 }
 0x5ad   : > { %4306 = vtanh.f32 %v2850_v46  ;;  %v7691_v2 = vmul.f32 %v2894_v28, %v2825_v62 }
 0x5ae   : > { %3032 = vrot.lane.b32.xlu1 %v7683_v8, %s4563_s27  ;;  %3028 = vrot.lane.b32.xlu2 %v7685_v17, %s4563_s27  ;;  %4308 = vtanh.f32 %v2854_v42  ;;  %v7696_v15 = vmul.f32 %v2890_v40, %v7672_v58 }
 0x5af   : > { %v4299_v45 = vpop.eup %4298  ;;  %9360 = vst [vmem:[#allocation38_spill] sm:$0xff] %v7691_v2 }
 0x5b0   : > { %v4301_v41 = vpop.eup %4300  ;;  %v2885_v38 = vmul.f32 0.5, %v4299_v45 }
 0x5b1   : > { %v4303_v37 = vpop.eup %4302  ;;  %v2876_v6 = vmul.f32 0.5, %v4301_v41 }
 0x5b2   : > { %v4305_v20 = vpop.eup %4304  ;;  %v2901_v51 = vadd.f32 0.5, %v2885_v38  ;;  %v2884_v57 = vmul.f32 0.5, %v4303_v37 }
 0x5b3   : > { %v2880_v14 = vmul.f32 0.5, %v4305_v20  ;;  %v2892_v23 = vadd.f32 0.5, %v2876_v6  ;;  %v4307_v31 = vpop.eup %4306 }
 0x5b4   : > { %v7693_v4 = vmul.f32 %v2901_v51, %v2796_v61  ;;  %v2900_v36 = vadd.f32 0.5, %v2884_v57  ;;  %v4309_v62 = vpop.eup %4308  ;;  %v2882_v5 = vmul.f32 0.5, %v4307_v31  ;;  %v7788_v11 = vpop.permute.xlu0 %2992  ;;  %v2931_v31 = vld [vmem:[#allocation8 + $0x258] sm:$0xff] }
 0x5b5   : > { %v2896_v10 = vadd.f32 0.5, %v2880_v14  ;;  %v7704_v35 = vmul.f32 %v2892_v23, %v2822_v52  ;;  %v2886_v55 = vmul.f32 0.5, %v4309_v62  ;;  %v7760_v52 = vpop.permute.xlu1 %2967 }
 0x5b6   : > { %3038 = vrot.lane.b32.xlu1 %v7691_v2, %s4563_s27  ;;  %3030 = vrot.lane.b32.xlu0 %v7693_v4, %s4563_s27  ;;  %v7706_v58 = vmul.f32 %v2900_v36, %v2834_v60  ;;  %v2898_v3 = vadd.f32 0.5, %v2882_v5  ;;  %v2930_v36 = vld [vmem:[#allocation8 + $0x250] sm:$0xff] }
 0x5b7   : > { %3034 = vrot.lane.b32.xlu2 %v7696_v15, %s4563_s27  ;;  %v7708_v59 = vmul.f32 %v2896_v10, %v2828_v24  ;;  %v2902_v29 = vadd.f32 0.5, %v2886_v55  ;;  %v2946_v10 = vmul.f32 %v2930_v36, %v7679_v47  ;;  %v3074_v5 = vld [vmem:[#allocation8 + $0x50] sm:$0xff]  ;;  %v3075_v55 = vld [vmem:[#allocation8 + $0x58] sm:$0xff] }
 0x5b8   : > { %9361 = vst [vmem:[#allocation40_spill] sm:$0xff] %v7706_v58  ;;  %v7716_v48 = vmul.f32 %v2898_v3, %v2831_v49 }
 0x5b9   : > { %v7718_v32 = vmul.f32 %v2902_v29, %v2837_v39 }
 0x5ba   : > { %v2947_v62 = vmul.f32 %v2931_v31, %v7716_v48 }
 0x5bd   : > { %v7770_v60 = vpop.permute.xlu1 %2982 }
 0x5be   : > { %3044 = vrot.lane.b32.xlu1 %v7706_v58, %s4563_s27  ;;  %3036 = vrot.lane.b32.xlu0 %v7704_v35, %s4563_s27 }
 0x5bf   : > { %3040 = vrot.lane.b32.xlu2 %v7708_v59, %s4563_s27 }
 0x5c5   : > { %v7786_v25 = vpop.permute.xlu1 %2997 }
 0x5c6   : > { %3114 = vrot.lane.b32.xlu1 %v7660_v54, %s4564_s30  ;;  %3042 = vrot.lane.b32.xlu0 %v7716_v48, %s4563_s27  ;;  %9362 = vst [vmem:[#allocation35_spill] sm:$0xff] %v7786_v25 }
 0x5c7   : > { %3046 = vrot.lane.b32.xlu2 %v7718_v32, %s4563_s27  ;;  %s8658_s27 = scalar_lea.vmem [#allocation11], %s4782_s23  ;;  %s4083_s23 = sshll.u32 %s4654_s21, 4 }
 0x5c8   : > { %s3916_s21 = sshll.u32 %s8658_s27, 4  ;;  %s3917_s21 = int_to_ptr.vmem [resolvable:$true] %s3916_s21 }
 0x5ce   : > { %3120 = vrot.lane.b32.xlu1 %v7674_v19, %s4564_s30  ;;  %3112 = vrot.lane.b32.xlu0 %v7656_v9, %s4564_s30 }
 0x5cf   : > { %3116 = vrot.lane.b32.xlu2 %v7664_v33, %s4564_s30 }
 0x5d6   : > { %3126 = vrot.lane.b32.xlu1 %v7693_v4, %s4564_s30  ;;  %3118 = vrot.lane.b32.xlu0 %v7668_v34, %s4564_s30 }
 0x5d7   : > { %3122 = vrot.lane.b32.xlu2 %v7679_v47, %s4564_s30 }
 0x5d8   : > { %v3017_v63 = vpop.permute.xlu2 %3016 }
 0x5de   : > { %3132 = vrot.lane.b32.xlu1 %v7704_v35, %s4564_s30  ;;  %3124 = vrot.lane.b32.xlu0 %v7685_v17, %s4564_s30 }
 0x5df   : > { %3128 = vrot.lane.b32.xlu2 %v7683_v8, %s4564_s30 }
 0x5e6   : > { %3138 = vrot.lane.b32.xlu1 %v7716_v48, %s4564_s30  ;;  %3130 = vrot.lane.b32.xlu0 %v7696_v15, %s4564_s30 }
 0x5e7   : > { %3134 = vrot.lane.b32.xlu2 %v7691_v2, %s4564_s30 }
 0x5ee   : > { %3209 = vrot.lane.b32.xlu1 %v7656_v9, %s4565_s22  ;;  %3136 = vrot.lane.b32.xlu0 %v7708_v59, %s4564_s30 }
 0x5ef   : > { %3140 = vrot.lane.b32.xlu2 %v7706_v58, %s4564_s30 }
 0x5f0   : > { %v3023_v24 = vpop.permute.xlu2 %3022 }
 0x5f6   : > { %3215 = vrot.lane.b32.xlu1 %v7668_v34, %s4565_s22  ;;  %3142 = vrot.lane.b32.xlu0 %v7718_v32, %s4564_s30 }
 0x5f7   : > { %3211 = vrot.lane.b32.xlu2 %v7660_v54, %s4565_s22 }
 0x5f8   : > { %v3019_v56 = vpop.permute.xlu0 %3018 }
 0x5fe   : > { %3221 = vrot.lane.b32.xlu1 %v7685_v17, %s4565_s22  ;;  %3213 = vrot.lane.b32.xlu0 %v7664_v33, %s4565_s22 }
 0x5ff   : > { %3217 = vrot.lane.b32.xlu2 %v7674_v19, %s4565_s22 }
 0x600   : > { %v3021_v30 = vpop.permute.xlu1 %3020 }
 0x606   : > { %3227 = vrot.lane.b32.xlu1 %v7696_v15, %s4565_s22  ;;  %3219 = vrot.lane.b32.xlu0 %v7679_v47, %s4565_s22 }
 0x607   : > { %3223 = vrot.lane.b32.xlu2 %v7693_v4, %s4565_s22 }
 0x608   : > { %v3029_v61 = vpop.permute.xlu2 %3028 }
 0x60e   : > { %3233 = vrot.lane.b32.xlu1 %v7708_v59, %s4565_s22  ;;  %3225 = vrot.lane.b32.xlu0 %v7683_v8, %s4565_s22 }
 0x60f   : > { %3229 = vrot.lane.b32.xlu2 %v7704_v35, %s4565_s22 }
 0x610   : > { %v3025_v1 = vpop.permute.xlu0 %3024 }
 0x611   : > { %v3035_v26 = vpop.permute.xlu2 %3034 }
 0x612   : > { %v7798_v53 = vsel %vm651_vm0, %v3019_v56, %v3035_v26  ;;  %v7802_v43 = vsel %vm651_vm0, %v3035_v26, %v3019_v56  ;;  %v3010_v26 = vadd.f32 %v7758_v18, %v2946_v10 }
 0x616   : > { %3239 = vrot.lane.b32.xlu1 %v7718_v32, %s4565_s22  ;;  %3231 = vrot.lane.b32.xlu0 %v7691_v2, %s4565_s22 }
 0x617   : > { %3235 = vrot.lane.b32.xlu2 %v7716_v48, %s4565_s22 }
 0x618   : > { %v3027_v16 = vpop.permute.xlu1 %3026 }
 0x619   : > { %v3041_v22 = vpop.permute.xlu2 %3040 }
 0x61a   : > { %v7812_v12 = vsel %vm651_vm0, %v3025_v1, %v3041_v22  ;;  %v7816_v27 = vsel %vm651_vm0, %v3041_v22, %v3025_v1  ;;  %v3011_v1 = vadd.f32 %v7758_v18, %v2947_v62  ;;  %v3161_v18 = vld [vmem:[#allocation8 + $0x80] sm:$0xff] }
 0x61e   : > { %3310 = vrot.lane.b32.xlu1 %v7664_v33, %s4566_s24  ;;  %3237 = vrot.lane.b32.xlu0 %v7706_v58, %s4565_s22 }
 0x61f   : > { %3306 = vrot.lane.b32.xlu2 %v7656_v9, %s4566_s24 }
 0x620   : > { %v3033_v49 = vpop.permute.xlu1 %3032 }
 0x621   : > { %v3048_v44 = vsel %vm651_vm0, %v3017_v63, %v3033_v49  ;;  %v3056_v39 = vsel %vm651_vm0, %v3033_v49, %v3017_v63  ;;  %v3047_v0 = vpop.permute.xlu2 %3046  ;;  %v2920_v63 = vld [vmem:[#allocation8 + $0x200] sm:$0xff] }
 0x626   : > { %3316 = vrot.lane.b32.xlu1 %v7679_v47, %s4566_s24  ;;  %3308 = vrot.lane.b32.xlu0 %v7660_v54, %s4566_s24 }
 0x627   : > { %3312 = vrot.lane.b32.xlu2 %v7668_v34, %s4566_s24 }
 0x628   : > { %v3039_v45 = vpop.permute.xlu1 %3038  ;;  %v3031_v46 = vpop.permute.xlu0 %3030 }
 0x629   : > { %v7836_v41 = vsel %vm651_vm0, %v3023_v24, %v3039_v45  ;;  %v7840_v28 = vsel %vm651_vm0, %v3039_v45, %v3023_v24  ;;  %v7844_v38 = vsel %vm651_vm0, %v3031_v46, %v3047_v0  ;;  %v7848_v42 = vsel %vm651_vm0, %v3047_v0, %v3031_v46  ;;  %v7850_v37 = vpop.permute.xlu2 %3116  ;;  %v2921_v24 = vld [vmem:[#allocation8 + $0x208] sm:$0xff]  ;;  %v3064_v0 = vld [vmem:[#allocation8] sm:$0xff] }
 0x62a   : > { %9363 = vst [vmem:[#allocation42_spill] sm:$0xff] %v7844_v38  ;;  %v3065_v45 = vld [vmem:[#allocation8 + $0x8] sm:$0xff]  ;;  %v2937_v46 = vmul.f32 %v2921_v24, %v7683_v8  ;;  %v3080_v31 = vmul.f32 %v3064_v0, %v3056_v39  ;;  %v2926_v39 = vld [vmem:[#allocation8 + $0x230] sm:$0xff] }
 0x62b   : > { %9364 = vst [vmem:[#allocation45_spill] sm:$0xff] %v7848_v42  ;;  %v3081_v25 = vmul.f32 %v3065_v45, %v3048_v44  ;;  %v2927_v44 = vld [vmem:[#allocation8 + $0x238] sm:$0xff]  ;;  %v2925_v38 = vld [vmem:[#allocation8 + $0x228] sm:$0xff] }
 0x62c   : > { %v3001_v10 = vadd.f32 %v7762_v7, %v2937_v46  ;;  %v2943_v0 = vmul.f32 %v2927_v44, %v7691_v2 }
 0x62e   : > { %3322 = vrot.lane.b32.xlu1 %v7683_v8, %s4566_s24  ;;  %3314 = vrot.lane.b32.xlu0 %v7674_v19, %s4566_s24 }
 0x62f   : > { %3318 = vrot.lane.b32.xlu2 %v7685_v17, %s4566_s24 }
 0x630   : > { %v3045_v40 = vpop.permute.xlu1 %3044  ;;  %v3037_v20 = vpop.permute.xlu0 %3036 }
 0x631   : > { %v7860_v51 = vsel %vm651_vm0, %v3029_v61, %v3045_v40  ;;  %v7864_v6 = vsel %vm651_vm0, %v3045_v40, %v3029_v61  ;;  %v7868_v57 = vsel %vm651_vm0, %v3021_v30, %v3037_v20  ;;  %v7872_v14 = vsel %vm651_vm0, %v3037_v20, %v3021_v30  ;;  %v7874_v23 = vpop.permute.xlu2 %3122 }
 0x632   : > { %v2936_v40 = vmul.f32 %v2920_v63, %v7656_v9 }
 0x634   : > { %v3000_v62 = vadd.f32 %v7762_v7, %v2936_v40  ;;  %v2942_v7 = vmul.f32 %v2926_v39, %v7668_v34  ;;  %v2924_v40 = vld [vmem:[#allocation8 + $0x220] sm:$0xff]  ;;  %v2941_v39 = vmul.f32 %v2925_v38, %v7704_v35 }
 0x636   : > { %3328 = vrot.lane.b32.xlu1 %v7691_v2, %s4566_s24  ;;  %3320 = vrot.lane.b32.xlu0 %v7693_v4, %s4566_s24 }
 0x637   : > { %3324 = vrot.lane.b32.xlu2 %v7696_v15, %s4566_s24 }
 0x638   : > { %v7884_v3 = vpop.permute.xlu1 %3114  ;;  %v3043_v29 = vpop.permute.xlu0 %3042 }
 0x639   : > { %v3053_v61 = vsel %vm651_vm0, %v3027_v16, %v3043_v29  ;;  %v3061_v30 = vsel %vm651_vm0, %v3043_v29, %v3027_v16  ;;  %v3129_v56 = vpop.permute.xlu2 %3128  ;;  %v3162_v16 = vld [vmem:[#allocation8 + $0x88] sm:$0xff] }
 0x63a   : > { %v3090_v22 = vmul.f32 %v3074_v5, %v3061_v30  ;;  %v3091_v49 = vmul.f32 %v3075_v55, %v3053_v61  ;;  %v3096_v61 = vadd.f32 %v3080_v31, %v3000_v62  ;;  %v3097_v30 = vadd.f32 %v3081_v25, %v3001_v10  ;;  %v2932_v31 = vld [vmem:[#allocation8 + $0x260] sm:$0xff]  ;;  %v2933_v25 = vld [vmem:[#allocation8 + $0x268] sm:$0xff] }
 0x63b   : > { %v3006_v10 = vadd.f32 %v7776_v50, %v2942_v7  ;;  %v3007_v62 = vadd.f32 %v7776_v50, %v2943_v0 }
 0x63c   : > { %v7894_v20 = vadd.f32 %v3090_v22, %v3010_v26  ;;  %v7896_v36 = vadd.f32 %v3091_v49, %v3011_v1  ;;  %v3070_v22 = vld [vmem:[#allocation8 + $0x30] sm:$0xff]  ;;  %v3071_v49 = vld [vmem:[#allocation8 + $0x38] sm:$0xff] }
 0x63d   : > { %v3086_v42 = vmul.f32 %v3070_v22, %v7840_v28  ;;  %v3076_v28 = vld [vmem:[#allocation8 + $0x60] sm:$0xff] }
 0x63e   : > { %3334 = vrot.lane.b32.xlu1 %v7706_v58, %s4566_s24  ;;  %3326 = vrot.lane.b32.xlu0 %v7704_v35, %s4566_s24 }
 0x63f   : > { %3330 = vrot.lane.b32.xlu2 %v7708_v59, %s4566_s24 }
 0x640   : > { %v7906_v5 = vpop.permute.xlu1 %3120  ;;  %v3113_v55 = vpop.permute.xlu0 %3112 }
 0x641   : > { %v3144_v29 = vsel %vm748_vm1, %v3113_v55, %v3129_v56  ;;  %v3152_v63 = vsel %vm748_vm1, %v3129_v56, %v3113_v55  ;;  %v3135_v24 = vpop.permute.xlu2 %3134  ;;  %v3087_v56 = vmul.f32 %v3071_v49, %v7836_v41  ;;  %v3077_v55 = vld [vmem:[#allocation8 + $0x68] sm:$0xff]  ;;  %v2940_v41 = vmul.f32 %v2924_v40, %v7664_v33 }
 0x642   : > { %v3177_v26 = vmul.f32 %v3161_v18, %v3152_v63  ;;  %v3178_v1 = vmul.f32 %v3162_v16, %v3144_v29  ;;  %v3167_v18 = vld [vmem:[#allocation8 + $0xb0] sm:$0xff]  ;;  %v3168_v16 = vld [vmem:[#allocation8 + $0xb8] sm:$0xff]  ;;  %v2948_v63 = vmul.f32 %v2932_v31, %v7685_v17  ;;  %v3102_v49 = vadd.f32 %v3086_v42, %v3006_v10  ;;  %v3174_v10 = vld [vmem:[#allocation8 + $0xe8] sm:$0xff] }
 0x643   : > { %v3103_v7 = vadd.f32 %v3087_v56, %v3007_v62  ;;  %v3092_v40 = vmul.f32 %v3076_v28, %v7864_v6  ;;  %v2922_v31 = vld [vmem:[#allocation8 + $0x210] sm:$0xff]  ;;  %v3005_v6 = vadd.f32 %v7744_v21, %v2941_v39  ;;  %v3067_v62 = vld [vmem:[#allocation8 + $0x18] sm:$0xff] }
 0x644   : > { %v7914_v45 = vadd.f32 %v3177_v26, %v3096_v61  ;;  %v7916_v46 = vadd.f32 %v3178_v1, %v3097_v30  ;;  %v2949_v61 = vmul.f32 %v2933_v25, %v7706_v58  ;;  %v3068_v30 = vld [vmem:[#allocation8 + $0x20] sm:$0xff]  ;;  %v3069_v26 = vld [vmem:[#allocation8 + $0x28] sm:$0xff]  ;;  %v3012_v42 = vadd.f32 %v7788_v11, %v2948_v63 }
 0x645   : > { %v3084_v25 = vmul.f32 %v3068_v30, %v7872_v14  ;;  %v3085_v58 = vmul.f32 %v3069_v26, %v7868_v57  ;;  %v2938_v57 = vmul.f32 %v2922_v31, %v7660_v54 }
 0x646   : > { %9365 = vst [vmem:[#allocation53_spill] sm:$0xff] %v7914_v45  ;;  %3405 = vrot.lane.b32.xlu1 %v7660_v54, %s4567_s12  ;;  %3332 = vrot.lane.b32.xlu0 %v7716_v48, %s4566_s24  ;;  %v2923_v45 = vld [vmem:[#allocation8 + $0x218] sm:$0xff]  ;;  %v3013_v56 = vadd.f32 %v7788_v11, %v2949_v61  ;;  %v3066_v11 = vld [vmem:[#allocation8 + $0x10] sm:$0xff] }
 0x647   : > { %9366 = vst [vmem:[#allocation56_spill] sm:$0xff] %v7916_v46  ;;  %3336 = vrot.lane.b32.xlu2 %v7718_v32, %s4566_s24  ;;  %v3093_v46 = vmul.f32 %v3077_v55, %v7860_v51  ;;  %v3165_v51 = vld [vmem:[#allocation8 + $0xa0] sm:$0xff]  ;;  %v2939_v14 = vmul.f32 %v2923_v45, %v7696_v15 }
 0x648   : > { %v7930_v44 = vpop.permute.xlu1 %3126  ;;  %v3119_v29 = vpop.permute.xlu0 %3118 }
 0x649   : > { %9367 = vst [vmem:[#allocation57_spill] sm:$0xff] %v7930_v44  ;;  %v3147_v1 = vsel %vm748_vm1, %v3119_v29, %v3135_v24  ;;  %v3155_v50 = vsel %vm748_vm1, %v3135_v24, %v3119_v29  ;;  %v3141_v22 = vpop.permute.xlu2 %3140  ;;  %v3004_v24 = vadd.f32 %v7744_v21, %v2940_v41  ;;  %v3108_v21 = vadd.f32 %v3092_v40, %v3012_v42 }
 0x64a   : > { %v3183_v0 = vmul.f32 %v3167_v18, %v3155_v50  ;;  %v3184_v38 = vmul.f32 %v3168_v16, %v3147_v1  ;;  %v3166_v18 = vld [vmem:[#allocation8 + $0xa8] sm:$0xff]  ;;  %v3173_v16 = vld [vmem:[#allocation8 + $0xe0] sm:$0xff]  ;;  %v3109_v28 = vadd.f32 %v3093_v46, %v3013_v56  ;;  %v3101_v41 = vadd.f32 %v3085_v58, %v3005_v6 }
 0x64b   : > { %v3100_v55 = vadd.f32 %v3084_v25, %v3004_v24  ;;  %v3003_v31 = vadd.f32 %v7760_v52, %v2939_v14  ;;  %v3163_v25 = vld [vmem:[#allocation8 + $0x90] sm:$0xff]  ;;  %v3164_v24 = vld [vmem:[#allocation8 + $0x98] sm:$0xff]  ;;  %v2928_v6 = vld [vmem:[#allocation8 + $0x240] sm:$0xff] }
 0x64c   : > { %v7942_v44 = vadd.f32 %v3183_v0, %v3102_v49  ;;  %v7944_v2 = vadd.f32 %v3184_v38, %v3103_v7  ;;  %v3082_v49 = vmul.f32 %v3066_v11, %v7802_v43  ;;  %v3083_v7 = vmul.f32 %v3067_v62, %v7798_v53  ;;  %v3171_v43 = vld [vmem:[#allocation8 + $0xd0] sm:$0xff]  ;;  %v3172_v53 = vld [vmem:[#allocation8 + $0xd8] sm:$0xff] }
 0x64e   : > { %3411 = vrot.lane.b32.xlu1 %v7674_v19, %s4567_s12  ;;  %3403 = vrot.lane.b32.xlu0 %v7656_v9, %s4567_s12  ;;  %v3099_v56 = vadd.f32 %v3083_v7, %v3003_v31 }
 0x64f   : > { %3407 = vrot.lane.b32.xlu2 %v7664_v33, %s4567_s12 }
 0x650   : > { %v3133_v39 = vpop.permute.xlu1 %3132  ;;  %v3125_v29 = vpop.permute.xlu0 %3124 }
 0x651   : > { %v3146_v63 = vsel %vm748_vm1, %v7850_v37, %v3133_v39  ;;  %v3154_v45 = vsel %vm748_vm1, %v3133_v39, %v7850_v37  ;;  %v3150_v61 = vsel %vm748_vm1, %v3125_v29, %v3141_v22  ;;  %v3158_v30 = vsel %vm748_vm1, %v3141_v22, %v3125_v29  ;;  %v7968_v26 = vpop.permute.xlu2 %3211  ;;  %v3072_v29 = vld [vmem:[#allocation8 + $0x40] sm:$0xff] }
 0x652   : > { %v3181_v46 = vmul.f32 %v3165_v51, %v3154_v45  ;;  %v3182_v58 = vmul.f32 %v3166_v18, %v3146_v63  ;;  %v3189_v1 = vmul.f32 %v3173_v16, %v3158_v30  ;;  %v3190_v50 = vmul.f32 %v3174_v10, %v3150_v61  ;;  %v2929_v51 = vld [vmem:[#allocation8 + $0x248] sm:$0xff] }
 0x653   : > { %v3002_v22 = vadd.f32 %v7760_v52, %v2938_v57  ;;  %v2945_v39 = vmul.f32 %v2929_v51, %v7708_v59  ;;  %v3088_v30 = vmul.f32 %v3072_v29, %v7816_v27  ;;  %v9372_v29 = vld [vmem:[#allocation57_spill] sm:$0xff] }
 0x654   : > { %v7972_v0 = vadd.f32 %v3181_v46, %v3100_v55  ;;  %v7974_v38 = vadd.f32 %v3182_v58, %v3101_v41  ;;  %v7976_v37 = vadd.f32 %v3189_v1, %v3108_v21  ;;  %v7978_v40 = vadd.f32 %v3190_v50, %v3109_v28 }
 0x655   : > { %v3098_v42 = vadd.f32 %v3082_v49, %v3002_v22  ;;  %v2944_v41 = vmul.f32 %v2928_v6, %v7674_v19  ;;  %v3009_v1 = vadd.f32 %v7770_v60, %v2945_v39  ;;  %v2934_v49 = vld [vmem:[#allocation8 + $0x270] sm:$0xff] }
 0x656   : > { %3417 = vrot.lane.b32.xlu1 %v7693_v4, %s4567_s12  ;;  %3409 = vrot.lane.b32.xlu0 %v7668_v34, %s4567_s12 }
 0x657   : > { %3413 = vrot.lane.b32.xlu2 %v7679_v47, %s4567_s12  ;;  %v3008_v58 = vadd.f32 %v7770_v60, %v2944_v41  ;;  %v3078_v60 = vld [vmem:[#allocation8 + $0x70] sm:$0xff] }
 0x658   : > { %v3139_v57 = vpop.permute.xlu1 %3138  ;;  %v3131_v18 = vpop.permute.xlu0 %3130 }
 0x659   : > { %v3149_v52 = vsel %vm748_vm1, %v7874_v23, %v3139_v57  ;;  %v3157_v14 = vsel %vm748_vm1, %v3139_v57, %v7874_v23  ;;  %v3145_v16 = vsel %vm748_vm1, %v7884_v3, %v3131_v18  ;;  %v3153_v10 = vsel %vm748_vm1, %v3131_v18, %v7884_v3  ;;  %v8000_v11 = vpop.permute.xlu2 %3217  ;;  %v3073_v23 = vld [vmem:[#allocation8 + $0x48] sm:$0xff]  ;;  %v9368_v18 = vld [vmem:[#allocation45_spill] sm:$0xff] }
 0x65a   : > { %v3187_v62 = vmul.f32 %v3171_v43, %v3157_v14  ;;  %v3188_v21 = vmul.f32 %v3172_v53, %v3149_v52  ;;  %v3179_v28 = vmul.f32 %v3163_v25, %v3153_v10  ;;  %v3180_v55 = vmul.f32 %v3164_v24, %v3145_v16  ;;  %v9369_v14 = vld [vmem:[#allocation42_spill] sm:$0xff]  ;;  %v3175_v10 = vld [vmem:[#allocation8 + $0xf0] sm:$0xff] }
 0x65b   : > { %v3089_v46 = vmul.f32 %v3073_v23, %v7812_v12  ;;  %v2935_v12 = vld [vmem:[#allocation8 + $0x278] sm:$0xff]  ;;  %v3104_v43 = vadd.f32 %v3088_v30, %v3008_v58  ;;  %v3094_v52 = vmul.f32 %v3078_v60, %v9368_v18  ;;  %v9370_v16 = vld [vmem:[#allocation38_spill] sm:$0xff] }
 0x65c   : > { %v8005_v63 = vadd.f32 %v3187_v62, %v7894_v20  ;;  %v8008_v45 = vadd.f32 %v3188_v21, %v7896_v36  ;;  %v8010_v61 = vadd.f32 %v3179_v28, %v3098_v42  ;;  %v8012_v3 = vadd.f32 %v3180_v55, %v3099_v56  ;;  %v3169_v20 = vld [vmem:[#allocation8 + $0xc0] sm:$0xff]  ;;  %v3170_v36 = vld [vmem:[#allocation8 + $0xc8] sm:$0xff]  ;;  %v3079_v42 = vld [vmem:[#allocation8 + $0x78] sm:$0xff] }
 0x65d   : > { %v3105_v53 = vadd.f32 %v3089_v46, %v3009_v1  ;;  %v2950_v56 = vmul.f32 %v2934_v49, %v7693_v4  ;;  %v2951_v6 = vmul.f32 %v2935_v12, %v7718_v32  ;;  %v3176_v62 = vld [vmem:[#allocation8 + $0xf8] sm:$0xff]  ;;  %v9371_v21 = vld [vmem:[#allocation35_spill] sm:$0xff] }
 0x65e   : > { %3423 = vrot.lane.b32.xlu1 %v7704_v35, %s4567_s12  ;;  %3415 = vrot.lane.b32.xlu0 %v7685_v17, %s4567_s12  ;;  %v9373_v12 = vld [vmem:[#allocation40_spill] sm:$0xff] }
 0x65f   : > { %3419 = vrot.lane.b32.xlu2 %v7683_v8, %s4567_s12  ;;  %v3014_v28 = vadd.f32 %v9371_v21, %v2950_v56  ;;  %v3015_v55 = vadd.f32 %v9371_v21, %v2951_v6 }
 0x660   : > { %v8024_v50 = vpop.permute.xlu1 %3209  ;;  %v3137_v27 = vpop.permute.xlu0 %3136 }
 0x661   : > { %v3148_v7 = vsel %vm748_vm1, %v7906_v5, %v3137_v27  ;;  %v3156_v22 = vsel %vm748_vm1, %v3137_v27, %v7906_v5  ;;  %v8032_v31 = vpop.permute.xlu2 %3223  ;;  %v3095_v5 = vmul.f32 %v3079_v42, %v9369_v14  ;;  %v3261_v14 = vld [vmem:[#allocation8 + $0x118] sm:$0xff] }
 0x662   : > { %v3185_v25 = vmul.f32 %v3169_v20, %v3156_v22  ;;  %v3186_v24 = vmul.f32 %v3170_v36, %v3148_v7  ;;  %v3110_v20 = vadd.f32 %v3094_v52, %v3014_v28  ;;  %v3262_v7 = vld [vmem:[#allocation8 + $0x120] sm:$0xff]  ;;  %v3263_v22 = vld [vmem:[#allocation8 + $0x128] sm:$0xff]  ;;  %v3260_v52 = vld [vmem:[#allocation8 + $0x110] sm:$0xff] }
 0x663   : > { %v3111_v36 = vadd.f32 %v3095_v5, %v3015_v55  ;;  %v3268_v5 = vld [vmem:[#allocation8 + $0x150] sm:$0xff] }
 0x664   : > { %v8036_v51 = vadd.f32 %v3185_v25, %v3104_v43  ;;  %v8038_v57 = vadd.f32 %v3186_v24, %v3105_v53 }
 0x666   : > { %3429 = vrot.lane.b32.xlu1 %v7716_v48, %s4567_s12  ;;  %3421 = vrot.lane.b32.xlu0 %v7696_v15, %s4567_s12 }
 0x667   : > { %3425 = vrot.lane.b32.xlu2 %v9370_v16, %s4567_s12 }
 0x668   : > { %v8050_v41 = vpop.permute.xlu1 %3215  ;;  %v3143_v39 = vpop.permute.xlu0 %3142 }
 0x669   : > { %v3151_v23 = vsel %vm748_vm1, %v9372_v29, %v3143_v39  ;;  %v3159_v30 = vsel %vm748_vm1, %v3143_v39, %v9372_v29  ;;  %v3230_v46 = vpop.permute.xlu2 %3229 }
 0x66a   : > { %v3191_v58 = vmul.f32 %v3175_v10, %v3159_v30  ;;  %v3192_v1 = vmul.f32 %v3176_v62, %v3151_v23  ;;  %v3269_v10 = vld [vmem:[#allocation8 + $0x158] sm:$0xff] }
 0x66c   : > { %v8058_v27 = vadd.f32 %v3191_v58, %v3110_v20  ;;  %v8060_v49 = vadd.f32 %v3192_v1, %v3111_v36  ;;  %v3266_v1 = vld [vmem:[#allocation8 + $0x140] sm:$0xff] }
 0x66e   : > { %3500 = vrot.lane.b32.xlu1 %v7656_v9, %s4568_s13  ;;  %3427 = vrot.lane.b32.xlu0 %v7708_v59, %s4567_s12 }
 0x66f   : > { %3431 = vrot.lane.b32.xlu2 %v9373_v12, %s4567_s12 }
 0x670   : > { %v8068_v43 = vpop.permute.xlu1 %3221  ;;  %v3214_v53 = vpop.permute.xlu0 %3213 }
 0x671   : > { %v3243_v25 = vsel %vm846_vm2, %v3214_v53, %v3230_v46  ;;  %v3251_v24 = vsel %vm846_vm2, %v3230_v46, %v3214_v53  ;;  %v3236_v60 = vpop.permute.xlu2 %3235 }
 0x672   : > { %v3278_v42 = vmul.f32 %v3262_v7, %v3251_v24  ;;  %v3279_v56 = vmul.f32 %v3263_v22, %v3243_v25  ;;  %v3258_v7 = vld [vmem:[#allocation8 + $0x100] sm:$0xff] }
 0x674   : > { %v8075_v6 = vadd.f32 %v3278_v42, %v7972_v0  ;;  %v8078_v18 = vadd.f32 %v3279_v56, %v7974_v38 }
 0x676   : > { %3506 = vrot.lane.b32.xlu1 %v7668_v34, %s4568_s13  ;;  %3433 = vrot.lane.b32.xlu0 %v7718_v32, %s4567_s12  ;;  %s9376_s12 = sld [smem:[#allocation103_spill]] }
 0x677   : > { %3502 = vrot.lane.b32.xlu2 %v7660_v54, %s4568_s13 }
 0x678   : > { %v3228_v62 = vpop.permute.xlu1 %3227  ;;  %v3220_v21 = vpop.permute.xlu0 %3219 }
 0x679   : > { %v3242_v0 = vsel %vm846_vm2, %v7968_v26, %v3228_v62  ;;  %v3250_v38 = vsel %vm846_vm2, %v3228_v62, %v7968_v26  ;;  %v3246_v28 = vsel %vm846_vm2, %v3220_v21, %v3236_v60  ;;  %v3254_v55 = vsel %vm846_vm2, %v3236_v60, %v3220_v21  ;;  %v8096_v39 = vpop.permute.xlu2 %3306  ;;  %v9375_v21 = vld [vmem:[#allocation56_spill] sm:$0xff] }
 0x67a   : > { %v3276_v29 = vmul.f32 %v3260_v52, %v3250_v38  ;;  %v3277_v23 = vmul.f32 %v3261_v14, %v3242_v0  ;;  %v3284_v30 = vmul.f32 %v3268_v5, %v3254_v55  ;;  %v3285_v46 = vmul.f32 %v3269_v10, %v3246_v28  ;;  %v3264_v38 = vld [vmem:[#allocation8 + $0x130] sm:$0xff] }
 0x67c   : > { %v8099_v20 = vadd.f32 %v3276_v29, %v8010_v61  ;;  %v8102_v36 = vadd.f32 %v3277_v23, %v8012_v3  ;;  %v8105_v26 = vadd.f32 %v3284_v30, %v8005_v63  ;;  %v8108_v58 = vadd.f32 %v3285_v46, %v8008_v45  ;;  %v3267_v61 = vld [vmem:[#allocation8 + $0x148] sm:$0xff]  ;;  %s4498_s4 = scalar_lea.hbm %s9376_s12, 256 }
 0x67d   : > { %v3259_v3 = vld [vmem:[#allocation8 + $0x108] sm:$0xff] }
 0x67e   : > { %3512 = vrot.lane.b32.xlu1 %v7685_v17, %s4568_s13  ;;  %3504 = vrot.lane.b32.xlu0 %v7664_v33, %s4568_s13 }
 0x67f   : > { %3508 = vrot.lane.b32.xlu2 %v7674_v19, %s4568_s13 }
 0x680   : > { %v3234_v22 = vpop.permute.xlu1 %3233  ;;  %v3226_v53 = vpop.permute.xlu0 %3225 }
 0x681   : > { %v3245_v63 = vsel %vm846_vm2, %v8000_v11, %v3234_v22  ;;  %v3253_v45 = vsel %vm846_vm2, %v3234_v22, %v8000_v11  ;;  %v3241_v25 = vsel %vm846_vm2, %v8024_v50, %v3226_v53  ;;  %v3249_v24 = vsel %vm846_vm2, %v3226_v53, %v8024_v50  ;;  %v8128_v60 = vpop.permute.xlu2 %3312  ;;  %v9374_v11 = vld [vmem:[#allocation53_spill] sm:$0xff]  ;;  %v3272_v50 = vld [vmem:[#allocation8 + $0x170] sm:$0xff] }
 0x682   : > { %v3282_v42 = vmul.f32 %v3266_v1, %v3253_v45  ;;  %v3283_v56 = vmul.f32 %v3267_v61, %v3245_v63  ;;  %v3274_v52 = vmul.f32 %v3258_v7, %v3249_v24  ;;  %v3275_v14 = vmul.f32 %v3259_v3, %v3241_v25 }
 0x684   : > { %v8131_v5 = vadd.f32 %v3282_v42, %v8036_v51  ;;  %v8134_v10 = vadd.f32 %v3283_v56, %v8038_v57  ;;  %v8137_v62 = vadd.f32 %v3274_v52, %v9374_v11  ;;  %v8140_v0 = vadd.f32 %v3275_v14, %v9375_v21  ;;  %v3273_v51 = vld [vmem:[#allocation8 + $0x178] sm:$0xff]  ;;  %v3357_v11 = vld [vmem:[#allocation8 + $0x190] sm:$0xff] }
 0x685   : > { %v3265_v57 = vld [vmem:[#allocation8 + $0x138] sm:$0xff] }
 0x686   : > { %3518 = vrot.lane.b32.xlu1 %v7696_v15, %s4568_s13  ;;  %3510 = vrot.lane.b32.xlu0 %v7679_v47, %s4568_s13 }
 0x687   : > { %3514 = vrot.lane.b32.xlu2 %v7693_v4, %s4568_s13 }
 0x688   : > { %v3240_v28 = vpop.permute.xlu1 %3239  ;;  %v3232_v55 = vpop.permute.xlu0 %3231 }
 0x689   : > { %v3248_v29 = vsel %vm846_vm2, %v8032_v31, %v3240_v28  ;;  %v3256_v23 = vsel %vm846_vm2, %v3240_v28, %v8032_v31  ;;  %v3244_v30 = vsel %vm846_vm2, %v8050_v41, %v3232_v55  ;;  %v3252_v46 = vsel %vm846_vm2, %v3232_v55, %v8050_v41  ;;  %v8160_v1 = vpop.permute.xlu2 %3318  ;;  %v3270_v41 = vld [vmem:[#allocation8 + $0x160] sm:$0xff] }
 0x68a   : > { %v3288_v61 = vmul.f32 %v3272_v50, %v3256_v23  ;;  %v3289_v7 = vmul.f32 %v3273_v51, %v3248_v29  ;;  %v3280_v3 = vmul.f32 %v3264_v38, %v3252_v46  ;;  %v3281_v22 = vmul.f32 %v3265_v57, %v3244_v30  ;;  %v3355_v29 = vld [vmem:[#allocation8 + $0x180] sm:$0xff]  ;;  %v3356_v23 = vld [vmem:[#allocation8 + $0x188] sm:$0xff] }
 0x68b   : > { %v3363_v30 = vld [vmem:[#allocation8 + $0x1c0] sm:$0xff]  ;;  %v3364_v46 = vld [vmem:[#allocation8 + $0x1c8] sm:$0xff] }
 0x68c   : > { %v8163_v53 = vadd.f32 %v3288_v61, %v8058_v27  ;;  %v8166_v63 = vadd.f32 %v3289_v7, %v8060_v49  ;;  %v8169_v31 = vadd.f32 %v3280_v3, %v7942_v44  ;;  %v8172_v45 = vadd.f32 %v3281_v22, %v7944_v2  ;;  %v3271_v27 = vld [vmem:[#allocation8 + $0x168] sm:$0xff] }
 0x68e   : > { %3524 = vrot.lane.b32.xlu1 %v7708_v59, %s4568_s13  ;;  %3516 = vrot.lane.b32.xlu0 %v7683_v8, %s4568_s13 }
 0x68f   : > { %3520 = vrot.lane.b32.xlu2 %v7704_v35, %s4568_s13 }
 0x690   : > { %v8180_v25 = vpop.permute.xlu1 %3310  ;;  %v3238_v49 = vpop.permute.xlu0 %3237 }
 0x691   : > { %v3247_v44 = vsel %vm846_vm2, %v8068_v43, %v3238_v49  ;;  %v3255_v2 = vsel %vm846_vm2, %v3238_v49, %v8068_v43  ;;  %v3325_v24 = vpop.permute.xlu2 %3324  ;;  %v3358_v43 = vld [vmem:[#allocation8 + $0x198] sm:$0xff] }
 0x692   : > { %v3286_v42 = vmul.f32 %v3270_v41, %v3255_v2  ;;  %v3287_v56 = vmul.f32 %v3271_v27, %v3247_v44 }
 0x694   : > { %v8189_v52 = vadd.f32 %v3286_v42, %v7976_v37  ;;  %v8192_v14 = vadd.f32 %v3287_v56, %v7978_v40 }
 0x696   : > { %3530 = vrot.lane.b32.xlu1 %v7718_v32, %s4568_s13  ;;  %3522 = vrot.lane.b32.xlu0 %v9370_v16, %s4568_s13 }
 0x697   : > { %3526 = vrot.lane.b32.xlu2 %v7716_v48, %s4568_s13 }
 0x698   : > { %v8200_v21 = vpop.permute.xlu1 %3316  ;;  %v3309_v50 = vpop.permute.xlu0 %3308 }
 0x699   : > { %v3339_v37 = vsel %vm944_vm3, %v3309_v50, %v3325_v24  ;;  %v3347_v40 = vsel %vm944_vm3, %v3325_v24, %v3309_v50  ;;  %v3331_v51 = vpop.permute.xlu2 %3330 }
 0x69a   : > { %v3373_v38 = vmul.f32 %v3357_v11, %v3347_v40  ;;  %v3374_v57 = vmul.f32 %v3358_v43, %v3339_v37  ;;  %v3361_v11 = vld [vmem:[#allocation8 + $0x1b0] sm:$0xff] }
 0x69b   : > { %v3369_v43 = vld [vmem:[#allocation8 + $0x1f0] sm:$0xff] }
 0x69c   : > { %v8207_v28 = vadd.f32 %v3373_v38, %v8099_v20  ;;  %v8210_v55 = vadd.f32 %v3374_v57, %v8102_v36 }
 0x69e   : > { %3601 = vrot.lane.b32.xlu1 %v7664_v33, %s4569_s16  ;;  %3528 = vrot.lane.b32.xlu0 %v9373_v12, %s4568_s13  ;;  %s3915_s13 = scalar_lea.hbm %s9376_s12, %s4083_s23 }
 0x69f   : > { %3597 = vrot.lane.b32.xlu2 %v7656_v9, %s4569_s16 }
 0x6a0   : > { %v3323_v61 = vpop.permute.xlu1 %3322  ;;  %v3315_v7 = vpop.permute.xlu0 %3314 }
 0x6a1   : > { %v3338_v20 = vsel %vm944_vm3, %v8096_v39, %v3323_v61  ;;  %v3346_v36 = vsel %vm944_vm3, %v3323_v61, %v8096_v39  ;;  %v3342_v3 = vsel %vm944_vm3, %v3315_v7, %v3331_v51  ;;  %v3350_v22 = vsel %vm944_vm3, %v3331_v51, %v3315_v7  ;;  %v3337_v41 = vpop.permute.xlu2 %3336 }
 0x6a2   : > { %v3371_v27 = vmul.f32 %v3355_v29, %v3346_v36  ;;  %v3372_v49 = vmul.f32 %v3356_v23, %v3338_v20  ;;  %v3379_v44 = vmul.f32 %v3363_v30, %v3350_v22  ;;  %v3380_v2 = vmul.f32 %v3364_v46, %v3342_v3  ;;  %v3367_v20 = vld [vmem:[#allocation8 + $0x1e0] sm:$0xff] }
 0x6a3   : > { %v3359_v36 = vld [vmem:[#allocation8 + $0x1a0] sm:$0xff] }
 0x6a4   : > { %v8229_v24 = vadd.f32 %v3371_v27, %v8137_v62  ;;  %v8232_v42 = vadd.f32 %v3372_v49, %v8140_v0  ;;  %v8235_v56 = vadd.f32 %v3379_v44, %v8131_v5  ;;  %v8238_v39 = vadd.f32 %v3380_v2, %v8134_v10  ;;  %v3362_v62 = vld [vmem:[#allocation8 + $0x1b8] sm:$0xff] }
 0x6a5   : > { %v3370_v0 = vld [vmem:[#allocation8 + $0x1f8] sm:$0xff] }
 0x6a6   : > { %3607 = vrot.lane.b32.xlu1 %v7679_v47, %s4569_s16  ;;  %3599 = vrot.lane.b32.xlu0 %v7660_v54, %s4569_s16 }
 0x6a7   : > { %3603 = vrot.lane.b32.xlu2 %v7668_v34, %s4569_s16 }
 0x6a8   : > { %v3329_v50 = vpop.permute.xlu1 %3328  ;;  %v3321_v37 = vpop.permute.xlu0 %3320 }
 0x6a9   : > { %v3341_v5 = vsel %vm944_vm3, %v8128_v60, %v3329_v50  ;;  %v3349_v10 = vsel %vm944_vm3, %v3329_v50, %v8128_v60  ;;  %v3345_v40 = vsel %vm944_vm3, %v3321_v37, %v3337_v41  ;;  %v3353_v51 = vsel %vm944_vm3, %v3337_v41, %v3321_v37  ;;  %v8256_v38 = vpop.permute.xlu2 %3407  ;;  %v3366_v37 = vld [vmem:[#allocation8 + $0x1d8] sm:$0xff] }
 0x6aa   : > { %v3377_v57 = vmul.f32 %v3361_v11, %v3349_v10  ;;  %v3378_v29 = vmul.f32 %v3362_v62, %v3341_v5  ;;  %v3385_v23 = vmul.f32 %v3369_v43, %v3353_v51  ;;  %v3386_v30 = vmul.f32 %v3370_v0, %v3345_v40 }
 0x6ac   : > { %v8259_v46 = vadd.f32 %v3377_v57, %v8169_v31  ;;  %v8262_v61 = vadd.f32 %v3378_v29, %v8172_v45  ;;  %v8265_v60 = vadd.f32 %v3385_v23, %v8163_v53  ;;  %v8268_v7 = vadd.f32 %v3386_v30, %v8166_v63  ;;  %v3368_v31 = vld [vmem:[#allocation8 + $0x1e8] sm:$0xff]  ;;  %v3452_v29 = vld [vmem:[#allocation8 + $0x280] sm:$0xff] }
 0x6ad   : > { %v3360_v45 = vld [vmem:[#allocation8 + $0x1a8] sm:$0xff] }
 0x6ae   : > { %3613 = vrot.lane.b32.xlu1 %v7683_v8, %s4569_s16  ;;  %3605 = vrot.lane.b32.xlu0 %v7674_v19, %s4569_s16 }
 0x6af   : > { %3609 = vrot.lane.b32.xlu2 %v7685_v17, %s4569_s16 }
 0x6b0   : > { %v3335_v3 = vpop.permute.xlu1 %3334  ;;  %v3327_v22 = vpop.permute.xlu0 %3326 }
 0x6b1   : > { %v3344_v53 = vsel %vm944_vm3, %v8160_v1, %v3335_v3  ;;  %v3352_v63 = vsel %vm944_vm3, %v3335_v3, %v8160_v1  ;;  %v3340_v41 = vsel %vm944_vm3, %v8180_v25, %v3327_v22  ;;  %v3348_v27 = vsel %vm944_vm3, %v3327_v22, %v8180_v25  ;;  %v8288_v49 = vpop.permute.xlu2 %3413  ;;  %v3365_v25 = vld [vmem:[#allocation8 + $0x1d0] sm:$0xff] }
 0x6b2   : > { %v3383_v44 = vmul.f32 %v3367_v20, %v3352_v63  ;;  %v3384_v2 = vmul.f32 %v3368_v31, %v3344_v53  ;;  %v3375_v11 = vmul.f32 %v3359_v36, %v3348_v27  ;;  %v3376_v62 = vmul.f32 %v3360_v45, %v3340_v41  ;;  %v3458_v22 = vld [vmem:[#allocation8 + $0x2b0] sm:$0xff]  ;;  %v3459_v53 = vld [vmem:[#allocation8 + $0x2b8] sm:$0xff] }
 0x6b4   : > { %v8291_v43 = vadd.f32 %v3383_v44, %v8189_v52  ;;  %v8294_v0 = vadd.f32 %v3384_v2, %v8192_v14  ;;  %v3391_v1 = vadd.f32 %v3375_v11, %v8075_v6  ;;  %v3392_v50 = vadd.f32 %v3376_v62, %v8078_v18  ;;  %v3456_v62 = vld [vmem:[#allocation8 + $0x2a0] sm:$0xff] }
 0x6b6   : > { %3619 = vrot.lane.b32.xlu1 %v9370_v16, %s4569_s16  ;;  %3611 = vrot.lane.b32.xlu0 %v7693_v4, %s4569_s16 }
 0x6b7   : > { %3615 = vrot.lane.b32.xlu2 %v7696_v15, %s4569_s16 }
 0x6b8   : > { %v8304_v52 = vpop.permute.xlu1 %3405  ;;  %v3333_v5 = vpop.permute.xlu0 %3332 }
 0x6b9   : > { %v3343_v6 = vsel %vm944_vm3, %v8200_v21, %v3333_v5  ;;  %v3351_v18 = vsel %vm944_vm3, %v3333_v5, %v8200_v21  ;;  %v3420_v14 = vpop.permute.xlu2 %3419  ;;  %v3453_v21 = vld [vmem:[#allocation8 + $0x288] sm:$0xff] }
 0x6ba   : > { %v3381_v10 = vmul.f32 %v3365_v25, %v3351_v18  ;;  %v3382_v40 = vmul.f32 %v3366_v37, %v3343_v6  ;;  %v3457_v25 = vld [vmem:[#allocation8 + $0x2a8] sm:$0xff]  ;;  %v3464_v37 = vld [vmem:[#allocation8 + $0x2e0] sm:$0xff] }
 0x6bb   : > { %v3465_v5 = vld [vmem:[#allocation8 + $0x2e8] sm:$0xff] }
 0x6bc   : > { %v8313_v51 = vadd.f32 %v3381_v10, %v8105_v26  ;;  %v8316_v57 = vadd.f32 %v3382_v40, %v8108_v58 }
 0x6be   : > { %3625 = vrot.lane.b32.xlu1 %v9373_v12, %s4569_s16  ;;  %3617 = vrot.lane.b32.xlu0 %v7704_v35, %s4569_s16 }
 0x6bf   : > { %3621 = vrot.lane.b32.xlu2 %v7708_v59, %s4569_s16 }
 0x6c0   : > { %v8324_v23 = vpop.permute.xlu1 %3411  ;;  %v3404_v30 = vpop.permute.xlu0 %3403 }
 0x6c1   : > { %v3435_v26 = vsel %vm1042_vm4, %v3404_v30, %v3420_v14  ;;  %v3443_v58 = vsel %vm1042_vm4, %v3420_v14, %v3404_v30  ;;  %v3426_v20 = vpop.permute.xlu2 %3425 }
 0x6c2   : > { %v3468_v31 = vmul.f32 %v3452_v29, %v3435_v26  ;;  %v3469_v36 = vmul.f32 %v3453_v21, %v3443_v58  ;;  %v3462_v58 = vld [vmem:[#allocation8 + $0x2d0] sm:$0xff] }
 0x6c4   : > { %v8331_v45 = vadd.f32 %v3468_v31, %v8229_v24  ;;  %v8334_v3 = vadd.f32 %v3469_v36, %v8232_v42 }
 0x6c6   : > { %3696 = vrot.lane.b32.xlu1 %v7660_v54, %s4570_s25  ;;  %3623 = vrot.lane.b32.xlu0 %v7716_v48, %s4569_s16 }
 0x6c7   : > { %3627 = vrot.lane.b32.xlu2 %v7718_v32, %s4569_s16 }
 0x6c8   : > { %v8342_v63 = vpop.permute.xlu1 %3417  ;;  %v3410_v41 = vpop.permute.xlu0 %3409 }
 0x6c9   : > { %v3438_v24 = vsel %vm1042_vm4, %v3410_v41, %v3426_v20  ;;  %v3446_v42 = vsel %vm1042_vm4, %v3426_v20, %v3410_v41  ;;  %v3432_v27 = vpop.permute.xlu2 %3431  ;;  %v3454_v20 = vld [vmem:[#allocation8 + $0x290] sm:$0xff] }
 0x6ca   : > { %v3474_v44 = vmul.f32 %v3458_v22, %v3438_v24  ;;  %v3475_v54 = vmul.f32 %v3459_v53, %v3446_v42 }
 0x6cc   : > { %v8349_v2 = vadd.f32 %v3474_v44, %v8259_v46  ;;  %v8352_v11 = vadd.f32 %v3475_v54, %v8262_v61  ;;  %v3461_v54 = vld [vmem:[#allocation8 + $0x2c8] sm:$0xff] }
 0x6ce   : > { %3702 = vrot.lane.b32.xlu1 %v7674_v19, %s4570_s25  ;;  %3694 = vrot.lane.b32.xlu0 %v7656_v9, %s4570_s25 }
 0x6cf   : > { %3698 = vrot.lane.b32.xlu2 %v7664_v33, %s4570_s25 }
 0x6d0   : > { %v3424_v6 = vpop.permute.xlu1 %3423  ;;  %v3416_v18 = vpop.permute.xlu0 %3415 }
 0x6d1   : > { %v3437_v46 = vsel %vm1042_vm4, %v8256_v38, %v3424_v6  ;;  %v3445_v19 = vsel %vm1042_vm4, %v3424_v6, %v8256_v38  ;;  %v3441_v9 = vsel %vm1042_vm4, %v3416_v18, %v3432_v27  ;;  %v3449_v61 = vsel %vm1042_vm4, %v3432_v27, %v3416_v18  ;;  %v8370_v33 = vpop.permute.xlu2 %3502 }
 0x6d2   : > { %v3472_v14 = vmul.f32 %v3456_v62, %v3437_v46  ;;  %v3473_v10 = vmul.f32 %v3457_v25, %v3445_v19  ;;  %v3480_v40 = vmul.f32 %v3464_v37, %v3441_v9  ;;  %v3481_v29 = vmul.f32 %v3465_v5, %v3449_v61  ;;  %v3467_v37 = vld [vmem:[#allocation8 + $0x2f8] sm:$0xff]  ;;  %v3553_v19 = vld [vmem:[#allocation8 + $0x320] sm:$0xff]  ;;  %v3554_v9 = vld [vmem:[#allocation8 + $0x328] sm:$0xff] }
 0x6d4   : > { %v8372_v21 = vadd.f32 %v3472_v14, %v3391_v1  ;;  %v8374_v30 = vadd.f32 %v3473_v10, %v3392_v50  ;;  %v8377_v26 = vadd.f32 %v3480_v40, %v8291_v43  ;;  %v8380_v38 = vadd.f32 %v3481_v29, %v8294_v0  ;;  %v3463_v1 = vld [vmem:[#allocation8 + $0x2d8] sm:$0xff] }
 0x6d5   : > { %v3455_v50 = vld [vmem:[#allocation8 + $0x298] sm:$0xff] }
 0x6d6   : > { %3708 = vrot.lane.b32.xlu1 %v7693_v4, %s4570_s25  ;;  %3700 = vrot.lane.b32.xlu0 %v7668_v34, %s4570_s25 }
 0x6d7   : > { %3704 = vrot.lane.b32.xlu2 %v7679_v47, %s4570_s25 }
 0x6d8   : > { %v3430_v31 = vpop.permute.xlu1 %3429  ;;  %v3422_v36 = vpop.permute.xlu0 %3421 }
 0x6d9   : > { %v3440_v43 = vsel %vm1042_vm4, %v8288_v49, %v3430_v31  ;;  %v3448_v4 = vsel %vm1042_vm4, %v3430_v31, %v8288_v49  ;;  %v3436_v34 = vsel %vm1042_vm4, %v8304_v52, %v3422_v36  ;;  %v3444_v47 = vsel %vm1042_vm4, %v3422_v36, %v8304_v52  ;;  %v8400_v0 = vpop.permute.xlu2 %3508  ;;  %v3460_v52 = vld [vmem:[#allocation8 + $0x2c0] sm:$0xff] }
 0x6da   : > { %v3478_v22 = vmul.f32 %v3462_v58, %v3440_v43  ;;  %v3479_v53 = vmul.f32 %v3463_v1, %v3448_v4  ;;  %v3470_v41 = vmul.f32 %v3454_v20, %v3436_v34  ;;  %v3471_v24 = vmul.f32 %v3455_v50, %v3444_v47  ;;  %v3552_v58 = vld [vmem:[#allocation8 + $0x318] sm:$0xff]  ;;  %v3559_v1 = vld [vmem:[#allocation8 + $0x350] sm:$0xff] }
 0x6db   : > { %v3560_v20 = vld [vmem:[#allocation8 + $0x358] sm:$0xff] }
 0x6dc   : > { %v8403_v42 = vadd.f32 %v3478_v22, %v8313_v51  ;;  %v8406_v27 = vadd.f32 %v3479_v53, %v8316_v57  ;;  %v3486_v49 = vadd.f32 %v3470_v41, %v8207_v28  ;;  %v3487_v44 = vadd.f32 %v3471_v24, %v8210_v55 }
 0x6de   : > { %3714 = vrot.lane.b32.xlu1 %v7704_v35, %s4570_s25  ;;  %3706 = vrot.lane.b32.xlu0 %v7685_v17, %s4570_s25 }
 0x6df   : > { %3710 = vrot.lane.b32.xlu2 %v7683_v8, %s4570_s25 }
 0x6e0   : > { %v8416_v51 = vpop.permute.xlu1 %3500  ;;  %v3428_v62 = vpop.permute.xlu0 %3427 }
 0x6e1   : > { %v3439_v28 = vsel %vm1042_vm4, %v8324_v23, %v3428_v62  ;;  %v3447_v55 = vsel %vm1042_vm4, %v3428_v62, %v8324_v23  ;;  %v8424_v35 = vpop.permute.xlu2 %3514  ;;  %v3466_v23 = vld [vmem:[#allocation8 + $0x2f0] sm:$0xff]  ;;  %v3549_v62 = vld [vmem:[#allocation8 + $0x300] sm:$0xff] }
 0x6e2   : > { %v3476_v57 = vmul.f32 %v3460_v52, %v3439_v28  ;;  %v3477_v17 = vmul.f32 %v3461_v54, %v3447_v55  ;;  %v3558_v54 = vld [vmem:[#allocation8 + $0x348] sm:$0xff] }
 0x6e3   : > { %v3550_v28 = vld [vmem:[#allocation8 + $0x308] sm:$0xff] }
 0x6e4   : > { %v8427_v25 = vadd.f32 %v3476_v57, %v8235_v56  ;;  %v8430_v8 = vadd.f32 %v3477_v17, %v8238_v39 }
 0x6e6   : > { %3720 = vrot.lane.b32.xlu1 %v7716_v48, %s4570_s25  ;;  %3712 = vrot.lane.b32.xlu0 %v7696_v15, %s4570_s25 }
 0x6e7   : > { %3716 = vrot.lane.b32.xlu2 %v9370_v16, %s4570_s25 }
 0x6e8   : > { %v8438_v5 = vpop.permute.xlu1 %3506  ;;  %v3434_v6 = vpop.permute.xlu0 %3433 }
 0x6e9   : > { %v3442_v56 = vsel %vm1042_vm4, %v8342_v63, %v3434_v6  ;;  %v3450_v39 = vsel %vm1042_vm4, %v3434_v6, %v8342_v63  ;;  %v3521_v48 = vpop.permute.xlu2 %3520 }
 0x6ea   : > { %v3482_v18 = vmul.f32 %v3466_v23, %v3442_v56  ;;  %v3483_v46 = vmul.f32 %v3467_v37, %v3450_v39 }
 0x6ec   : > { %v8447_v15 = vadd.f32 %v3482_v18, %v8265_v60  ;;  %v8450_v16 = vadd.f32 %v3483_v46, %v8268_v7  ;;  %v3563_v46 = vld [vmem:[#allocation8 + $0x370] sm:$0xff] }
 0x6ee   : > { %3718 = vrot.lane.b32.xlu0 %v7708_v59, %s4570_s25 }
 0x6ef   : > { %3722 = vrot.lane.b32.xlu2 %v9373_v12, %s4570_s25  ;;  %v3551_v12 = vld [vmem:[#allocation8 + $0x310] sm:$0xff] }
 0x6f0   : > { %v8456_v61 = vpop.permute.xlu1 %3512  ;;  %v3505_v63 = vpop.permute.xlu0 %3504 }
 0x6f1   : > { %v3534_v14 = vsel %vm1140_vm5, %v3505_v63, %v3521_v48  ;;  %v3542_v60 = vsel %vm1140_vm5, %v3521_v48, %v3505_v63  ;;  %v3527_v10 = vpop.permute.xlu2 %3526 }
 0x6f2   : > { %v3569_v7 = vmul.f32 %v3553_v19, %v3534_v14  ;;  %v3570_v40 = vmul.f32 %v3554_v9, %v3542_v60  ;;  %v3564_v19 = vld [vmem:[#allocation8 + $0x378] sm:$0xff]  ;;  %v3555_v9 = vld [vmem:[#allocation8 + $0x330] sm:$0xff] }
 0x6f4   : > { %v8463_v29 = vadd.f32 %v3569_v7, %v8372_v21  ;;  %v8466_v59 = vadd.f32 %v3570_v40, %v8374_v30 }
 0x6f6   : > { %3724 = vrot.lane.b32.xlu0 %v7718_v32, %s4570_s25  ;;  %s3918_s25 = sshll.u32 %s3915_s13, 4  ;;  %s3919_s25 = int_to_ptr.hbm [resolvable:$true] %s3918_s25 }
 0x6f7   : > { %s4492_s28 = sshra.s32 %s3919_s25, 4  ;;  %s4493_s28 = int_to_ptr.hbm [resolvable:$true] %s4492_s28 }
 0x6f8   : > { %v3519_v50 = vpop.permute.xlu1 %3518  ;;  %v3511_v31 = vpop.permute.xlu0 %3510  ;;  %s4494_s0 = scalar_lea.hbm %s4493_s28, 128  ;;  %p4499_p5 = scmp.lt.s32.totalorder %s4493_s28, %s9376_s12 }
 0x6f9   : > { %v3533_v36 = vsel %vm1140_vm5, %v8370_v33, %v3519_v50  ;;  %v3541_v21 = vsel %vm1140_vm5, %v3519_v50, %v8370_v33  ;;  %v3537_v30 = vsel %vm1140_vm5, %v3511_v31, %v3527_v10  ;;  %v3545_v32 = vsel %vm1140_vm5, %v3527_v10, %v3511_v31  ;;  %v8480_v43 = vpop.permute.xlu2 %3597  ;;  %v3557_v33 = vld [vmem:[#allocation8 + $0x340] sm:$0xff]  ;;  %v3562_v31 = vld [vmem:[#allocation8 + $0x368] sm:$0xff]  ;;  %p4495_p2 = scmp.ne.s32.totalorder %s4493_s28, %s4494_s0  ;;  %p4500_p7 = scmp.lt.s32.totalorder %s4498_s4, %s4494_s0 }
 0x6fa   : > { %v3567_v4 = vmul.f32 %v3551_v12, %v3533_v36  ;;  %v3568_v34 = vmul.f32 %v3552_v58, %v3541_v21  ;;  %v3575_v47 = vmul.f32 %v3559_v1, %v3537_v30  ;;  %v3576_v22 = vmul.f32 %v3560_v20, %v3545_v32  ;;  %v3561_v50 = vld [vmem:[#allocation8 + $0x360] sm:$0xff] }
 0x6fb   : > { %p4496_p3 = pnand %p4495_p2, %p4676_p6  ;;  %p4501_p8 = por %p4500_p7, %p4499_p5 }
 0x6fc   : > { %v3583_v53 = vadd.f32 %v3567_v4, %v3486_v49  ;;  %v3584_v41 = vadd.f32 %v3568_v34, %v3487_v44  ;;  %v8483_v24 = vadd.f32 %v3575_v47, %v8403_v42  ;;  %v8486_v52 = vadd.f32 %v3576_v22, %v8406_v27  ;;  %v3648_v4 = vld [vmem:[#allocation8 + $0x390] sm:$0xff]  ;;  %v3649_v34 = vld [vmem:[#allocation8 + $0x398] sm:$0xff] }
 0x6fd   : > { %p4497_p4 = pneg %p4496_p3 }
 0x6ff   : > { %p4502_p9 = pnand %p4501_p8, %p4497_p4 }
 0x700   : > { %v3525_v55 = vpop.permute.xlu1 %3524  ;;  %v3517_v57 = vpop.permute.xlu0 %3516 }
 0x701   : > { %v3536_v17 = vsel %vm1140_vm5, %v8400_v0, %v3525_v55  ;;  %v3544_v49 = vsel %vm1140_vm5, %v3525_v55, %v8400_v0  ;;  %v3532_v42 = vsel %vm1140_vm5, %v8416_v51, %v3517_v57  ;;  %v3540_v27 = vsel %vm1140_vm5, %v3517_v57, %v8416_v51  ;;  %v8500_v44 = vpop.permute.xlu2 %3603  ;;  %v3556_v51 = vld [vmem:[#allocation8 + $0x338] sm:$0xff] }
 0x702   : > { %v3573_v23 = vmul.f32 %v3557_v33, %v3536_v17  ;;  %v3574_v37 = vmul.f32 %v3558_v54, %v3544_v49  ;;  %v3565_v6 = vmul.f32 %v3549_v62, %v3532_v42  ;;  %v3566_v56 = vmul.f32 %v3550_v28, %v3540_v27 }
 0x704   : > { %v3589_v39 = vadd.f32 %v3573_v23, %v8427_v25  ;;  %v3590_v48 = vadd.f32 %v3574_v37, %v8430_v8  ;;  %v8505_v0 = vadd.f32 %v3565_v6, %v8331_v45  ;;  %v8508_v18 = vadd.f32 %v3566_v56, %v8334_v3 }
 0x708   : > { %v3531_v63 = vpop.permute.xlu1 %3530  ;;  %v3523_v14 = vpop.permute.xlu0 %3522 }
 0x709   : > { %v3539_v60 = vsel %vm1140_vm5, %v8424_v35, %v3531_v63  ;;  %v3547_v25 = vsel %vm1140_vm5, %v3531_v63, %v8424_v35  ;;  %v3535_v45 = vsel %vm1140_vm5, %v8438_v5, %v3523_v14  ;;  %v3543_v3 = vsel %vm1140_vm5, %v3523_v14, %v8438_v5  ;;  %v3610_v8 = vpop.permute.xlu2 %3609 }
 0x70a   : > { %v3579_v10 = vmul.f32 %v3563_v46, %v3539_v60  ;;  %v3580_v7 = vmul.f32 %v3564_v19, %v3547_v25  ;;  %v3571_v40 = vmul.f32 %v3555_v9, %v3535_v45  ;;  %v3572_v12 = vmul.f32 %v3556_v51, %v3543_v3  ;;  %v3658_v9 = vld [vmem:[#allocation8 + $0x3e0] sm:$0xff]  ;;  %v3659_v51 = vld [vmem:[#allocation8 + $0x3e8] sm:$0xff] }
 0x70c   : > { %v8523_v58 = vadd.f32 %v3579_v10, %v8447_v15  ;;  %v8526_v1 = vadd.f32 %v3580_v7, %v8450_v16  ;;  %v8529_v35 = vadd.f32 %v3571_v40, %v8349_v2  ;;  %v8532_v20 = vadd.f32 %v3572_v12, %v8352_v11  ;;  %v3646_v12 = vld [vmem:[#allocation8 + $0x380] sm:$0xff] }
 0x710   : > { %v8534_v5 = vpop.permute.xlu1 %3601  ;;  %v3529_v36 = vpop.permute.xlu0 %3528 }
 0x711   : > { %v3538_v21 = vsel %vm1140_vm5, %v8456_v61, %v3529_v36  ;;  %v3546_v15 = vsel %vm1140_vm5, %v3529_v36, %v8456_v61  ;;  %v3616_v16 = vpop.permute.xlu2 %3615 }
 0x712   : > { %v3577_v30 = vmul.f32 %v3561_v50, %v3538_v21  ;;  %v3578_v2 = vmul.f32 %v3562_v31, %v3546_v15  ;;  %v3647_v50 = vld [vmem:[#allocation8 + $0x388] sm:$0xff] }
 0x714   : > { %v3593_v32 = vadd.f32 %v3577_v30, %v8377_v26  ;;  %v3594_v11 = vadd.f32 %v3578_v2, %v8380_v38  ;;  %v3654_v26 = vld [vmem:[#allocation8 + $0x3c0] sm:$0xff]  ;;  %v3655_v38 = vld [vmem:[#allocation8 + $0x3c8] sm:$0xff] }
 0x715   : > { %v3744_v30 = vld [vmem:[#allocation8 + $0x408] sm:$0xff] }
 0x718   : > { %v8544_v47 = vpop.permute.xlu1 %3607  ;;  %v3600_v22 = vpop.permute.xlu0 %3599 }
 0x719   : > { %v3630_v33 = vsel %vm1238_vm6, %v3600_v22, %v3616_v16  ;;  %v3638_v54 = vsel %vm1238_vm6, %v3616_v16, %v3600_v22  ;;  %v3622_v62 = vpop.permute.xlu2 %3621  ;;  %v3743_v16 = vld [vmem:[#allocation8 + $0x400] sm:$0xff] }
 0x71a   : > { %v3664_v61 = vmul.f32 %v3648_v4, %v3630_v33  ;;  %v3665_v28 = vmul.f32 %v3649_v34, %v3638_v54  ;;  %v3652_v54 = vld [vmem:[#allocation8 + $0x3b0] sm:$0xff] }
 0x71c   : > { %v8550_v55 = vadd.f32 %v3664_v61, %v3583_v53  ;;  %v8552_v57 = vadd.f32 %v3665_v28, %v3584_v41 }
 0x720   : > { %v3614_v17 = vpop.permute.xlu1 %3613  ;;  %v3606_v49 = vpop.permute.xlu0 %3605 }
 0x721   : > { %v3633_v42 = vsel %vm1238_vm6, %v3606_v49, %v3622_v62  ;;  %v3641_v27 = vsel %vm1238_vm6, %v3622_v62, %v3606_v49  ;;  %v8558_v23 = vpop.permute.xlu2 %3627  ;;  %v3629_v31 = vsel %vm1238_vm6, %v8480_v43, %v3614_v17  ;;  %v3653_v62 = vld [vmem:[#allocation8 + $0x3b8] sm:$0xff] }
 0x722   : > { %v3670_v37 = vmul.f32 %v3654_v26, %v3633_v42  ;;  %v3671_v6 = vmul.f32 %v3655_v38, %v3641_v27  ;;  %v3662_v21 = vmul.f32 %v3646_v12, %v3629_v31 }
 0x724   : > { %v8560_v56 = vadd.f32 %v3670_v37, %v3589_v39  ;;  %v8562_v53 = vadd.f32 %v3671_v6, %v3590_v48  ;;  %v3678_v34 = vadd.f32 %v3662_v21, %v8505_v0  ;;  %v3750_v37 = vld [vmem:[#allocation8 + $0x438] sm:$0xff]  ;;  %v3650_v6 = vld [vmem:[#allocation8 + $0x3a0] sm:$0xff] }
 0x728   : > { %v3620_v41 = vpop.permute.xlu1 %3619  ;;  %v8564_v46 = vpop.permute.xlu0 %3611 }
 0x729   : > { %v8566_v19 = vpop.permute.xlu2 %3698  ;;  %v3632_v61 = vsel %vm1238_vm6, %v8500_v44, %v3620_v41  ;;  %v3640_v28 = vsel %vm1238_vm6, %v3620_v41, %v8500_v44 }
 0x72a   : > { %v3669_v49 = vmul.f32 %v3653_v62, %v3640_v28 }
 0x730   : > { %v3626_v63 = vpop.permute.xlu1 %3625  ;;  %v3618_v14 = vpop.permute.xlu0 %3617 }
 0x731   : > { %v3635_v60 = vsel %vm1238_vm6, %v3610_v8, %v3626_v63  ;;  %v3643_v25 = vsel %vm1238_vm6, %v3626_v63, %v3610_v8  ;;  %v8572_v3 = vpop.permute.xlu2 %3704  ;;  %v3637_v8 = vsel %vm1238_vm6, %v3614_v17, %v8480_v43  ;;  %v3668_v17 = vmul.f32 %v3652_v54, %v3632_v61  ;;  %v3755_v61 = vld [vmem:[#allocation8 + $0x460] sm:$0xff] }
 0x732   : > { %v3674_v45 = vmul.f32 %v3658_v9, %v3635_v60  ;;  %v3675_v39 = vmul.f32 %v3659_v51, %v3643_v25  ;;  %v3663_v15 = vmul.f32 %v3647_v50, %v3637_v8  ;;  %v3651_v9 = vld [vmem:[#allocation8 + $0x3a8] sm:$0xff]  ;;  %v3631_v51 = vsel %vm1238_vm6, %v8534_v5, %v3618_v14 }
 0x733   : > { %v3639_v63 = vsel %vm1238_vm6, %v3618_v14, %v8534_v5  ;;  %v3666_v31 = vmul.f32 %v3650_v6, %v3631_v51 }
 0x734   : > { %v8574_v48 = vadd.f32 %v3674_v45, %v3593_v32  ;;  %v8576_v10 = vadd.f32 %v3675_v39, %v3594_v11  ;;  %v3679_v22 = vadd.f32 %v3663_v15, %v8508_v18  ;;  %v3749_v18 = vld [vmem:[#allocation8 + $0x430] sm:$0xff]  ;;  %v3684_v45 = vadd.f32 %v3668_v17, %v8529_v35 }
 0x735   : > { %v3685_v39 = vadd.f32 %v3669_v49, %v8532_v20  ;;  %v3667_v8 = vmul.f32 %v3651_v9, %v3639_v63  ;;  %v3682_v20 = vadd.f32 %v3666_v31, %v8463_v29 }
 0x738   : > { %v8578_v7 = vpop.permute.xlu1 %3696  ;;  %v3624_v40 = vpop.permute.xlu0 %3623 }
 0x739   : > { %v3711_v36 = vpop.permute.xlu2 %3710  ;;  %v3634_v21 = vsel %vm1238_vm6, %v8544_v47, %v3624_v40 }
 0x740   : > { %v8586_v2 = vpop.permute.xlu1 %3702  ;;  %v3695_v32 = vpop.permute.xlu0 %3694 }
 0x741   : > { %v3726_v11 = vsel %vm1336_vm7, %v3695_v32, %v3711_v36  ;;  %v3734_v4 = vsel %vm1336_vm7, %v3711_v36, %v3695_v32  ;;  %v3717_v27 = vpop.permute.xlu2 %3716  ;;  %v3656_v36 = vld [vmem:[#allocation8 + $0x3d0] sm:$0xff]  ;;  %v3683_v32 = vadd.f32 %v3667_v8, %v8466_v59 }
 0x742   : > { %v3759_v33 = vmul.f32 %v3743_v16, %v3726_v11  ;;  %v3760_v43 = vmul.f32 %v3744_v30, %v3734_v4  ;;  %v3747_v4 = vld [vmem:[#allocation8 + $0x420] sm:$0xff] }
 0x744   : > { %v3775_v26 = vadd.f32 %v3759_v33, %v3678_v34  ;;  %v3776_v38 = vadd.f32 %v3760_v43, %v3679_v22  ;;  %v3748_v34 = vld [vmem:[#allocation8 + $0x428] sm:$0xff]  ;;  %v3657_v22 = vld [vmem:[#allocation8 + $0x3d8] sm:$0xff]  ;;  %v3642_v33 = vsel %vm1238_vm6, %v3624_v40, %v8544_v47  ;;  %v3672_v43 = vmul.f32 %v3656_v36, %v3634_v21 }
 0x745   : > { %v3636_v36 = vsel %vm1238_vm6, %v8564_v46, %v8558_v23 }
 0x746   : > { %v3791_v42 = vmul.f32 0.5, %v3775_v26  ;;  %v3792_v0 = vmul.f32 0.5, %v3776_v38  ;;  %v3688_v21 = vadd.f32 %v3672_v43, %v8483_v24 }
 0x748   : > { %4310 = vtanh.f32 %v3791_v42  ;;  %v8606_v44 = vpop.permute.xlu1 %3708  ;;  %v3701_v41 = vpop.permute.xlu0 %3700  ;;  %v3756_v42 = vld [vmem:[#allocation8 + $0x468] sm:$0xff] }
 0x749   : > { %4312 = vtanh.f32 %v3792_v0  ;;  %v3729_v60 = vsel %vm1336_vm7, %v3701_v41, %v3717_v27  ;;  %v3737_v25 = vsel %vm1336_vm7, %v3717_v27, %v3701_v41  ;;  %v3723_v49 = vpop.permute.xlu2 %3722 }
 0x74a   : > { %v3765_v12 = vmul.f32 %v3749_v18, %v3729_v60  ;;  %v3766_v50 = vmul.f32 %v3750_v37, %v3737_v25  ;;  %v3673_v18 = vmul.f32 %v3657_v22, %v3642_v33  ;;  %v4342_v60 = vld [vmem:[%s4788_s9] sm:$0xff]  ;;  %v3745_v22 = vld [vmem:[#allocation8 + $0x410] sm:$0xff] }
 0x74c   : > { %v8614_v5 = vadd.f32 %v3765_v12, %v3684_v45  ;;  %v8616_v14 = vadd.f32 %v3766_v50, %v3685_v39  ;;  %v4343_v12 = vld [vmem:[%s4788_s9 + $0x8] sm:$0xff] }
 0x74e   : > { %v4311_v15 = vpop.eup %4310  ;;  %v3797_v16 = vmul.f32 0.5, %v8614_v5  ;;  %v3798_v35 = vmul.f32 0.5, %v8616_v14 }
 0x74f   : > { %v4313_v30 = vpop.eup %4312  ;;  %v3823_v11 = vmul.f32 0.5, %v4311_v15 }
 0x750   : > { %v3824_v54 = vmul.f32 0.5, %v4313_v30  ;;  %4314 = vtanh.f32 %v3797_v16  ;;  %v3715_v62 = vpop.permute.xlu1 %3714  ;;  %v3707_v28 = vpop.permute.xlu0 %3706  ;;  %v3753_v16 = vld [vmem:[#allocation8 + $0x450] sm:$0xff] }
 0x751   : > { %v3839_v17 = vadd.f32 0.5, %v3823_v11  ;;  %4316 = vtanh.f32 %v3798_v35  ;;  %v3728_v29 = vsel %vm1336_vm7, %v8566_v19, %v3715_v62  ;;  %v3736_v59 = vsel %vm1336_vm7, %v3715_v62, %v8566_v19  ;;  %v3754_v35 = vld [vmem:[#allocation8 + $0x458] sm:$0xff] }
 0x752   : > { %v3840_v47 = vadd.f32 0.5, %v3824_v54  ;;  %v3763_v40 = vmul.f32 %v3747_v4, %v3728_v29  ;;  %v3764_v0 = vmul.f32 %v3748_v34, %v3736_v59  ;;  %v3732_v27 = vsel %vm1336_vm7, %v3707_v28, %v3723_v49  ;;  %v3746_v54 = vld [vmem:[#allocation8 + $0x418] sm:$0xff] }
 0x753   : > { %v3855_v37 = vmul.f32 %v3839_v17, %v3775_v26  ;;  %v3740_v6 = vsel %vm1336_vm7, %v3723_v49, %v3707_v28  ;;  %v3771_v9 = vmul.f32 %v3755_v61, %v3732_v27  ;;  %v4345_v27 = vld [vmem:[%s4788_s9 + $0x38] sm:$0xff] }
 0x754   : > { %v3856_v51 = vmul.f32 %v3840_v47, %v3776_v38  ;;  %v8638_v63 = vadd.f32 %v3763_v40, %v3682_v20  ;;  %v8640_v41 = vadd.f32 %v3764_v0, %v3683_v32  ;;  %v3772_v19 = vmul.f32 %v3756_v42, %v3740_v6  ;;  %v3661_v42 = vld [vmem:[#allocation8 + $0x3f8] sm:$0xff]  ;;  %v4344_v47 = vld [vmem:[%s4788_s9 + $0x30] sm:$0xff] }
 0x755   : > { %v3871_v25 = vadd.f32 %v4342_v60, %v3855_v37  ;;  %v8644_v45 = vadd.f32 %v3771_v9, %v8574_v48 }
 0x756   : > { %v4315_v39 = vpop.eup %4314  ;;  %v3872_v50 = vadd.f32 %v4343_v12, %v3856_v51  ;;  %v3795_v26 = vmul.f32 0.5, %v8638_v63  ;;  %v3796_v31 = vmul.f32 0.5, %v8640_v41  ;;  %v8650_v38 = vadd.f32 %v3772_v19, %v8576_v10 }
 0x757   : > { %v4317_v8 = vpop.eup %4316  ;;  %3887 = vst [vmem:[%s8658_s27] sm:$0xff] %v3871_v25  ;;  %v3829_v48 = vmul.f32 0.5, %v4315_v39  ;;  %v3803_v15 = vmul.f32 0.5, %v8644_v45  ;;  %v3689_v10 = vadd.f32 %v3673_v18, %v8486_v52 }
 0x758   : > { %3888 = vst [vmem:[%s8658_s27 + $0x8] sm:$0xff] %v3872_v50  ;;  %v3830_v30 = vmul.f32 0.5, %v4317_v8  ;;  %4318 = vtanh.f32 %v3795_v26  ;;  %v3804_v20 = vmul.f32 0.5, %v8650_v38  ;;  %v3721_v32 = vpop.permute.xlu1 %3720  ;;  %v3713_v11 = vpop.permute.xlu0 %3712  ;;  %v3751_v8 = vld [vmem:[#allocation8 + $0x440] sm:$0xff] }
 0x759   : > { %v3845_v24 = vadd.f32 0.5, %v3829_v48  ;;  %4320 = vtanh.f32 %v3796_v31  ;;  %v3731_v4 = vsel %vm1336_vm7, %v8572_v3, %v3721_v32  ;;  %v3739_v34 = vsel %vm1336_vm7, %v3721_v32, %v8572_v3  ;;  %v3660_v3 = vld [vmem:[#allocation8 + $0x3f0] sm:$0xff] }
 0x75a   : > { %v3846_v33 = vadd.f32 0.5, %v3830_v30  ;;  %4322 = vtanh.f32 %v3803_v15  ;;  %v3769_v52 = vmul.f32 %v3753_v16, %v3731_v4  ;;  %v3770_v43 = vmul.f32 %v3754_v35, %v3739_v34 }
 0x75b   : > { %v3861_v62 = vmul.f32 %v3845_v24, %v8614_v5  ;;  %4324 = vtanh.f32 %v3804_v20  ;;  %v3727_v61 = vsel %vm1336_vm7, %v8578_v7, %v3713_v11  ;;  %v3735_v28 = vsel %vm1336_vm7, %v3713_v11, %v8578_v7  ;;  %v4346_v11 = vld [vmem:[%s4788_s9 + $0x20] sm:$0xff] }
 0x75c   : > { %v3862_v17 = vmul.f32 %v3846_v33, %v8616_v14  ;;  %v8679_v49 = vadd.f32 %v3769_v52, %v3688_v21  ;;  %v8681_v29 = vadd.f32 %v3770_v43, %v3689_v10  ;;  %v3761_v59 = vmul.f32 %v3745_v22, %v3727_v61 }
 0x75d   : > { %v3644_v5 = vsel %vm1238_vm6, %v8558_v23, %v8564_v46  ;;  %v3877_v40 = vadd.f32 %v4344_v47, %v3861_v62  ;;  %v3762_v0 = vmul.f32 %v3746_v54, %v3735_v28  ;;  %v3676_v51 = vmul.f32 %v3660_v3, %v3636_v36  ;;  %v3752_v36 = vld [vmem:[#allocation8 + $0x448] sm:$0xff]  ;;  %v3757_v28 = vld [vmem:[#allocation8 + $0x470] sm:$0xff] }
 0x75e   : > { %v4319_v7 = vpop.eup %4318  ;;  %v3878_v18 = vadd.f32 %v4345_v27, %v3862_v17  ;;  %v3801_v14 = vmul.f32 0.5, %v8679_v49  ;;  %v3802_v37 = vmul.f32 0.5, %v8681_v29  ;;  %v8692_v6 = vadd.f32 %v3761_v59, %v8550_v55 }
 0x75f   : > { %v4321_v9 = vpop.eup %4320  ;;  %3893 = vst [vmem:[%s8658_s27 + $0x30] sm:$0xff] %v3877_v40  ;;  %v3827_v19 = vmul.f32 0.5, %v4319_v7  ;;  %v8696_v23 = vadd.f32 %v3762_v0, %v8552_v57  ;;  %v3677_v60 = vmul.f32 %v3661_v42, %v3644_v5  ;;  %v3692_v43 = vadd.f32 %v3676_v51, %v8523_v58  ;;  %v3758_v42 = vld [vmem:[#allocation8 + $0x478] sm:$0xff] }
 0x760   : > { %v4323_v46 = vpop.eup %4322  ;;  %3894 = vst [vmem:[%s8658_s27 + $0x38] sm:$0xff] %v3878_v18  ;;  %v3828_v25 = vmul.f32 0.5, %v4321_v9  ;;  %4326 = vtanh.f32 %v3801_v14  ;;  %v3793_v39 = vmul.f32 0.5, %v8692_v6  ;;  %v3719_v12 = vpop.permute.xlu0 %3718 }
 0x761   : > { %v4325_v50 = vpop.eup %4324  ;;  %v3843_v26 = vadd.f32 0.5, %v3827_v19  ;;  %v3835_v31 = vmul.f32 0.5, %v4323_v46  ;;  %4328 = vtanh.f32 %v3802_v37  ;;  %v3794_v55 = vmul.f32 0.5, %v8696_v23 }
 0x762   : > { %v3844_v21 = vadd.f32 0.5, %v3828_v25  ;;  %v3836_v57 = vmul.f32 0.5, %v4325_v50  ;;  %4330 = vtanh.f32 %v3793_v39  ;;  %v3730_v48 = vsel %vm1336_vm7, %v8586_v2, %v3719_v12  ;;  %v4351_v39 = vld [vmem:[%s4788_s9 + $0x58] sm:$0xff] }
 0x763   : > { %v3859_v15 = vmul.f32 %v3843_v26, %v8638_v63  ;;  %v3851_v16 = vadd.f32 0.5, %v3835_v31  ;;  %4332 = vtanh.f32 %v3794_v55  ;;  %v3738_v35 = vsel %vm1336_vm7, %v3719_v12, %v8586_v2  ;;  %v4347_v63 = vld [vmem:[%s4788_s9 + $0x28] sm:$0xff]  ;;  %v4352_v26 = vld [vmem:[%s4788_s9 + $0x10] sm:$0xff] }
 0x764   : > { %v3860_v10 = vmul.f32 %v3844_v21, %v8640_v41  ;;  %v3852_v30 = vadd.f32 0.5, %v3836_v57  ;;  %v3767_v20 = vmul.f32 %v3751_v8, %v3730_v48  ;;  %v3768_v32 = vmul.f32 %v3752_v36, %v3738_v35  ;;  %v4353_v8 = vld [vmem:[%s4788_s9 + $0x18] sm:$0xff] }
 0x765   : > { %v3875_v24 = vadd.f32 %v4346_v11, %v3859_v15  ;;  %v3867_v4 = vmul.f32 %v3851_v16, %v8644_v45  ;;  %v3693_v54 = vadd.f32 %v3677_v60, %v8526_v1  ;;  %v4348_v45 = vld [vmem:[%s4788_s9 + $0x60] sm:$0xff]  ;;  %v4355_v11 = vld [vmem:[%s4788_s9 + $0x48] sm:$0xff] }
 0x766   : > { %v4327_v34 = vpop.eup %4326  ;;  %v3876_v22 = vadd.f32 %v4347_v63, %v3860_v10  ;;  %v3868_v33 = vmul.f32 %v3852_v30, %v8650_v38  ;;  %v3783_v2 = vadd.f32 %v3767_v20, %v8560_v56  ;;  %v8715_v41 = vadd.f32 %v3768_v32, %v8562_v53  ;;  %v4349_v38 = vld [vmem:[%s4788_s9 + $0x68] sm:$0xff]  ;;  %v4354_v30 = vld [vmem:[%s4788_s9 + $0x40] sm:$0xff] }
 0x767   : > { %v4329_v52 = vpop.eup %4328  ;;  %3891 = vst [vmem:[%s8658_s27 + $0x20] sm:$0xff] %v3875_v24  ;;  %v3883_v62 = vadd.f32 %v4348_v45, %v3867_v4  ;;  %v3833_v61 = vmul.f32 0.5, %v4327_v34 }
 0x768   : > { %v4331_v3 = vpop.eup %4330  ;;  %3892 = vst [vmem:[%s8658_s27 + $0x28] sm:$0xff] %v3876_v22  ;;  %v3884_v17 = vadd.f32 %v4349_v38, %v3868_v33  ;;  %v3834_v56 = vmul.f32 0.5, %v4329_v52  ;;  %v3799_v59 = vmul.f32 0.5, %v3783_v2  ;;  %v3800_v53 = vmul.f32 0.5, %v8715_v41  ;;  %v3725_v5 = vpop.permute.xlu0 %3724  ;;  %v4357_v52 = vld [vmem:[%s4788_s9 + $0x78] sm:$0xff] }
 0x769   : > { %v4333_v58 = vpop.eup %4332  ;;  %3899 = vst [vmem:[%s8658_s27 + $0x60] sm:$0xff] %v3883_v62  ;;  %v3849_v1 = vadd.f32 0.5, %v3833_v61  ;;  %v3825_v47 = vmul.f32 0.5, %v4331_v3  ;;  %v3733_v40 = vsel %vm1336_vm7, %v8606_v44, %v3725_v5  ;;  %v3741_v0 = vsel %vm1336_vm7, %v3725_v5, %v8606_v44  ;;  %v4350_v44 = vld [vmem:[%s4788_s9 + $0x50] sm:$0xff] }
 0x76a   : > { %3900 = vst [vmem:[%s8658_s27 + $0x68] sm:$0xff] %v3884_v17  ;;  %v3850_v7 = vadd.f32 0.5, %v3834_v56  ;;  %v3826_v27 = vmul.f32 0.5, %v4333_v58  ;;  %4334 = vtanh.f32 %v3799_v59  ;;  %v3773_v18 = vmul.f32 %v3757_v28, %v3733_v40 }
 0x76b   : > { %v3865_v14 = vmul.f32 %v3849_v1, %v8679_v49  ;;  %v3841_v37 = vadd.f32 0.5, %v3825_v47  ;;  %4336 = vtanh.f32 %v3800_v53  ;;  %v3774_v9 = vmul.f32 %v3758_v42, %v3741_v0 }
 0x76c   : > { %v3866_v51 = vmul.f32 %v3850_v7, %v8681_v29  ;;  %v3842_v19 = vadd.f32 0.5, %v3826_v27  ;;  %v3789_v13 = vadd.f32 %v3773_v18, %v3692_v43 }
 0x76d   : > { %v3881_v46 = vadd.f32 %v4350_v44, %v3865_v14  ;;  %v3857_v60 = vmul.f32 %v3841_v37, %v8692_v6  ;;  %v3790_v25 = vadd.f32 %v3774_v9, %v3693_v54 }
 0x76e   : > { %v3882_v12 = vadd.f32 %v4351_v39, %v3866_v51  ;;  %v3858_v49 = vmul.f32 %v3842_v19, %v8696_v23  ;;  %v3805_v50 = vmul.f32 0.5, %v3789_v13 }
 0x76f   : > { %3897 = vst [vmem:[%s8658_s27 + $0x50] sm:$0xff] %v3881_v46  ;;  %v3873_v31 = vadd.f32 %v4352_v26, %v3857_v60  ;;  %v3806_v29 = vmul.f32 0.5, %v3790_v25 }
 0x770   : > { %v4335_v55 = vpop.eup %4334  ;;  %3898 = vst [vmem:[%s8658_s27 + $0x58] sm:$0xff] %v3882_v12  ;;  %v3874_v36 = vadd.f32 %v4353_v8, %v3858_v49  ;;  %4338 = vtanh.f32 %v3805_v50 }
 0x771   : > { %v4337_v6 = vpop.eup %4336  ;;  %3889 = vst [vmem:[%s8658_s27 + $0x10] sm:$0xff] %v3873_v31  ;;  %v3831_v21 = vmul.f32 0.5, %v4335_v55  ;;  %4340 = vtanh.f32 %v3806_v29 }
 0x772   : > { %3890 = vst [vmem:[%s8658_s27 + $0x18] sm:$0xff] %v3874_v36  ;;  %v3832_v23 = vmul.f32 0.5, %v4337_v6 }
 0x773   : > { %v3847_v57 = vadd.f32 0.5, %v3831_v21 }
 0x774   : > { %v3848_v48 = vadd.f32 0.5, %v3832_v23 }
 0x775   : > { %v3863_v15 = vmul.f32 %v3847_v57, %v3783_v2  ;;  %v4356_v2 = vld [vmem:[%s4788_s9 + $0x70] sm:$0xff] }
 0x776   : > { %v4339_v16 = vpop.eup %4338  ;;  %v3864_v35 = vmul.f32 %v3848_v48, %v8715_v41 }
 0x777   : > { %v4341_v10 = vpop.eup %4340  ;;  %v3879_v20 = vadd.f32 %v4354_v30, %v3863_v15  ;;  %v3837_v32 = vmul.f32 0.5, %v4339_v16 }
 0x778   : > { %v3880_v24 = vadd.f32 %v4355_v11, %v3864_v35  ;;  %v3838_v4 = vmul.f32 0.5, %v4341_v10 }
 0x779   : > { %3895 = vst [vmem:[%s8658_s27 + $0x40] sm:$0xff] %v3879_v20  ;;  %v3853_v34 = vadd.f32 0.5, %v3837_v32 }
 0x77a   : > { %3896 = vst [vmem:[%s8658_s27 + $0x48] sm:$0xff] %v3880_v24  ;;  %v3854_v63 = vadd.f32 0.5, %v3838_v4 }
 0x77b   : > { %v3869_v22 = vmul.f32 %v3853_v34, %v3789_v13 }
 0x77c   : > { %v3870_v33 = vmul.f32 %v3854_v63, %v3790_v25 }
 0x77d   : > { %v3885_v41 = vadd.f32 %v4356_v2, %v3869_v22 }
 0x77e   : > { %v3886_v43 = vadd.f32 %v4357_v52, %v3870_v33 }
 0x77f   : > { %3901 = vst [vmem:[%s8658_s27 + $0x70] sm:$0xff] %v3885_v41 }
 0x780   : > { %3902 = vst [vmem:[%s8658_s27 + $0x78] sm:$0xff] %v3886_v43 }
 0x781   : > { %4505 = shalt.err (!%p4502_p9)
}
 0x782   : > { %s4571_s15 = smov 256   ;;  %s4572_s9 = smov 512  }
 0x783   : > { %4100 = dma.vmem_to_hbm [thread:$0]  (%p4676_p6), %s3917_s21, 2048, %s3919_s25, %s3904_s17, %s4571_s15, %s4572_s9, %s4564_s30  }
 0x784 PF: > { %s9378_s27 = sld [smem:[#allocation16_spill]]  ;;  %p4116_p11 = pnand %p4034_p1, %p4682_p10 }
 0x786   : > { %p4117_p12 = pneg %p4116_p11 }
 0x78a   : > { %s3933_s24 = sand.u32 1, %s9378_s27  }
 0x78b   : > { %s3934_s13 = scalar_lea.sflag [#allocation4], %s3933_s24 }
 0x78c   : > { %4535 = dma.done.wait (%p4117_p12), %s3934_s13, 2048  }
 0x78d   : > { %4537 = vsyncadd (%p4117_p12), %s3934_s13, 4294965248  ;;  %s9380_s20 = sld [smem:[#allocation17_spill]]  ;;  %s9382_s17 = smov %s4544_s18 }
 0x78e   : > { %s9381_s28 = sld [smem:[#allocation18_spill]]  ;;  %s9383_s18 = smov %s4548_s19 }
 0x793   : > { %p24_p13 = scmp.ge.s32.totalorder %s9380_s20, 4  }
 0x794   : > { %s9384_s19 = smov %s9381_s28 }
 0x795   :  { %26 = sbr.rel (!%p24_p13) target bundleno = 11 (0xb), region = 168 }
 0x79a   :  { %3940 = vsyncpa [#allocation3], 1 }
 0x79b   :  { %3942 = vsyncpa [#allocation3 + $0x1], 1 }
 0x79c   :  { %3943 = vsyncpa [#allocation6], 1 }
 0x79d   :  { %3944 = vsyncpa [#allocation9], 1 }
 0x79e   :  { %3945 = vsyncpa [#allocation4], 1 }
 0x79f   :  { %3947 = vsyncpa [#allocation4 + $0x1], 1 }

</bundles_post_ra>
